<compile_context>
chip_gen: v5e
topology: v5e:2x2
jax: 0.10.0
libtpu: 0.0.40
codegen_flags: <defaults>
</compile_context>

<pallas_src>
import functools

import jax
import jax.numpy as jnp
from jax import lax
from jax.experimental import pallas as pl
from jax.experimental.pallas import tpu as pltpu

_BN_EPS = 1e-5
# Per-layer slot row offsets: off_{l+1} = off_l - padding (padding = 2 for all convs).
_OFF0, _OFF1, _OFF2, _OFF3 = 6, 4, 2, 0


def _round_up(x, m):
    return (x + m - 1) // m * m


def _physical_vmem_bytes():
    try:
        return int(pltpu.get_tpu_info().vmem_capacity_bytes)
    except Exception:
        return 64 * 1024 * 1024  # v7x per-TensorCore VMEM (most conservative)


def dtkfcn_kernel(xcol_ref, pos_ref, pool_ref,
                  w1_ref, g1_ref, be1_ref,
                  w2_ref, g2_ref, be2_ref,
                  w3_ref, g3_ref, be3_ref,
                  lw1_ref, lb1_ref, lw2_ref, lb2_ref,
                  relu1_ref, relu2_ref, relu3_ref, ful1_ref, res_ref,
                  *, n, s, l1, l2, l3):
    m = n * s
    pos = pos_ref[...]                                      # (m, 1) f32 in-slot row index

    def bn_sigmoid(acc, mask, count, g_ref, b_ref):
        # Training-mode BatchNorm1d (biased batch variance over N*L_out valid
        # rows, per channel) fused with Sigmoid.  gamma/beta folded into a
        # single scale/shift so the slab-level work is one FMA per element.
        inv_n = 1.0 / count
        am = acc * mask                                     # reused for s1 and s2
        s1 = jnp.sum(am, axis=0, keepdims=True)             # (1, C)
        s2 = jnp.sum(am * acc, axis=0, keepdims=True)       # (1, C)
        mean = s1 * inv_n
        var = jnp.maximum(s2 * inv_n - mean * mean, 0.0)
        scale = g_ref[...] * lax.rsqrt(var + _BN_EPS)
        shift = b_ref[...] - mean * scale
        return jax.nn.sigmoid(acc * scale + shift)

    def mask_for(off, ll):
        return ((pos >= off) & (pos < off + ll)).astype(jnp.float32)

    # ---- conv1: im2col'd by the wrapper -> one bf16 matmul, K padded to 128 ----
    # Conv biases are intentionally omitted: a per-channel constant added before
    # batch-statistics BatchNorm cancels exactly in (acc - mean).
    acc1 = jnp.dot(xcol_ref[...], w1_ref[...], preferred_element_type=jnp.float32)
    mask1 = mask_for(_OFF1, l1)
    r1 = bn_sigmoid(acc1, mask1, n * l1, g1_ref, be1_ref) * mask1   # zero pad rows for conv2
    relu1_ref[pl.ds(0, m), :] = r1
    relu1_ref[pl.ds(m, 8), :] = jnp.zeros((8, 128), jnp.float32)    # zero tail: tap reads stay finite

    # ---- conv2: K=5 shifted matmuls (bf16 operands, f32 accumulate), taps
    #      sliced directly from the resident relu1 output slab ----
    acc2 = jnp.dot(r1.astype(jnp.bfloat16), w2_ref[0],
                   preferred_element_type=jnp.float32)
    for k in range(1, 5):
        tap = relu1_ref[pl.ds(k, m), :].astype(jnp.bfloat16)
        acc2 = acc2 + jnp.dot(tap, w2_ref[k], preferred_element_type=jnp.float32)
    mask2 = mask_for(_OFF2, l2)
    r2 = bn_sigmoid(acc2, mask2, n * l2, g2_ref, be2_ref) * mask2   # zero pad rows for conv3
    relu2_ref[pl.ds(0, m), :] = r2
    relu2_ref[pl.ds(m, 8), :] = jnp.zeros((8, 256), jnp.float32)

    # ---- conv3: K=3 shifted matmuls ----
    acc3 = jnp.dot(r2.astype(jnp.bfloat16), w3_ref[0],
                   preferred_element_type=jnp.float32)
    for k in range(1, 3):
        tap = relu2_ref[pl.ds(k, m), :].astype(jnp.bfloat16)
        acc3 = acc3 + jnp.dot(tap, w3_ref[k], preferred_element_type=jnp.float32)
    mask3 = mask_for(_OFF3, l3)
    r3 = bn_sigmoid(acc3, mask3, n * l3, g3_ref, be3_ref)           # no re-masking needed
    relu3_ref[...] = r3

    # ---- AdaptiveAvgPool1d(1) as a tiny MXU matmul (wrapper-built pooling
    #      matrix: 1/l3 at each batch's valid slot rows), then 2 Linear layers;
    #      the class dim is padded to 128 lanes for a lane-dense final store ----
    avg = jnp.dot(pool_ref[...], r3, preferred_element_type=jnp.float32)        # (N, 128)
    f1 = jnp.dot(avg, lw1_ref[...], preferred_element_type=jnp.float32) + lb1_ref[...]
    ful1_ref[...] = f1
    res_ref[...] = jnp.dot(f1, lw2_ref[...],
                           preferred_element_type=jnp.float32) + lb2_ref[...]


def dtkfcn_forward(x_ncl, params):
    """x_ncl: (N, input_dims, L) float32, PyTorch NCL layout."""
    n, cin, l = x_ncl.shape
    l1 = l + 2 * 2 - 7 + 1          # conv1: K=7, P=2
    l2 = l1 + 2 * 2 - 5 + 1         # conv2: K=5, P=2
    l3 = l2 + 2 * 2 - 3 + 1         # conv3: K=3, P=2
    num_classes = params["lw2"].shape[1]
    cpad = max(128, _round_up(num_classes, 128))

    s = _round_up(l + 8, 8)         # per-batch slot rows (covers all tap windows)
    m = n * s
    kpad = max(128, _round_up(7 * cin, 128))

    # ---- wrapper-side layout (plain XLA, cheap): slab + im2col + aux arrays ----
    x_nlc = jnp.transpose(x_ncl, (0, 2, 1))                          # (N, L, Cin)
    x_slot = jnp.pad(x_nlc, ((0, 0), (_OFF0, s + 8 - _OFF0 - l), (0, 0)))
    # im2col: columns k-major, cin-minor (matches w1.reshape(7*cin, 128)); padded
    # to a lane-dense K=kpad contraction.
    xcol = jnp.concatenate([x_slot[:, k:k + s, :] for k in range(7)],
                           axis=-1).reshape(m, 7 * cin)
    xcol = jnp.pad(xcol, ((0, 0), (0, kpad - 7 * cin))).astype(jnp.bfloat16)

    rows = jnp.arange(m)
    in_slot = rows % s
    slot_pos = in_slot.astype(jnp.float32).reshape(m, 1)             # masks derived in-kernel
    pool = (((rows // s)[None, :] == jnp.arange(n)[:, None]) &
            (in_slot[None, :] < l3)).astype(jnp.float32) * (1.0 / l3)  # (N, m); off3 == 0

    w1f = jnp.pad(params["w1"].reshape(7 * cin, 128),
                  ((0, kpad - 7 * cin), (0, 0))).astype(jnp.bfloat16)
    w2b = params["w2"].astype(jnp.bfloat16)
    w3b = params["w3"].astype(jnp.bfloat16)
    lw2p = jnp.pad(params["lw2"], ((0, 0), (0, cpad - num_classes)))
    lb2p = jnp.pad(params["lb2"], ((0, 0), (0, cpad - num_classes)))

    args = (xcol, slot_pos, pool,
            w1f, params["bn1_g"], params["bn1_b"],
            w2b, params["bn2_g"], params["bn2_b"],
            w3b, params["bn3_g"], params["bn3_b"],
            params["lw1"], params["lb1"], lw2p, lb2p)

    out_shape = (
        jax.ShapeDtypeStruct((m + 8, 128), jnp.float32),             # relu1 slab (+8 zero tail)
        jax.ShapeDtypeStruct((m + 8, 256), jnp.float32),             # relu2 slab (+8 zero tail)
        jax.ShapeDtypeStruct((m, 128), jnp.float32),                 # relu3 slab
        jax.ShapeDtypeStruct((n, 128), jnp.float32),                 # ful1
        jax.ShapeDtypeStruct((n, cpad), jnp.float32),                # res (padded)
    )

    # VMEM budget: output slabs + live f32 temps + bf16 inputs/weights,
    # clamped to the target chip's physical VMEM.
    resident = ((m + 8) * (128 + 256) * 4 + m * 128 * 4              # output slabs
                + 4 * m * 256 * 4                                    # live f32 temporaries
                + m * kpad * 2 + m * 512 + n * m * 4                 # xcol + pos + pool
                + 2 * (kpad * 128 + 5 * 128 * 256 + 3 * 256 * 128)   # bf16 conv weights
                + 4 * (128 * 128 + 128 * cpad) + (1 << 20))
    phys = _physical_vmem_bytes()
    vmem_limit = int(max(16 << 20,
                         min(phys - (4 << 20), max(32 << 20, 2 * resident))))

    flops = (2 * m * (kpad * 128 + 5 * 128 * 256 + 3 * 256 * 128)
             + 2 * n * (m * 128 + 128 * 128 + 128 * cpad))
    transcendentals = m * (128 + 256 + 128)
    bytes_accessed = (2 * m * kpad + 4 * m * (1 + 128 + 256 + 128)
                      + 4 * n * (m + 128 + cpad)
                      + 2 * (kpad * 128 + 5 * 128 * 256 + 3 * 256 * 128)
                      + 4 * (128 * 128 + 128 * cpad + 6 * 256 + 128 + cpad))

    vmem = pl.BlockSpec(memory_space=pltpu.MemorySpace.VMEM)
    kernel = functools.partial(dtkfcn_kernel, n=n, s=s, l1=l1, l2=l2, l3=l3)

    r1s, r2s, r3s, f1, res_p = pl.pallas_call(
        kernel,
        out_shape=out_shape,
        in_specs=[vmem] * len(args),
        out_specs=(vmem,) * len(out_shape),
        compiler_params=pltpu.CompilerParams(vmem_limit_bytes=vmem_limit),
        cost_estimate=pl.CostEstimate(flops=flops,
                                      transcendentals=transcendentals,
                                      bytes_accessed=bytes_accessed),
    )(*args)

    def extract(slab, c, off, ll):
        # slab (>=N*S, C) -> valid rows -> PyTorch NCL (N, C, L_l)
        return jnp.transpose(slab[:m].reshape(n, s, c)[:, off:off + ll, :],
                             (0, 2, 1))

    return [extract(r1s, 128, _OFF1, l1),
            extract(r2s, 256, _OFF2, l2),
            extract(r3s, 128, _OFF3, l3),
            f1,
            res_p[:, :num_classes]]


def init_params(key, input_dims, num_classes):
    """Deterministic kaiming-normal init matching the module's __init__ shapes."""
    ks = jax.random.split(key, 5)

    def kaiming(k, shape, fan_in):
        return jax.random.normal(k, shape, jnp.float32) * jnp.sqrt(2.0 / fan_in)

    return {
        # Conv weights pre-transposed to (K, Cin, Cout).  Conv biases are kept
        # for interface parity only: they cancel exactly inside the
        # batch-statistics BatchNorm that immediately follows each conv, so the
        # kernel does not consume them.
        "w1": kaiming(ks[0], (7, input_dims, 128), input_dims * 7),
        "b1": jnp.zeros((1, 128), jnp.float32),
        "w2": kaiming(ks[1], (5, 128, 256), 128 * 5),
        "b2": jnp.zeros((1, 256), jnp.float32),
        "w3": kaiming(ks[2], (3, 256, 128), 256 * 3),
        "b3": jnp.zeros((1, 128), jnp.float32),
        # BatchNorm affine params (module init: gamma=1, beta=0).
        "bn1_g": jnp.ones((1, 128), jnp.float32),
        "bn1_b": jnp.zeros((1, 128), jnp.float32),
        "bn2_g": jnp.ones((1, 256), jnp.float32),
        "bn2_b": jnp.zeros((1, 256), jnp.float32),
        "bn3_g": jnp.ones((1, 128), jnp.float32),
        "bn3_b": jnp.zeros((1, 128), jnp.float32),
        # Linear weights pre-transposed to (in, out); biases (1, out).
        "lw1": kaiming(ks[3], (128, 128), 128),
        "lb1": jnp.zeros((1, 128), jnp.float32),
        "lw2": kaiming(ks[4], (128, num_classes), 128),
        "lb2": jnp.zeros((1, num_classes), jnp.float32),
    }


if __name__ == "__main__":
    batch, input_dims, length, num_classes = 2, 4, 16, 10

    key = jax.random.PRNGKey(0)
    kx, kp = jax.random.split(key)
    x = jax.random.normal(kx, (batch, input_dims, length), jnp.float32)
    params = init_params(kp, input_dims, num_classes)

    outs = jax.block_until_ready(dtkfcn_forward(x, params))

    expected_shapes = [
        (batch, 128, length - 2),        # relu1: L + 2*2 - 7 + 1
        (batch, 256, length - 2),        # relu2: same length
        (batch, 128, length),            # relu3: L2 + 2*2 - 3 + 1
        (batch, 128),                    # ful1
        (batch, num_classes),            # res
    ]
    assert [o.shape for o in outs] == expected_shapes, [o.shape for o in outs]
    assert all(bool(jnp.all(jnp.isfinite(o))) for o in outs)
    # Sigmoid activations must lie in (0, 1).
    for o in outs[:3]:
        assert bool(jnp.all((o > 0.0) & (o < 1.0)))

    print("KERNEL_OK")
</pallas_src>

<mosaic_0001>
module attributes {stable_mosaic.version = 11 : i64} {
  func.func @dtkfcn_kernel(%arg0: memref<48x128xbf16, #tpu.memory_space<vmem>>, %arg1: memref<48x1xf32, #tpu.memory_space<vmem>>, %arg2: memref<2x48xf32, #tpu.memory_space<vmem>>, %arg3: memref<128x128xbf16, #tpu.memory_space<vmem>>, %arg4: memref<1x128xf32, #tpu.memory_space<vmem>>, %arg5: memref<1x128xf32, #tpu.memory_space<vmem>>, %arg6: memref<5x128x256xbf16, #tpu.memory_space<vmem>>, %arg7: memref<1x256xf32, #tpu.memory_space<vmem>>, %arg8: memref<1x256xf32, #tpu.memory_space<vmem>>, %arg9: memref<3x256x128xbf16, #tpu.memory_space<vmem>>, %arg10: memref<1x128xf32, #tpu.memory_space<vmem>>, %arg11: memref<1x128xf32, #tpu.memory_space<vmem>>, %arg12: memref<128x128xf32, #tpu.memory_space<vmem>>, %arg13: memref<1x128xf32, #tpu.memory_space<vmem>>, %arg14: memref<128x128xf32, #tpu.memory_space<vmem>>, %arg15: memref<1x128xf32, #tpu.memory_space<vmem>>, %arg16: memref<56x128xf32, #tpu.memory_space<vmem>>, %arg17: memref<56x256xf32, #tpu.memory_space<vmem>>, %arg18: memref<48x128xf32, #tpu.memory_space<vmem>>, %arg19: memref<2x128xf32, #tpu.memory_space<vmem>>, %arg20: memref<2x128xf32, #tpu.memory_space<vmem>>) attributes {dimension_semantics = [], scalar_prefetch = 0 : i64, scratch_operands = 0 : i64, tpu.core_type = #tpu.core_type<tc>} {
    %c0 = arith.constant 0 : index
    %c0_0 = arith.constant 0 : index
    %0 = vector.load %arg1[%c0, %c0_0] : memref<48x1xf32, #tpu.memory_space<vmem>>, vector<48x1xf32>
    %c0_1 = arith.constant 0 : index
    %c0_2 = arith.constant 0 : index
    %1 = vector.load %arg0[%c0_1, %c0_2] : memref<48x128xbf16, #tpu.memory_space<vmem>>, vector<48x128xbf16>
    %c0_3 = arith.constant 0 : index
    %c0_4 = arith.constant 0 : index
    %2 = vector.load %arg3[%c0_3, %c0_4] : memref<128x128xbf16, #tpu.memory_space<vmem>>, vector<128x128xbf16>
    %cst = arith.constant dense<0.000000e+00> : vector<48x128xf32>
    %3 = tpu.matmul %1, %2, %cst {dimension_numbers = #tpu.dot_dimension_numbers<[1], [0], [0], [1], [0, 0, 1, 1], [], []>} : vector<48x128xbf16>, vector<128x128xbf16>, vector<48x128xf32> -> vector<48x128xf32>
    %cst_5 = arith.constant 4.000000e+00 : f32
    %4 = vector.broadcast %cst_5 : f32 to vector<48x1xf32>
    %5 = arith.cmpf oge, %0, %4 : vector<48x1xf32>
    %cst_6 = arith.constant 1.800000e+01 : f32
    %6 = vector.broadcast %cst_6 : f32 to vector<48x1xf32>
    %7 = arith.cmpf olt, %0, %6 : vector<48x1xf32>
    %8 = arith.andi %5, %7 : vector<48x1xi1>
    %9 = arith.extui %8 : vector<48x1xi1> to vector<48x1xi32>
    %10 = arith.sitofp %9 : vector<48x1xi32> to vector<48x1xf32>
    %11 = vector.broadcast %10 : vector<48x1xf32> to vector<48x128xf32>
    %12 = arith.mulf %3, %11 : vector<48x128xf32>
    %cst_7 = arith.constant dense<0.000000e+00> : vector<128xf32>
    %13 = vector.multi_reduction <add>, %12, %cst_7 [0] : vector<48x128xf32> to vector<128xf32>
    %14 = vector.shape_cast %13 : vector<128xf32> to vector<1x128xf32>
    %15 = arith.mulf %12, %3 : vector<48x128xf32>
    %cst_8 = arith.constant dense<0.000000e+00> : vector<128xf32>
    %16 = vector.multi_reduction <add>, %15, %cst_8 [0] : vector<48x128xf32> to vector<128xf32>
    %17 = vector.shape_cast %16 : vector<128xf32> to vector<1x128xf32>
    %cst_9 = arith.constant 0.0357142873 : f32
    %18 = vector.broadcast %cst_9 : f32 to vector<1x128xf32>
    %19 = arith.mulf %14, %18 : vector<1x128xf32>
    %cst_10 = arith.constant 0.0357142873 : f32
    %20 = vector.broadcast %cst_10 : f32 to vector<1x128xf32>
    %21 = arith.mulf %17, %20 : vector<1x128xf32>
    %22 = arith.mulf %19, %19 : vector<1x128xf32>
    %23 = arith.subf %21, %22 : vector<1x128xf32>
    %cst_11 = arith.constant 0.000000e+00 : f32
    %24 = vector.broadcast %cst_11 : f32 to vector<1x128xf32>
    %25 = arith.maximumf %23, %24 : vector<1x128xf32>
    %c0_12 = arith.constant 0 : index
    %c0_13 = arith.constant 0 : index
    %26 = vector.load %arg4[%c0_12, %c0_13] : memref<1x128xf32, #tpu.memory_space<vmem>>, vector<1x128xf32>
    %cst_14 = arith.constant 9.99999974E-6 : f32
    %27 = vector.broadcast %cst_14 : f32 to vector<1x128xf32>
    %28 = arith.addf %25, %27 : vector<1x128xf32>
    %29 = math.rsqrt %28 : vector<1x128xf32>
    %30 = arith.mulf %26, %29 : vector<1x128xf32>
    %c0_15 = arith.constant 0 : index
    %c0_16 = arith.constant 0 : index
    %31 = vector.load %arg5[%c0_15, %c0_16] : memref<1x128xf32, #tpu.memory_space<vmem>>, vector<1x128xf32>
    %32 = arith.mulf %19, %30 : vector<1x128xf32>
    %33 = arith.subf %31, %32 : vector<1x128xf32>
    %34 = vector.broadcast %30 : vector<1x128xf32> to vector<48x128xf32>
    %35 = arith.mulf %3, %34 : vector<48x128xf32>
    %36 = vector.broadcast %33 : vector<1x128xf32> to vector<48x128xf32>
    %37 = arith.addf %35, %36 : vector<48x128xf32>
    %38 = arith.negf %37 : vector<48x128xf32>
    %39 = math.exp %38 : vector<48x128xf32>
    %cst_17 = arith.constant 1.000000e+00 : f32
    %40 = vector.broadcast %cst_17 : f32 to vector<48x128xf32>
    %41 = arith.addf %40, %39 : vector<48x128xf32>
    %42 = arith.divf %40, %41 : vector<48x128xf32>
    %43 = vector.broadcast %10 : vector<48x1xf32> to vector<48x128xf32>
    %44 = arith.mulf %42, %43 : vector<48x128xf32>
    %c0_18 = arith.constant 0 : index
    %c0_19 = arith.constant 0 : index
    %45 = vector.load %arg16[%c0_18, %c0_19] : memref<56x128xf32, #tpu.memory_space<vmem>>, vector<48x128xf32>
    tpu.vector_store %arg16[%c0_18, %c0_19], %44 {strides = array<i32>} : memref<56x128xf32, #tpu.memory_space<vmem>>, vector<48x128xf32>,
    %cst_20 = arith.constant 0.000000e+00 : f32
    %46 = vector.broadcast %cst_20 : f32 to vector<8x128xf32>
    %c48 = arith.constant 48 : index
    %c0_21 = arith.constant 0 : index
    %47 = vector.load %arg16[%c48, %c0_21] : memref<56x128xf32, #tpu.memory_space<vmem>>, vector<8x128xf32>
    tpu.vector_store %arg16[%c48, %c0_21], %46 {strides = array<i32>} : memref<56x128xf32, #tpu.memory_space<vmem>>, vector<8x128xf32>,
    %48 = arith.truncf %44 : vector<48x128xf32> to vector<48x128xbf16>
    %c0_22 = arith.constant 0 : index
    %c0_23 = arith.constant 0 : index
    %c0_24 = arith.constant 0 : index
    %49 = vector.load %arg6[%c0_22, %c0_23, %c0_24] : memref<5x128x256xbf16, #tpu.memory_space<vmem>>, vector<1x128x256xbf16>
    %50 = vector.shape_cast %49 : vector<1x128x256xbf16> to vector<128x256xbf16>
    %cst_25 = arith.constant dense<0.000000e+00> : vector<48x256xf32>
    %51 = tpu.matmul %48, %50, %cst_25 {dimension_numbers = #tpu.dot_dimension_numbers<[1], [0], [0], [1], [0, 0, 1, 1], [], []>} : vector<48x128xbf16>, vector<128x256xbf16>, vector<48x256xf32> -> vector<48x256xf32>
    %c1 = arith.constant 1 : index
    %c0_26 = arith.constant 0 : index
    %52 = vector.load %arg16[%c1, %c0_26] : memref<56x128xf32, #tpu.memory_space<vmem>>, vector<48x128xf32>
    %53 = arith.truncf %52 : vector<48x128xf32> to vector<48x128xbf16>
    %c1_27 = arith.constant 1 : index
    %c0_28 = arith.constant 0 : index
    %c0_29 = arith.constant 0 : index
    %54 = vector.load %arg6[%c1_27, %c0_28, %c0_29] : memref<5x128x256xbf16, #tpu.memory_space<vmem>>, vector<1x128x256xbf16>
    %55 = vector.shape_cast %54 : vector<1x128x256xbf16> to vector<128x256xbf16>
    %cst_30 = arith.constant dense<0.000000e+00> : vector<48x256xf32>
    %56 = tpu.matmul %53, %55, %cst_30 {dimension_numbers = #tpu.dot_dimension_numbers<[1], [0], [0], [1], [0, 0, 1, 1], [], []>} : vector<48x128xbf16>, vector<128x256xbf16>, vector<48x256xf32> -> vector<48x256xf32>
    %57 = arith.addf %51, %56 : vector<48x256xf32>
    %c2 = arith.constant 2 : index
    %c0_31 = arith.constant 0 : index
    %58 = vector.load %arg16[%c2, %c0_31] : memref<56x128xf32, #tpu.memory_space<vmem>>, vector<48x128xf32>
    %59 = arith.truncf %58 : vector<48x128xf32> to vector<48x128xbf16>
    %c2_32 = arith.constant 2 : index
    %c0_33 = arith.constant 0 : index
    %c0_34 = arith.constant 0 : index
    %60 = vector.load %arg6[%c2_32, %c0_33, %c0_34] : memref<5x128x256xbf16, #tpu.memory_space<vmem>>, vector<1x128x256xbf16>
    %61 = vector.shape_cast %60 : vector<1x128x256xbf16> to vector<128x256xbf16>
    %cst_35 = arith.constant dense<0.000000e+00> : vector<48x256xf32>
    %62 = tpu.matmul %59, %61, %cst_35 {dimension_numbers = #tpu.dot_dimension_numbers<[1], [0], [0], [1], [0, 0, 1, 1], [], []>} : vector<48x128xbf16>, vector<128x256xbf16>, vector<48x256xf32> -> vector<48x256xf32>
    %63 = arith.addf %57, %62 : vector<48x256xf32>
    %c3 = arith.constant 3 : index
    %c0_36 = arith.constant 0 : index
    %64 = vector.load %arg16[%c3, %c0_36] : memref<56x128xf32, #tpu.memory_space<vmem>>, vector<48x128xf32>
    %65 = arith.truncf %64 : vector<48x128xf32> to vector<48x128xbf16>
    %c3_37 = arith.constant 3 : index
    %c0_38 = arith.constant 0 : index
    %c0_39 = arith.constant 0 : index
    %66 = vector.load %arg6[%c3_37, %c0_38, %c0_39] : memref<5x128x256xbf16, #tpu.memory_space<vmem>>, vector<1x128x256xbf16>
    %67 = vector.shape_cast %66 : vector<1x128x256xbf16> to vector<128x256xbf16>
    %cst_40 = arith.constant dense<0.000000e+00> : vector<48x256xf32>
    %68 = tpu.matmul %65, %67, %cst_40 {dimension_numbers = #tpu.dot_dimension_numbers<[1], [0], [0], [1], [0, 0, 1, 1], [], []>} : vector<48x128xbf16>, vector<128x256xbf16>, vector<48x256xf32> -> vector<48x256xf32>
    %69 = arith.addf %63, %68 : vector<48x256xf32>
    %c4 = arith.constant 4 : index
    %c0_41 = arith.constant 0 : index
    %70 = vector.load %arg16[%c4, %c0_41] : memref<56x128xf32, #tpu.memory_space<vmem>>, vector<48x128xf32>
    %71 = arith.truncf %70 : vector<48x128xf32> to vector<48x128xbf16>
    %c4_42 = arith.constant 4 : index
    %c0_43 = arith.constant 0 : index
    %c0_44 = arith.constant 0 : index
    %72 = vector.load %arg6[%c4_42, %c0_43, %c0_44] : memref<5x128x256xbf16, #tpu.memory_space<vmem>>, vector<1x128x256xbf16>
    %73 = vector.shape_cast %72 : vector<1x128x256xbf16> to vector<128x256xbf16>
    %cst_45 = arith.constant dense<0.000000e+00> : vector<48x256xf32>
    %74 = tpu.matmul %71, %73, %cst_45 {dimension_numbers = #tpu.dot_dimension_numbers<[1], [0], [0], [1], [0, 0, 1, 1], [], []>} : vector<48x128xbf16>, vector<128x256xbf16>, vector<48x256xf32> -> vector<48x256xf32>
    %75 = arith.addf %69, %74 : vector<48x256xf32>
    %cst_46 = arith.constant 2.000000e+00 : f32
    %76 = vector.broadcast %cst_46 : f32 to vector<48x1xf32>
    %77 = arith.cmpf oge, %0, %76 : vector<48x1xf32>
    %cst_47 = arith.constant 1.600000e+01 : f32
    %78 = vector.broadcast %cst_47 : f32 to vector<48x1xf32>
    %79 = arith.cmpf olt, %0, %78 : vector<48x1xf32>
    %80 = arith.andi %77, %79 : vector<48x1xi1>
    %81 = arith.extui %80 : vector<48x1xi1> to vector<48x1xi32>
    %82 = arith.sitofp %81 : vector<48x1xi32> to vector<48x1xf32>
    %83 = vector.broadcast %82 : vector<48x1xf32> to vector<48x256xf32>
    %84 = arith.mulf %75, %83 : vector<48x256xf32>
    %cst_48 = arith.constant dense<0.000000e+00> : vector<256xf32>
    %85 = vector.multi_reduction <add>, %84, %cst_48 [0] : vector<48x256xf32> to vector<256xf32>
    %86 = vector.shape_cast %85 : vector<256xf32> to vector<1x256xf32>
    %87 = arith.mulf %84, %75 : vector<48x256xf32>
    %cst_49 = arith.constant dense<0.000000e+00> : vector<256xf32>
    %88 = vector.multi_reduction <add>, %87, %cst_49 [0] : vector<48x256xf32> to vector<256xf32>
    %89 = vector.shape_cast %88 : vector<256xf32> to vector<1x256xf32>
    %cst_50 = arith.constant 0.0357142873 : f32
    %90 = vector.broadcast %cst_50 : f32 to vector<1x256xf32>
    %91 = arith.mulf %86, %90 : vector<1x256xf32>
    %cst_51 = arith.constant 0.0357142873 : f32
    %92 = vector.broadcast %cst_51 : f32 to vector<1x256xf32>
    %93 = arith.mulf %89, %92 : vector<1x256xf32>
    %94 = arith.mulf %91, %91 : vector<1x256xf32>
    %95 = arith.subf %93, %94 : vector<1x256xf32>
    %cst_52 = arith.constant 0.000000e+00 : f32
    %96 = vector.broadcast %cst_52 : f32 to vector<1x256xf32>
    %97 = arith.maximumf %95, %96 : vector<1x256xf32>
    %c0_53 = arith.constant 0 : index
    %c0_54 = arith.constant 0 : index
    %98 = vector.load %arg7[%c0_53, %c0_54] : memref<1x256xf32, #tpu.memory_space<vmem>>, vector<1x256xf32>
    %cst_55 = arith.constant 9.99999974E-6 : f32
    %99 = vector.broadcast %cst_55 : f32 to vector<1x256xf32>
    %100 = arith.addf %97, %99 : vector<1x256xf32>
    %101 = math.rsqrt %100 : vector<1x256xf32>
    %102 = arith.mulf %98, %101 : vector<1x256xf32>
    %c0_56 = arith.constant 0 : index
    %c0_57 = arith.constant 0 : index
    %103 = vector.load %arg8[%c0_56, %c0_57] : memref<1x256xf32, #tpu.memory_space<vmem>>, vector<1x256xf32>
    %104 = arith.mulf %91, %102 : vector<1x256xf32>
    %105 = arith.subf %103, %104 : vector<1x256xf32>
    %106 = vector.broadcast %102 : vector<1x256xf32> to vector<48x256xf32>
    %107 = arith.mulf %75, %106 : vector<48x256xf32>
    %108 = vector.broadcast %105 : vector<1x256xf32> to vector<48x256xf32>
    %109 = arith.addf %107, %108 : vector<48x256xf32>
    %110 = arith.negf %109 : vector<48x256xf32>
    %111 = math.exp %110 : vector<48x256xf32>
    %cst_58 = arith.constant 1.000000e+00 : f32
    %112 = vector.broadcast %cst_58 : f32 to vector<48x256xf32>
    %113 = arith.addf %112, %111 : vector<48x256xf32>
    %114 = arith.divf %112, %113 : vector<48x256xf32>
    %115 = vector.broadcast %82 : vector<48x1xf32> to vector<48x256xf32>
    %116 = arith.mulf %114, %115 : vector<48x256xf32>
    %c0_59 = arith.constant 0 : index
    %c0_60 = arith.constant 0 : index
    %117 = vector.load %arg17[%c0_59, %c0_60] : memref<56x256xf32, #tpu.memory_space<vmem>>, vector<48x256xf32>
    tpu.vector_store %arg17[%c0_59, %c0_60], %116 {strides = array<i32>} : memref<56x256xf32, #tpu.memory_space<vmem>>, vector<48x256xf32>,
    %cst_61 = arith.constant 0.000000e+00 : f32
    %118 = vector.broadcast %cst_61 : f32 to vector<8x256xf32>
    %c48_62 = arith.constant 48 : index
    %c0_63 = arith.constant 0 : index
    %119 = vector.load %arg17[%c48_62, %c0_63] : memref<56x256xf32, #tpu.memory_space<vmem>>, vector<8x256xf32>
    tpu.vector_store %arg17[%c48_62, %c0_63], %118 {strides = array<i32>} : memref<56x256xf32, #tpu.memory_space<vmem>>, vector<8x256xf32>,
    %120 = arith.truncf %116 : vector<48x256xf32> to vector<48x256xbf16>
    %c0_64 = arith.constant 0 : index
    %c0_65 = arith.constant 0 : index
    %c0_66 = arith.constant 0 : index
    %121 = vector.load %arg9[%c0_64, %c0_65, %c0_66] : memref<3x256x128xbf16, #tpu.memory_space<vmem>>, vector<1x256x128xbf16>
    %122 = vector.shape_cast %121 : vector<1x256x128xbf16> to vector<256x128xbf16>
    %cst_67 = arith.constant dense<0.000000e+00> : vector<48x128xf32>
    %123 = tpu.matmul %120, %122, %cst_67 {dimension_numbers = #tpu.dot_dimension_numbers<[1], [0], [0], [1], [0, 0, 1, 1], [], []>} : vector<48x256xbf16>, vector<256x128xbf16>, vector<48x128xf32> -> vector<48x128xf32>
    %c1_68 = arith.constant 1 : index
    %c0_69 = arith.constant 0 : index
    %124 = vector.load %arg17[%c1_68, %c0_69] : memref<56x256xf32, #tpu.memory_space<vmem>>, vector<48x256xf32>
    %125 = arith.truncf %124 : vector<48x256xf32> to vector<48x256xbf16>
    %c1_70 = arith.constant 1 : index
    %c0_71 = arith.constant 0 : index
    %c0_72 = arith.constant 0 : index
    %126 = vector.load %arg9[%c1_70, %c0_71, %c0_72] : memref<3x256x128xbf16, #tpu.memory_space<vmem>>, vector<1x256x128xbf16>
    %127 = vector.shape_cast %126 : vector<1x256x128xbf16> to vector<256x128xbf16>
    %cst_73 = arith.constant dense<0.000000e+00> : vector<48x128xf32>
    %128 = tpu.matmul %125, %127, %cst_73 {dimension_numbers = #tpu.dot_dimension_numbers<[1], [0], [0], [1], [0, 0, 1, 1], [], []>} : vector<48x256xbf16>, vector<256x128xbf16>, vector<48x128xf32> -> vector<48x128xf32>
    %129 = arith.addf %123, %128 : vector<48x128xf32>
    %c2_74 = arith.constant 2 : index
    %c0_75 = arith.constant 0 : index
    %130 = vector.load %arg17[%c2_74, %c0_75] : memref<56x256xf32, #tpu.memory_space<vmem>>, vector<48x256xf32>
    %131 = arith.truncf %130 : vector<48x256xf32> to vector<48x256xbf16>
    %c2_76 = arith.constant 2 : index
    %c0_77 = arith.constant 0 : index
    %c0_78 = arith.constant 0 : index
    %132 = vector.load %arg9[%c2_76, %c0_77, %c0_78] : memref<3x256x128xbf16, #tpu.memory_space<vmem>>, vector<1x256x128xbf16>
    %133 = vector.shape_cast %132 : vector<1x256x128xbf16> to vector<256x128xbf16>
    %cst_79 = arith.constant dense<0.000000e+00> : vector<48x128xf32>
    %134 = tpu.matmul %131, %133, %cst_79 {dimension_numbers = #tpu.dot_dimension_numbers<[1], [0], [0], [1], [0, 0, 1, 1], [], []>} : vector<48x256xbf16>, vector<256x128xbf16>, vector<48x128xf32> -> vector<48x128xf32>
    %135 = arith.addf %129, %134 : vector<48x128xf32>
    %cst_80 = arith.constant 0.000000e+00 : f32
    %136 = vector.broadcast %cst_80 : f32 to vector<48x1xf32>
    %137 = arith.cmpf oge, %0, %136 : vector<48x1xf32>
    %cst_81 = arith.constant 1.600000e+01 : f32
    %138 = vector.broadcast %cst_81 : f32 to vector<48x1xf32>
    %139 = arith.cmpf olt, %0, %138 : vector<48x1xf32>
    %140 = arith.andi %137, %139 : vector<48x1xi1>
    %141 = arith.extui %140 : vector<48x1xi1> to vector<48x1xi32>
    %142 = arith.sitofp %141 : vector<48x1xi32> to vector<48x1xf32>
    %143 = vector.broadcast %142 : vector<48x1xf32> to vector<48x128xf32>
    %144 = arith.mulf %135, %143 : vector<48x128xf32>
    %cst_82 = arith.constant dense<0.000000e+00> : vector<128xf32>
    %145 = vector.multi_reduction <add>, %144, %cst_82 [0] : vector<48x128xf32> to vector<128xf32>
    %146 = vector.shape_cast %145 : vector<128xf32> to vector<1x128xf32>
    %147 = arith.mulf %144, %135 : vector<48x128xf32>
    %cst_83 = arith.constant dense<0.000000e+00> : vector<128xf32>
    %148 = vector.multi_reduction <add>, %147, %cst_83 [0] : vector<48x128xf32> to vector<128xf32>
    %149 = vector.shape_cast %148 : vector<128xf32> to vector<1x128xf32>
    %cst_84 = arith.constant 3.125000e-02 : f32
    %150 = vector.broadcast %cst_84 : f32 to vector<1x128xf32>
    %151 = arith.mulf %146, %150 : vector<1x128xf32>
    %cst_85 = arith.constant 3.125000e-02 : f32
    %152 = vector.broadcast %cst_85 : f32 to vector<1x128xf32>
    %153 = arith.mulf %149, %152 : vector<1x128xf32>
    %154 = arith.mulf %151, %151 : vector<1x128xf32>
    %155 = arith.subf %153, %154 : vector<1x128xf32>
    %cst_86 = arith.constant 0.000000e+00 : f32
    %156 = vector.broadcast %cst_86 : f32 to vector<1x128xf32>
    %157 = arith.maximumf %155, %156 : vector<1x128xf32>
    %c0_87 = arith.constant 0 : index
    %c0_88 = arith.constant 0 : index
    %158 = vector.load %arg10[%c0_87, %c0_88] : memref<1x128xf32, #tpu.memory_space<vmem>>, vector<1x128xf32>
    %cst_89 = arith.constant 9.99999974E-6 : f32
    %159 = vector.broadcast %cst_89 : f32 to vector<1x128xf32>
    %160 = arith.addf %157, %159 : vector<1x128xf32>
    %161 = math.rsqrt %160 : vector<1x128xf32>
    %162 = arith.mulf %158, %161 : vector<1x128xf32>
    %c0_90 = arith.constant 0 : index
    %c0_91 = arith.constant 0 : index
    %163 = vector.load %arg11[%c0_90, %c0_91] : memref<1x128xf32, #tpu.memory_space<vmem>>, vector<1x128xf32>
    %164 = arith.mulf %151, %162 : vector<1x128xf32>
    %165 = arith.subf %163, %164 : vector<1x128xf32>
    %166 = vector.broadcast %162 : vector<1x128xf32> to vector<48x128xf32>
    %167 = arith.mulf %135, %166 : vector<48x128xf32>
    %168 = vector.broadcast %165 : vector<1x128xf32> to vector<48x128xf32>
    %169 = arith.addf %167, %168 : vector<48x128xf32>
    %170 = arith.negf %169 : vector<48x128xf32>
    %171 = math.exp %170 : vector<48x128xf32>
    %cst_92 = arith.constant 1.000000e+00 : f32
    %172 = vector.broadcast %cst_92 : f32 to vector<48x128xf32>
    %173 = arith.addf %172, %171 : vector<48x128xf32>
    %174 = arith.divf %172, %173 : vector<48x128xf32>
    %c0_93 = arith.constant 0 : index
    %c0_94 = arith.constant 0 : index
    %175 = vector.load %arg18[%c0_93, %c0_94] : memref<48x128xf32, #tpu.memory_space<vmem>>, vector<48x128xf32>
    tpu.vector_store %arg18[%c0_93, %c0_94], %174 {strides = array<i32>} : memref<48x128xf32, #tpu.memory_space<vmem>>, vector<48x128xf32>,
    %c0_95 = arith.constant 0 : index
    %c0_96 = arith.constant 0 : index
    %176 = vector.load %arg2[%c0_95, %c0_96] : memref<2x48xf32, #tpu.memory_space<vmem>>, vector<2x48xf32>
    %cst_97 = arith.constant dense<0.000000e+00> : vector<2x128xf32>
    %177 = tpu.matmul %176, %174, %cst_97 {dimension_numbers = #tpu.dot_dimension_numbers<[1], [0], [0], [1], [0, 0, 1, 1], [], []>} : vector<2x48xf32>, vector<48x128xf32>, vector<2x128xf32> -> vector<2x128xf32>
    %c0_98 = arith.constant 0 : index
    %c0_99 = arith.constant 0 : index
    %178 = vector.load %arg12[%c0_98, %c0_99] : memref<128x128xf32, #tpu.memory_space<vmem>>, vector<128x128xf32>
    %cst_100 = arith.constant dense<0.000000e+00> : vector<2x128xf32>
    %179 = tpu.matmul %177, %178, %cst_100 {dimension_numbers = #tpu.dot_dimension_numbers<[1], [0], [0], [1], [0, 0, 1, 1], [], []>} : vector<2x128xf32>, vector<128x128xf32>, vector<2x128xf32> -> vector<2x128xf32>
    %c0_101 = arith.constant 0 : index
    %c0_102 = arith.constant 0 : index
    %180 = vector.load %arg13[%c0_101, %c0_102] : memref<1x128xf32, #tpu.memory_space<vmem>>, vector<1x128xf32>
    %181 = vector.broadcast %180 : vector<1x128xf32> to vector<2x128xf32>
    %182 = arith.addf %179, %181 : vector<2x128xf32>
    %c0_103 = arith.constant 0 : index
    %c0_104 = arith.constant 0 : index
    %183 = vector.load %arg19[%c0_103, %c0_104] : memref<2x128xf32, #tpu.memory_space<vmem>>, vector<2x128xf32>
    tpu.vector_store %arg19[%c0_103, %c0_104], %182 {strides = array<i32>} : memref<2x128xf32, #tpu.memory_space<vmem>>, vector<2x128xf32>,
    %c0_105 = arith.constant 0 : index
    %c0_106 = arith.constant 0 : index
    %184 = vector.load %arg14[%c0_105, %c0_106] : memref<128x128xf32, #tpu.memory_space<vmem>>, vector<128x128xf32>
    %cst_107 = arith.constant dense<0.000000e+00> : vector<2x128xf32>
    %185 = tpu.matmul %182, %184, %cst_107 {dimension_numbers = #tpu.dot_dimension_numbers<[1], [0], [0], [1], [0, 0, 1, 1], [], []>} : vector<2x128xf32>, vector<128x128xf32>, vector<2x128xf32> -> vector<2x128xf32>
    %c0_108 = arith.constant 0 : index
    %c0_109 = arith.constant 0 : index
    %186 = vector.load %arg15[%c0_108, %c0_109] : memref<1x128xf32, #tpu.memory_space<vmem>>, vector<1x128xf32>
    %187 = vector.broadcast %186 : vector<1x128xf32> to vector<2x128xf32>
    %188 = arith.addf %185, %187 : vector<2x128xf32>
    %c0_110 = arith.constant 0 : index
    %c0_111 = arith.constant 0 : index
    %189 = vector.load %arg20[%c0_110, %c0_111] : memref<2x128xf32, #tpu.memory_space<vmem>>, vector<2x128xf32>
    tpu.vector_store %arg20[%c0_110, %c0_111], %188 {strides = array<i32>} : memref<2x128xf32, #tpu.memory_space<vmem>>, vector<2x128xf32>,
    return
  }
}

</mosaic_0001>

<bundles_post_ra>
// kernel: tpu_custom_call.1
= control target key start
LH: loop header
LB: loop body
LE: loop exit
PB: predicated region body
PF: predicated region fallthrough
CT: control target
= control target key end

     0   :  { %s5268_s0 = inlined_call_operand.vmem [shape: bf16[48,128], index: 0, kind: input, shape index: {}]   ;;  %s5269_s1 = inlined_call_operand.vmem [shape: f32[48,1], index: 1, kind: input, shape index: {}]   ;;  %s5270_s2 = inlined_call_operand.vmem [shape: f32[2,48], index: 2, kind: input, shape index: {}]   ;;  %s5271_s3 = inlined_call_operand.hbm [shape: bf16[128,128], index: 3, kind: input, shape index: {}]   ;;  %s5272_s4 = inlined_call_operand.vmem [shape: f32[1,128], index: 4, kind: input, shape index: {}]   ;;  %s5273_s5 = inlined_call_operand.vmem [shape: f32[1,128], index: 5, kind: input, shape index: {}]   ;;  %s5274_s6 = inlined_call_operand.hbm [shape: bf16[5,128,256], index: 6, kind: input, shape index: {}]   ;;  %s5275_s7 = inlined_call_operand.vmem [shape: f32[1,256], index: 7, kind: input, shape index: {}]   ;;  %s5276_s8 = inlined_call_operand.vmem [shape: f32[1,256], index: 8, kind: input, shape index: {}]   ;;  %s5277_s9 = inlined_call_operand.hbm [shape: bf16[3,256,128], index: 9, kind: input, shape index: {}]   ;;  %s5278_s10 = inlined_call_operand.vmem [shape: f32[1,128], index: 10, kind: input, shape index: {}]   ;;  %s5279_s11 = inlined_call_operand.vmem [shape: f32[1,128], index: 11, kind: input, shape index: {}]   ;;  %s5280_s12 = inlined_call_operand.hbm [shape: f32[128,128], index: 12, kind: input, shape index: {}]   ;;  %s5281_s13 = inlined_call_operand.vmem [shape: f32[1,128], index: 13, kind: input, shape index: {}]   ;;  %s5282_s14 = inlined_call_operand.hbm [shape: f32[128,128], index: 14, kind: input, shape index: {}]   ;;  %s5283_s15 = inlined_call_operand.vmem [shape: f32[1,128], index: 15, kind: input, shape index: {}]   ;;  %s5284_s16 = inlined_call_operand.hbm [shape: f32[56,128], index: 16, kind: output, shape index: {0}]   ;;  %s5285_s17 = inlined_call_operand.hbm [shape: f32[56,256], index: 17, kind: output, shape index: {1}]   ;;  %s5286_s18 = inlined_call_operand.hbm [shape: f32[48,128], index: 18, kind: output, shape index: {2}]   ;;  %s5287_s19 = inlined_call_operand.hbm [shape: f32[2,128], index: 19, kind: output, shape index: {3}]   ;;  %s5288_s20 = inlined_call_operand.hbm [shape: f32[2,128], index: 20, kind: output, shape index: {4}]  }
   0x1   :  { %5293 = sst [smem:[#allocation24_spill]] %s5268_s0 }
   0x2   :  { %5294 = sst [smem:[#allocation25_spill]] %s5269_s1 }
   0x3   :  { %5295 = sst [smem:[#allocation26_spill]] %s5270_s2 }
   0x4   :  { %5296 = sst [smem:[#allocation27_spill]] %s5271_s3 }
   0x5   :  { %5297 = sst [smem:[#allocation28_spill]] %s5272_s4 }
   0x6   :  { %26 = vsyncpa [#allocation3], 0 }
   0x7   :  { %27 = vsyncpa [#allocation6], 0 }
   0x8   :  { %28 = vsyncpa [#allocation9], 0 }
   0x9   :  { %29 = vsyncpa [#allocation4], 0 }
   0xa   :  { %30 = vsyncpa [#allocation13], 0  ;;  %s59_s23 = sshll.u32 %s5274_s6, 4  ;;  %s60_s23 = int_to_ptr.hbm [resolvable:$true] %s59_s23 }
   0xb   :  { %31 = vsyncpa [#allocation16], 0  ;;  %s4061_s24 = smov [#allocation5]   ;;  %s93_s26 = sshll.u32 %s5280_s12, 4  ;;  %s94_s26 = int_to_ptr.hbm [resolvable:$true] %s93_s26 }
   0xc   :  { %s61_s2 = sshll.u32 %s4061_s24, 4  ;;  %s4062_s27 = smov 128   ;;  %s62_s2 = int_to_ptr.vmem [resolvable:$true] %s61_s2 }
   0xd   :  { %s4063_s28 = smov 8   ;;  %s4064_s4 = smov [#allocation8]  }
   0xe   :  { %67 = dma.hbm_to_vmem [thread:$0]  %s60_s23, 10240, %s62_s2, [#allocation6], %s4062_s27, %s4062_s27, %s4063_s28  }
   0xf   :  { %s95_s29 = sshll.u32 %s4064_s4, 4  ;;  %s5298_s0 = sld [smem:[#allocation27_spill]]  ;;  %s96_s29 = int_to_ptr.vmem [resolvable:$true] %s95_s29 }
  0x10   :  { %101 = dma.hbm_to_vmem [thread:$0]  %s94_s26, 2048, %s96_s29, [#allocation9], %s4062_s27, %s4062_s27, %s4063_s28  }
  0x11   :  { %s4065_s12 = smov [#allocation2]   ;;  %s76_s23 = sshll.u32 %s5277_s9, 4  ;;  %s77_s23 = int_to_ptr.hbm [resolvable:$true] %s76_s23 }
  0x12   :  { %s44_s1 = sshll.u32 %s4065_s12, 4  ;;  %s4066_s2 = smov 64   ;;  %s45_s1 = int_to_ptr.vmem [resolvable:$true] %s44_s1 }
  0x13   :  { %s4067_s25 = smov 4   ;;  %s4068_s3 = smov [#allocation7]  }
  0x14   :  { %s78_s4 = sshll.u32 %s4068_s3, 4  ;;  %s4069_s26 = smov [#allocation10]   ;;  %s79_s4 = int_to_ptr.vmem [resolvable:$true] %s78_s4 }
  0x15   :  { %s42_s21 = sshll.u32 %s5298_s0, 4  ;;  %s108_s0 = sshll.u32 %s5282_s14, 4  ;;  %s43_s21 = int_to_ptr.hbm [resolvable:$true] %s42_s21  ;;  %s109_s0 = int_to_ptr.hbm [resolvable:$true] %s108_s0 }
  0x16   :  { %50 = dma.hbm_to_vmem [thread:$0]  %s43_s21, 1024, %s45_s1, [#allocation3], %s4066_s2, %s4066_s2, %s4067_s25  }
  0x17   :  { %84 = dma.hbm_to_vmem [thread:$0]  %s77_s23, 6144, %s79_s4, [#allocation6], %s4066_s2, %s4066_s2, %s4067_s25  }
  0x18   :  { %s110_s29 = sshll.u32 %s4069_s26, 4  ;;  %s111_s29 = int_to_ptr.vmem [resolvable:$true] %s110_s29 }
  0x19   :  { %116 = dma.hbm_to_vmem [thread:$0]  %s109_s0, 2048, %s111_s29, [#allocation9], %s4062_s27, %s4062_s27, %s4063_s28  }
  0x1a   :  { %4049 = dma.done.wait [#allocation3], 1024  }
  0x1b   :  { %4050 = vsyncadd [#allocation3], 4294966272 }
  0x1c   :  { %4051 = dma.done.wait [#allocation6], 16384  }
  0x1d   :  { %4052 = vsyncadd [#allocation6], 4294950912 }
  0x1e   :  { %4053 = dma.done.wait [#allocation9], 4096  }
  0x1f   :  { %4054 = vsyncadd [#allocation9], 4294963200  ;;  %v3495_v0 = vld [vmem:[#allocation2 + $0x38] sm:$0xff]  ;;  %v3494_v1 = vld [vmem:[#allocation2 + $0x30] sm:$0xff]  ;;  %v4070_v2 = vmov 0   ;;  %v4071_v3 = vmov 0.0  }
  0x20   :  { %233 = vmatpush.bf16.msra.mxu0 %v3495_v0  ;;  %3650 = vset.pattern.permute.xlu0 %v4070_v2  ;;  %516 = vst [vmem:[#allocation11 + $0x30] sm:$0xff] %v4071_v3  ;;  %s5299_s21 = sld [smem:[#allocation25_spill]]  ;;  %v3493_v6 = vld [vmem:[#allocation2 + $0x28] sm:$0xff]  ;;  %v3492_v10 = vld [vmem:[#allocation2 + $0x20] sm:$0xff]  ;;  %v3491_v11 = vld [vmem:[#allocation2 + $0x18] sm:$0xff]  ;;  %s2818_s25 = sshll.u32 %s5285_s17, 4  ;;  %s2819_s25 = int_to_ptr.hbm [resolvable:$true] %s2818_s25 }
  0x21   :  { %1779 = vst [vmem:[#allocation12 + $0x60] sm:$0xff] %v4071_v3  ;;  %3661 = vset.pattern.permute.xlu1 %v4070_v2  ;;  %3672 = vset.pattern.permute.xlu2 %v4070_v2  ;;  %v3490_v15 = vld [vmem:[#allocation2 + $0x10] sm:$0xff]  ;;  %v3489_v19 = vld [vmem:[#allocation2 + $0x8] sm:$0xff]  ;;  %v3488_v24 = vld [vmem:[#allocation2] sm:$0xff]  ;;  %s5300_s26 = sld [smem:[#allocation24_spill]]  ;;  %s4072_s3 = smov [#allocation12]  }
  0x22   :  { %1780 = vst [vmem:[#allocation12 + $0x68] sm:$0xff] %v4071_v3  ;;  %s5301_s24 = sld [smem:[#allocation28_spill]]  ;;  %s2816_s4 = sshll.u32 %s4072_s3, 4  ;;  %s2817_s4 = int_to_ptr.vmem [resolvable:$true] %s2816_s4 }
  0x23   :  { %s5364_s22 = sld [smem:[#allocation26_spill]]  ;;  %s4073_s30 = smov 256  }
  0x24   :  { %234 = vmatpush.bf16.msra.mxu0 %v3494_v1  ;;  %s4074_s6 = smov 16   ;;  %s4075_s0 = smov [#allocation15]  }
  0x25   :  { %s2805_s17 = sshll.u32 %s5284_s16, 4  ;;  %s4077_s12 = smov [#allocation14]   ;;  %s2806_s17 = int_to_ptr.hbm [resolvable:$true] %s2805_s17 }
  0x26   :  { %v4212_v4 = vld [vmem:[%s5299_s21] sm:$0xff]  ;;  %v4217_v5 = vld [vmem:[%s5299_s21 + $0x8] sm:$0xff]  ;;  %v4230_v12 = vld [vmem:[%s5299_s21 + $0x10] sm:$0xff]  ;;  %s2829_s1 = sshll.u32 %s4077_s12, 4  ;;  %s2830_s1 = int_to_ptr.vmem [resolvable:$true] %s2829_s1 }
  0x27   :  { %vm257_vm0 = vcmp.ge.f32.partialorder %v4212_v4, 4.0  ;;  %vm258_vm1 = vcmp.ge.f32.partialorder %v4217_v5, 4.0  ;;  %vm263_vm2 = vcmp.lt.f32.partialorder %v4212_v4, 18.0  ;;  %vm264_vm3 = vcmp.lt.f32.partialorder %v4217_v5, 18.0  ;;  %v4235_v13 = vld [vmem:[%s5299_s21 + $0x18] sm:$0xff]  ;;  %v143_v14 = vld [vmem:[%s5299_s21 + $0x20] sm:$0xff] }
  0x28   :  { %vm269_vm4 = vmand %vm257_vm0, %vm263_vm2  ;;  %235 = vmatpush.bf16.msra.mxu0 %v3493_v6  ;;  %vm259_vm6 = vcmp.ge.f32.partialorder %v4230_v12, 4.0  ;;  %vm260_vm7 = vcmp.ge.f32.partialorder %v4235_v13, 4.0  ;;  %vm265_vm8 = vcmp.lt.f32.partialorder %v4230_v12, 18.0  ;;  %vm266_vm9 = vcmp.lt.f32.partialorder %v4235_v13, 18.0  ;;  %v144_v16 = vld [vmem:[%s5299_s21 + $0x28] sm:$0xff]  ;;  %v3485_v25 = vld [vmem:[%s5300_s26] sm:$0xff] }
  0x29   :  { %vm270_vm5 = vmand %vm258_vm1, %vm264_vm3  ;;  %v2930_v7 = vsel %vm269_vm4, 1.0, %v4071_v3  ;;  %vm261_vm11 = vcmp.ge.f32.partialorder %v143_v14, 4.0  ;;  %vm262_vm12 = vcmp.ge.f32.partialorder %v144_v16, 4.0  ;;  %vm267_vm13 = vcmp.lt.f32.partialorder %v143_v14, 18.0  ;;  %v3486_v35 = vld [vmem:[%s5300_s26 + $0x8] sm:$0xff]  ;;  %v3487_v36 = vld [vmem:[%s5300_s26 + $0x10] sm:$0xff] }
  0x2a   :  { %v2931_v8 = vsel %vm270_vm5, 1.0, %v4071_v3  ;;  %vm271_vm10 = vmand %vm259_vm6, %vm265_vm8  ;;  %vm268_vm14 = vcmp.lt.f32.partialorder %v144_v16, 18.0  ;;  %vm1322_vm2 = vcmp.lt.f32.partialorder %v4212_v4, 16.0  ;;  %vm1323_vm3 = vcmp.lt.f32.partialorder %v4217_v5, 16.0  ;;  %s2843_s26 = sshll.u32 %s4075_s0, 4  ;;  %s2844_s26 = int_to_ptr.vmem [resolvable:$true] %s2843_s26 }
  0x2b   :  { %v3651_v9 = vpack.i.bf16 %v2931_v8, %v2930_v7  ;;  %vm272_vm15 = vmand %vm260_vm7, %vm266_vm9  ;;  %v2932_v17 = vsel %vm271_vm10, 1.0, %v4071_v3  ;;  %vm2445_vm4 = vcmp.ge.f32.partialorder %v4212_v4, 0.0  ;;  %vm2446_vm5 = vcmp.ge.f32.partialorder %v4217_v5, 0.0 }
  0x2c   :  { %236 = vmatpush.bf16.msra.mxu0 %v3492_v10  ;;  %v2933_v18 = vsel %vm272_vm15, 1.0, %v4071_v3  ;;  %vm273_vm0 = vmand %vm261_vm11, %vm267_vm13  ;;  %vm1316_vm8 = vcmp.ge.f32.partialorder %v4212_v4, 2.0  ;;  %vm1317_vm9 = vcmp.ge.f32.partialorder %v4217_v5, 2.0  ;;  %vm5292_vm10 = vcmp.lt.f32.partialorder %v4230_v12, 16.0 }
  0x2d   :  { %3652 = vperm.xlu0 %3650, %v3651_v9   ;;  %v3656_v20 = vpack.i.bf16 %v2933_v18, %v2932_v17  ;;  %vm274_vm1 = vmand %vm262_vm12, %vm268_vm14  ;;  %v2934_v21 = vsel %vm273_vm0, 1.0, %v4071_v3  ;;  %vm5291_vm12 = vcmp.lt.f32.partialorder %v4235_v13, 16.0  ;;  %vm2447_vm13 = vcmp.ge.f32.partialorder %v4230_v12, 0.0 }
  0x2e   :  { %v2935_v22 = vsel %vm274_vm1, 1.0, %v4071_v3  ;;  %vm2451_vm6 = vmand %vm2445_vm4, %vm1322_vm2  ;;  %vm2448_vm14 = vcmp.ge.f32.partialorder %v4235_v13, 0.0 }
  0x2f   :  { %v3662_v23 = vpack.i.bf16 %v2935_v22, %v2934_v21  ;;  %vm2452_vm7 = vmand %vm2446_vm5, %vm1323_vm3  ;;  %v3472_v26 = vsel %vm2451_vm6, 1.0, %v4071_v3 }
  0x30   :  { %237 = vmatpush.bf16.msra.mxu0 %v3491_v11  ;;  %v3473_v27 = vsel %vm2452_vm7, 1.0, %v4071_v3  ;;  %vm1328_vm11 = vmand %vm1316_vm8, %vm1322_vm2 }
  0x31   :  { %3663 = vperm.xlu1 %3661, %v3662_v23   ;;  %v3683_v28 = vpack.i.bf16 %v3473_v27, %v3472_v26  ;;  %vm1329_vm15 = vmand %vm1317_vm9, %vm1323_vm3  ;;  %v3262_v29 = vsel %vm1328_vm11, 1.0, %v4071_v3 }
  0x32   :  { %v3263_v30 = vsel %vm1329_vm15, 1.0, %v4071_v3  ;;  %vm2453_vm0 = vmand %vm2447_vm13, %vm5292_vm10 }
  0x33   :  { %v3667_v31 = vpack.i.bf16 %v3263_v30, %v3262_v29  ;;  %vm2454_vm1 = vmand %vm2448_vm14, %vm5291_vm12  ;;  %v3474_v32 = vsel %vm2453_vm0, 1.0, %v4071_v3  ;;  %v3064_v29 = vld [vmem:[#allocation5 + $0x70] sm:$0xf]  ;;  %v3511_v30 = vld [vmem:[#allocation5 + $0x74] sm:$0xf0] }
  0x34   :  { %238 = vmatpush.bf16.msra.mxu0 %v3490_v15  ;;  %v3475_v33 = vsel %vm2454_vm1, 1.0, %v4071_v3 }
  0x35   :  { %3657 = vperm.xlu0 %3650, %v3656_v20   ;;  %v3688_v34 = vpack.i.bf16 %v3475_v33, %v3474_v32  ;;  %v3510_v32 = vld [vmem:[#allocation5 + $0x74] sm:$0xf]  ;;  %v3066_v33 = vld [vmem:[#allocation5 + $0x78] sm:$0xf0] }
  0x38   :  { %239 = vmatpush.bf16.msra.mxu0 %v3489_v19 }
  0x39   :  { %3668 = vperm.xlu1 %3661, %v3667_v31   ;;  %v3065_v31 = vor.u32 %v3511_v30, %v3064_v29  ;;  %v3032_v29 = vld [vmem:[#allocation5 + $0x30] sm:$0xf]  ;;  %v356_v30 = vld [vmem:[%s5301_s24] sm:$0x1]  ;;  %s4078_s24 = smov [#allocation17]  }
  0x3a   :  { %s2854_s23 = sshll.u32 %s4078_s24, 4  ;;  %s2855_s23 = int_to_ptr.vmem [resolvable:$true] %s2854_s23 }
  0x3b   :  { %770 = vmatpush.bf16.msra.mxu3 %v3065_v31 }
  0x3c   :  { %240 = vmatpush.bf16.msra.mxu0 %v3488_v24 }
  0x3d   :  { %3684 = vperm.xlu0 %3650, %v3683_v28  }
  0x3f   :  { %241 = vmatmul.bf16.vlgmr.msra.gmra.mxu0 %v3485_v25 }
  0x41   :  { %3689 = vperm.xlu1 %3661, %v3688_v34  }
  0x4f   :  { %246 = vmatmul.bf16.gmra.mxu0 %v3486_v35  ;;  %v3069_v35 = vor.u32 %v3510_v32, %v3066_v33 }
  0x51   :  { %794 = vmatpush.bf16.msrb.mxu0 %v3069_v35  ;;  %v3502_v35 = vld [vmem:[#allocation5 + $0x34] sm:$0xf] }
  0x5f   :  { %251 = vmatmul.bf16.gmra.mxu0 %v3487_v36  ;;  %v3056_v36 = vld [vmem:[#allocation5 + $0x60] sm:$0xf] }
  0x9f   :  { %v4288_v39 = vpop.permute.xlu0 %3652 }
  0xa0   :  { %v3655_v43 = vunpack.i.h.bf16 %v4288_v39  ;;  %v3654_v44 = vunpack.i.l.bf16 %v4288_v39 }
  0xa3   :  { %v4303_v48 = vpop.permute.xlu1 %3663 }
  0xa4   :  { %v3665_v51 = vunpack.i.l.bf16 %v4303_v48  ;;  %v3666_v63 = vunpack.i.h.bf16 %v4303_v48  ;;  %v3096_v48 = vld [vmem:[#allocation5 + $0x130] sm:$0xf] }
  0xa7   :  { %v4292_v41 = vpop.permute.xlu0 %3657 }
  0xa8   :  { %v3659_v45 = vunpack.i.l.bf16 %v4292_v41  ;;  %v3660_v47 = vunpack.i.h.bf16 %v4292_v41 }
  0xbc   :  { %v4284_v37 = vpop.f32.mrf.mxu0 }
  0xbd   :  { %v317_v49 = vmul.f32 %v3654_v44, %v4284_v37 }
  0xbf   :  { %v334_v55 = vmul.f32 %v317_v49, %v4284_v37 }
  0xc4   :  { %v4286_v38 = vpop.f32.mrf.mxu0 }
  0xc5   :  { %v318_v46 = vmul.f32 %v3655_v43, %v4286_v38 }
  0xc7   :  { %v335_v53 = vmul.f32 %v318_v46, %v4286_v38  ;;  %v323_v56 = vadd.f32 %v318_v46, %v317_v49  ;;  %v3509_v46 = vld [vmem:[#allocation5 + $0x64] sm:$0xf0]  ;;  %v3508_v49 = vld [vmem:[#allocation5 + $0x64] sm:$0xf] }
  0xc9   :  { %v340_v60 = vadd.f32 %v335_v53, %v334_v55  ;;  %v3058_v53 = vld [vmem:[#allocation5 + $0x68] sm:$0xf0]  ;;  %v3000_v55 = vld [vmem:[#allocation5 + $0xf0] sm:$0xf] }
  0xcc   :  { %v4290_v40 = vpop.f32.mrf.mxu0 }
  0xcd   :  { %v319_v50 = vmul.f32 %v3659_v45, %v4290_v40 }
  0xcf   :  { %v336_v57 = vmul.f32 %v319_v50, %v4290_v40  ;;  %v324_v59 = vadd.f32 %v323_v56, %v319_v50  ;;  %v3057_v50 = vor.u32 %v3509_v46, %v3056_v36  ;;  %v3527_v56 = vld [vmem:[#allocation5 + $0xf4] sm:$0xf0]  ;;  %v3034_v46 = vld [vmem:[#allocation5 + $0x38] sm:$0xf0] }
  0xd1   :  { %v341_v62 = vadd.f32 %v340_v60, %v336_v57  ;;  %771 = vmatpush.bf16.msra.mxu3 %v3057_v50  ;;  %v3526_v57 = vld [vmem:[#allocation5 + $0xf4] sm:$0xf]  ;;  %v3048_v60 = vld [vmem:[#allocation5 + $0x50] sm:$0xf]  ;;  %v3521_v50 = vld [vmem:[#allocation5 + $0xc4] sm:$0xf0] }
  0xd4   :  { %v4294_v42 = vpop.f32.mrf.mxu0 }
  0xd5   :  { %v320_v54 = vmul.f32 %v3660_v47, %v4294_v42 }
  0xd7   :  { %v337_v61 = vmul.f32 %v320_v54, %v4294_v42  ;;  %v325_v0 = vadd.f32 %v324_v59, %v320_v54  ;;  %v3061_v54 = vor.u32 %v3508_v49, %v3058_v53  ;;  %v3002_v59 = vld [vmem:[#allocation5 + $0xf8] sm:$0xf0]  ;;  %v2976_v49 = vld [vmem:[#allocation5 + $0xc0] sm:$0xf] }
  0xd9   :  { %v342_v4 = vadd.f32 %v341_v62, %v337_v61  ;;  %795 = vmatpush.bf16.msrb.mxu0 %v3061_v54  ;;  %v3507_v61 = vld [vmem:[#allocation5 + $0x54] sm:$0xf0]  ;;  %v3037_v54 = vor.u32 %v3502_v35, %v3034_v46 }
  0xdc   :  { %v4312_v52 = vpop.f32.mrf.mxu0 }
  0xdd   :  { %v321_v58 = vmul.f32 %v3665_v51, %v4312_v52 }
  0xdf   :  { %v338_v1 = vmul.f32 %v321_v58, %v4312_v52  ;;  %v326_v3 = vadd.f32 %v325_v0, %v321_v58  ;;  %v3001_v58 = vor.u32 %v3527_v56, %v3000_v55  ;;  %v3005_v0 = vor.u32 %v3526_v57, %v3002_v59  ;;  %v3520_v56 = vld [vmem:[#allocation5 + $0xc4] sm:$0xf]  ;;  %v2978_v57 = vld [vmem:[#allocation5 + $0xc8] sm:$0xf0] }
  0xe0   :  { %v2977_v55 = vor.u32 %v3521_v50, %v2976_v49  ;;  %v2981_v59 = vor.u32 %v3520_v56, %v2978_v57 }
  0xe1   :  { %v343_v6 = vadd.f32 %v342_v4, %v338_v1  ;;  %v3049_v1 = vor.u32 %v3507_v61, %v3048_v60  ;;  %v3050_v4 = vld [vmem:[#allocation5 + $0x58] sm:$0xf0]  ;;  %642 = vmatpush.bf16.msra.mxu1 %v3001_v58  ;;  %666 = vmatpush.bf16.msra.mxu2 %v3005_v0  ;;  %v3024_v58 = vld [vmem:[#allocation5 + $0x20] sm:$0xf]  ;;  %v3501_v60 = vld [vmem:[#allocation5 + $0x24] sm:$0xf0] }
  0xe2   :  { %v3500_v61 = vld [vmem:[#allocation5 + $0x24] sm:$0xf]  ;;  %v3026_v0 = vld [vmem:[#allocation5 + $0x28] sm:$0xf0] }
  0xe3   :  { %772 = vmatpush.bf16.msra.mxu3 %v3049_v1 }
  0xe4   :  { %v4326_v2 = vpop.f32.mrf.mxu0 }
  0xe5   :  { %v322_v5 = vmul.f32 %v3666_v63, %v4326_v2 }
  0xe7   :  { %v327_v7 = vadd.f32 %v326_v3, %v322_v5  ;;  %v339_v8 = vmul.f32 %v322_v5, %v4326_v2  ;;  %v3506_v3 = vld [vmem:[#allocation5 + $0x54] sm:$0xf] }
  0xe9   :  { %v328_v9 = vrot.slane %v327_v7, 4  ;;  %v344_v10 = vadd.f32 %v343_v6, %v339_v8  ;;  %v3053_v6 = vor.u32 %v3506_v3, %v3050_v4  ;;  %v3525_v8 = vld [vmem:[#allocation5 + $0xe4] sm:$0xf0]  ;;  %v369_v3 = vld [vmem:[%s5273_s5] sm:$0x1]  ;;  %v3025_v4 = vor.u32 %v3501_v60, %v3024_v58 }
  0xeb   :  { %v329_v11 = vadd.f32 %v328_v9, %v327_v7  ;;  %v345_v14 = vrot.slane %v344_v10, 4  ;;  %v2992_v7 = vld [vmem:[#allocation5 + $0xe0] sm:$0xf]  ;;  %796 = vmatpush.bf16.msrb.mxu0 %v3053_v6  ;;  %v2968_v6 = vld [vmem:[#allocation5 + $0xb0] sm:$0xf] }
  0xed   :  { %v330_v15 = vrot.slane %v329_v11, 2  ;;  %v346_v16 = vadd.f32 %v345_v14, %v344_v10  ;;  %v2993_v10 = vor.u32 %v3525_v8, %v2992_v7  ;;  %v2994_v14 = vld [vmem:[#allocation5 + $0xe8] sm:$0xf0]  ;;  %v3519_v7 = vld [vmem:[#allocation5 + $0xb4] sm:$0xf0] }
  0xee   :  { %v3518_v8 = vld [vmem:[#allocation5 + $0xb4] sm:$0xf] }
  0xef   :  { %v331_v17 = vadd.f32 %v330_v15, %v329_v11  ;;  %v347_v18 = vrot.slane %v346_v16, 2  ;;  %v3524_v11 = vld [vmem:[#allocation5 + $0xe4] sm:$0xf]  ;;  %v3040_v15 = vld [vmem:[#allocation5 + $0x40] sm:$0xf]  ;;  %643 = vmatpush.bf16.msra.mxu1 %v2993_v10 }
  0xf0   :  { %v2970_v10 = vld [vmem:[#allocation5 + $0xb8] sm:$0xf0] }
  0xf1   :  { %v332_v19 = vrot.slane %v331_v17, 1  ;;  %v348_v20 = vadd.f32 %v347_v18, %v346_v16  ;;  %v2997_v16 = vor.u32 %v3524_v11, %v2994_v14  ;;  %v3504_v18 = vld [vmem:[#allocation5 + $0x44] sm:$0xf]  ;;  %v3016_v11 = vld [vmem:[#allocation5 + $0x10] sm:$0xf] }
  0xf2   :  { %v3499_v14 = vld [vmem:[#allocation5 + $0x14] sm:$0xf0] }
  0xf3   :  { %v333_v21 = vadd.f32 %v332_v19, %v331_v17  ;;  %v349_v22 = vrot.slane %v348_v20, 1  ;;  %v3505_v17 = vld [vmem:[#allocation5 + $0x44] sm:$0xf0]  ;;  %v3042_v19 = vld [vmem:[#allocation5 + $0x48] sm:$0xf0]  ;;  %667 = vmatpush.bf16.msra.mxu2 %v2997_v16 }
  0xf4   :  { %v3498_v16 = vld [vmem:[#allocation5 + $0x14] sm:$0xf] }
  0xf5   :  { %v350_v23 = vadd.f32 %v349_v22, %v348_v20  ;;  %v4332_v24 = vmul.f32 0.035714287, %v333_v21  ;;  %v3041_v21 = vor.u32 %v3505_v17, %v3040_v15  ;;  %v3045_v22 = vor.u32 %v3504_v18, %v3042_v19  ;;  %v3018_v17 = vld [vmem:[#allocation5 + $0x18] sm:$0xf0] }
  0xf6   :  { %v2969_v15 = vor.u32 %v3519_v7, %v2968_v6  ;;  %v2944_v6 = vld [vmem:[#allocation5 + $0x80] sm:$0xf]  ;;  %v3513_v7 = vld [vmem:[#allocation5 + $0x84] sm:$0xf0] }
  0xf7   :  { %v352_v25 = vmul.f32 0.035714287, %v350_v23  ;;  %v353_v26 = vmul.f32 %v4332_v24, %v4332_v24  ;;  %v2984_v23 = vld [vmem:[#allocation5 + $0xd0] sm:$0xf]  ;;  %773 = vmatpush.bf16.msra.mxu3 %v3041_v21  ;;  %797 = vmatpush.bf16.msrb.mxu0 %v3045_v22  ;;  %v3517_v21 = vld [vmem:[#allocation5 + $0xa4] sm:$0xf0] }
  0xf8   :  { %v3516_v22 = vld [vmem:[#allocation5 + $0xa4] sm:$0xf] }
  0xf9   :  { %v354_v27 = vsub.f32 %v352_v25, %v353_v26  ;;  %v3523_v25 = vld [vmem:[#allocation5 + $0xd4] sm:$0xf0] }
  0xfa   :  { %v2985_v26 = vor.u32 %v3523_v25, %v2984_v23  ;;  %v3017_v23 = vor.u32 %v3499_v14, %v3016_v11  ;;  %v3021_v25 = vor.u32 %v3498_v16, %v3018_v17 }
  0xfb   :  { %v355_v28 = vmax.f32 %v354_v27, 0.0  ;;  %v3522_v27 = vld [vmem:[#allocation5 + $0xd4] sm:$0xf]  ;;  %798 = vmatpush.bf16.msrb.mxu0 %v3037_v54 }
  0xfc   :  { %644 = vmatpush.bf16.msra.mxu1 %v2985_v26  ;;  %v2962_v26 = vld [vmem:[#allocation5 + $0xa8] sm:$0xf0] }
  0xfd   :  { %v357_v34 = vadd.f32 1e-05, %v355_v28  ;;  %v2986_v28 = vld [vmem:[#allocation5 + $0xd8] sm:$0xf0] }
  0xfe   :  { %v2989_v33 = vor.u32 %v3522_v27, %v2986_v28  ;;  %v3008_v27 = vld [vmem:[#allocation5] sm:$0xf]  ;;  %v3497_v28 = vld [vmem:[#allocation5 + $0x4] sm:$0xf0] }
  0xff   :  { %3700 = vrsqrt.f32 %v357_v34  ;;  %vm364_vm3 = vweird.f32 %v357_v34  ;;  %v3009_v46 = vor.u32 %v3497_v28, %v3008_v27 }
 0x100   :  { %668 = vmatpush.bf16.msra.mxu2 %v2989_v33  ;;  %645 = vmatpush.bf16.msra.mxu1 %v2977_v55 }
 0x104   :  { %669 = vmatpush.bf16.msra.mxu2 %v2981_v59  ;;  %646 = vmatpush.bf16.msra.mxu1 %v2969_v15 }
 0x105   :  { %v4336_v62 = vpop.eup %3700 }
 0x106   :  { %v359_v5 = vmul.f32 %v4336_v62, %v357_v34  ;;  %vm365_vm2 = vweird.f32 %v4336_v62  ;;  %v3503_v34 = vld [vmem:[#allocation5 + $0x34] sm:$0xf0] }
 0x107   :  { %vm4346_vm4 = vmor %vm364_vm3, %vm365_vm2  ;;  %v3033_v36 = vor.u32 %v3503_v34, %v3032_v29 }
 0x108   :  { %v360_v9 = vmul.f32 %v4336_v62, %v359_v5  ;;  %v3029_v5 = vor.u32 %v3500_v61, %v3026_v0  ;;  %v2952_v0 = vld [vmem:[#allocation5 + $0x90] sm:$0xf] }
 0x109   :  { %774 = vmatpush.bf16.msra.mxu3 %v3033_v36  ;;  %v2965_v36 = vor.u32 %v3516_v22, %v2962_v26  ;;  %v3542_v22 = vld [vmem:[#allocation5 + $0x174] sm:$0xf] }
 0x10a   :  { %v361_v20 = vmul.f32 0.5, %v360_v9  ;;  %799 = vmatpush.bf16.msrb.mxu0 %v3029_v5 }
 0x10c   :  { %v362_v31 = vsub.f32 1.5, %v361_v20  ;;  %v2973_v20 = vor.u32 %v3518_v8, %v2970_v10  ;;  %v3512_v8 = vld [vmem:[#allocation5 + $0x84] sm:$0xf]  ;;  %v2946_v10 = vld [vmem:[#allocation5 + $0x88] sm:$0xf0] }
 0x10d   :  { %775 = vmatpush.bf16.msra.mxu3 %v3025_v4  ;;  %v2949_v11 = vor.u32 %v3512_v8, %v2946_v10  ;;  %v3540_v8 = vld [vmem:[#allocation5 + $0x164] sm:$0xf] }
 0x10e   :  { %v363_v53 = vmul.f32 %v4336_v62, %v362_v31  ;;  %v3010_v31 = vld [vmem:[#allocation5 + $0x8] sm:$0xf0]  ;;  %670 = vmatpush.bf16.msra.mxu2 %v2973_v20  ;;  %800 = vmatpush.bf16.msrb.mxu0 %v3021_v25 }
 0x110   :  { %v367_v1 = vsel %vm4346_vm4, %v4336_v62, %v363_v53  ;;  %v2960_v62 = vld [vmem:[#allocation5 + $0xa0] sm:$0xf] }
 0x111   :  { %v368_v9 = vmul.f32 %v367_v1, %v356_v30  ;;  %v3496_v30 = vld [vmem:[#allocation5 + $0x4] sm:$0xf]  ;;  %v2961_v34 = vor.u32 %v3517_v21, %v2960_v62  ;;  %776 = vmatpush.bf16.msra.mxu3 %v3017_v23  ;;  %v3514_v1 = vld [vmem:[#allocation5 + $0x94] sm:$0xf]  ;;  %v3130_v23 = vld [vmem:[#allocation5 + $0x178] sm:$0xf0] }
 0x112   :  { %v3013_v50 = vor.u32 %v3496_v30, %v3010_v31  ;;  %671 = vmatpush.bf16.msra.mxu2 %v2965_v36  ;;  %v3133_v27 = vor.u32 %v3542_v22, %v3130_v23 }
 0x113   :  { %v370_v18 = vmul.f32 %v368_v9, %v4332_v24  ;;  %v373_v19 = vperm.slane %v368_v9, 0  ;;  %647 = vmatpush.bf16.msra.mxu1 %v2961_v34  ;;  %v2945_v9 = vor.u32 %v3513_v7, %v2944_v6 }
 0x114   :  { %801 = vmatpush.bf16.msrb.mxu0 %v3013_v50 }
 0x115   :  { %v371_v29 = vsub.f32 %v369_v3, %v370_v18  ;;  %v377_v32 = vmul.f32 %v373_v19, %v4290_v40  ;;  %v379_v33 = vmul.f32 %v373_v19, %v4312_v52  ;;  %v380_v24 = vmul.f32 %v373_v19, %v4326_v2  ;;  %777 = vmatpush.bf16.msra.mxu3 %v3009_v46  ;;  %v2954_v3 = vld [vmem:[#allocation5 + $0x98] sm:$0xf0] }
 0x116   :  { %v375_v49 = vmul.f32 %v373_v19, %v4284_v37  ;;  %v376_v53 = vmul.f32 %v373_v19, %v4286_v38  ;;  %v378_v54 = vmul.f32 %v373_v19, %v4294_v42  ;;  %v3515_v38 = vld [vmem:[#allocation5 + $0x94] sm:$0xf0]  ;;  %v2957_v5 = vor.u32 %v3514_v1, %v2954_v3  ;;  %v3558_v1 = vld [vmem:[#allocation5 + $0x1f4] sm:$0xf] }
 0x117   :  { %v382_v35 = vperm.slane %v371_v29, 0  ;;  %v2953_v42 = vor.u32 %v3515_v38, %v2952_v0 }
 0x118   :  { %672 = vmatpush.bf16.msra.mxu2 %v2957_v5 }
 0x119   :  { %v386_v40 = vadd.f32 %v382_v35, %v377_v32  ;;  %v388_v55 = vadd.f32 %v382_v35, %v379_v33  ;;  %v389_v52 = vadd.f32 %v382_v35, %v380_v24  ;;  %v384_v56 = vadd.f32 %v382_v35, %v375_v49  ;;  %648 = vmatpush.bf16.msra.mxu1 %v2953_v42  ;;  %v3194_v42 = vld [vmem:[#allocation5 + $0x1f8] sm:$0xf0] }
 0x11a   :  { %v385_v2 = vadd.f32 %v382_v35, %v376_v53  ;;  %v387_v57 = vadd.f32 %v382_v35, %v378_v54 }
 0x11b   :  { %v2938_v58 = vmul.f32 -1.442695, %v386_v40  ;;  %v2940_v59 = vmul.f32 -1.442695, %v388_v55  ;;  %v2941_v60 = vmul.f32 -1.442695, %v389_v52 }
 0x11c   :  { %v2936_v37 = vmul.f32 -1.442695, %v384_v56  ;;  %v2937_v61 = vmul.f32 -1.442695, %v385_v2  ;;  %v2939_v4 = vmul.f32 -1.442695, %v387_v57  ;;  %673 = vmatpush.bf16.msra.mxu2 %v2949_v11 }
 0x11d   :  { %3702 = vpow2.f32 %v2938_v58  ;;  %649 = vmatpush.bf16.msra.mxu1 %v2945_v9  ;;  %v3192_v58 = vld [vmem:[#allocation5 + $0x1f0] sm:$0xf]  ;;  %v3122_v9 = vld [vmem:[#allocation5 + $0x168] sm:$0xf0] }
 0x11e   :  { %3704 = vpow2.f32 %v2940_v59  ;;  %v3559_v59 = vld [vmem:[#allocation5 + $0x1f4] sm:$0xf0] }
 0x11f   :  { %3706 = vpow2.f32 %v2941_v60  ;;  %v3193_v7 = vor.u32 %v3559_v59, %v3192_v58 }
 0x120   :  { %3708 = vpow2.f32 %v2936_v37  ;;  %948 = vmatpush.bf16.msrb.mxu2 %v3133_v27  ;;  %v3168_v27 = vld [vmem:[#allocation5 + $0x1c0] sm:$0xf] }
 0x121   :  { %3710 = vpow2.f32 %v2937_v61  ;;  %1090 = vmatpush.bf16.msrb.mxu3 %v3193_v7  ;;  %v3114_v7 = vld [vmem:[#allocation5 + $0x158] sm:$0xf0] }
 0x122   :  { %3712 = vpow2.f32 %v2939_v4 }
 0x123   :  { %v3703_v14 = vpop.eup %3702 }
 0x124   :  { %v3705_v15 = vpop.eup %3704  ;;  %v4364_v16 = vadd.f32 1.0, %v3703_v14  ;;  %v3197_v14 = vor.u32 %v3558_v1, %v3194_v42 }
 0x125   :  { %v3707_v17 = vpop.eup %3706  ;;  %v4366_v62 = vadd.f32 1.0, %v3705_v15  ;;  %v3125_v15 = vor.u32 %v3540_v8, %v3122_v9  ;;  %v3176_v8 = vld [vmem:[#allocation5 + $0x1d0] sm:$0xf]  ;;  %v3555_v9 = vld [vmem:[#allocation5 + $0x1d4] sm:$0xf0] }
 0x126   :  { %v3709_v18 = vpop.eup %3708  ;;  %v4368_v19 = vadd.f32 1.0, %v3707_v17  ;;  %3714 = vrcp.f32 %v4364_v16  ;;  %v453_v29 = vand.u32 2147483647, %v4364_v16  ;;  %v455_v30 = vand.u32 2147483648, %v4364_v16  ;;  %v3128_v17 = vld [vmem:[#allocation5 + $0x170] sm:$0xf]  ;;  %1114 = vmatpush.bf16.msra.mxu0 %v3197_v14 }
 0x127   :  { %v3711_v20 = vpop.eup %3710  ;;  %3716 = vrcp.f32 %v4366_v62  ;;  %v4372_v21 = vadd.f32 1.0, %v3709_v18  ;;  %vm449_vm5 = vweird.f32 %v4364_v16  ;;  %vm479_vm6 = vweird.f32 %v4366_v62  ;;  %v3543_v18 = vld [vmem:[#allocation5 + $0x174] sm:$0xf0]  ;;  %949 = vmatpush.bf16.msrb.mxu2 %v3125_v15 }
 0x128   :  { %v3713_v25 = vpop.eup %3712  ;;  %3718 = vrcp.f32 %v4368_v19  ;;  %v4375_v26 = vadd.f32 1.0, %v3711_v20  ;;  %vm4399_vm9 = vcmp.eq.f32.partialorder %v453_v29, 8.507059e+37  ;;  %v4403_v50 = vor.u32 1.1754944e-38, %v455_v30  ;;  %v3184_v29 = vld [vmem:[#allocation5 + $0x1e0] sm:$0xf] }
 0x129   :  { %3720 = vrcp.f32 %v4372_v21  ;;  %v425_v28 = vand.u32 2147483648, %v4372_v21  ;;  %v4384_v32 = vadd.f32 1.0, %v3713_v25  ;;  %vm419_vm7 = vweird.f32 %v4372_v21  ;;  %v3557_v30 = vld [vmem:[#allocation5 + $0x1e4] sm:$0xf0] }
 0x12a   :  { %3722 = vrcp.f32 %v4375_v26  ;;  %v440_v31 = vand.u32 2147483648, %v4375_v26  ;;  %v423_v24 = vand.u32 2147483647, %v4372_v21  ;;  %v438_v35 = vand.u32 2147483647, %v4375_v26 }
 0x12b   :  { %v4391_v34 = vor.u32 1.1754944e-38, %v425_v28  ;;  %vm434_vm8 = vweird.f32 %v4375_v26  ;;  %3724 = vrcp.f32 %v4384_v32  ;;  %v483_v53 = vand.u32 2147483647, %v4366_v62 }
 0x12c   :  { %v4387_v33 = vpop.eup %3714  ;;  %v4409_v40 = vor.u32 1.1754944e-38, %v440_v31  ;;  %v468_v55 = vand.u32 2147483647, %v4384_v32  ;;  %v470_v52 = vand.u32 2147483648, %v4384_v32  ;;  %v485_v60 = vand.u32 2147483648, %v4366_v62 }
 0x12d   :  { %v4394_v36 = vpop.eup %3716  ;;  %v445_v46 = vmul.f32 %v4387_v33, %v4364_v16  ;;  %vm450_vm11 = vweird.f32 %v4387_v33  ;;  %vm4425_vm15 = vcmp.eq.f32.partialorder %v423_v24, 8.507059e+37  ;;  %vm464_vm0 = vweird.f32 %v4384_v32 }
 0x12e   :  { %v4407_v54 = vpop.eup %3718  ;;  %v475_v56 = vmul.f32 %v4394_v36, %v4366_v62  ;;  %vm480_vm13 = vweird.f32 %v4394_v36  ;;  %v4430_v38 = vor.u32 1.1754944e-38, %v470_v52  ;;  %vm4437_vm2 = vcmp.eq.f32.partialorder %v438_v35, 8.507059e+37  ;;  %vm4453_vm4 = vmor %vm449_vm5, %vm450_vm11  ;;  %v3186_v52 = vld [vmem:[#allocation5 + $0x1e8] sm:$0xf0] }
 0x12f   :  { %v4415_v2 = vpop.eup %3720  ;;  %v446_v57 = vsub.f32 1.0, %v445_v46  ;;  %v490_v3 = vmul.f32 %v4407_v54, %v4368_v19  ;;  %vm4442_vm3 = vcmp.eq.f32.partialorder %v483_v53, 8.507059e+37  ;;  %v3129_v28 = vor.u32 %v3543_v18, %v3128_v17  ;;  %v3556_v53 = vld [vmem:[#allocation5 + $0x1e4] sm:$0xf]  ;;  %vm4469_vm5 = vmor %vm479_vm6, %vm480_vm13 }
 0x130   :  { %v4420_v37 = vpop.eup %3722  ;;  %v415_v61 = vmul.f32 %v4415_v2, %v4372_v21  ;;  %vm420_vm14 = vweird.f32 %v4415_v2  ;;  %v476_v20 = vsub.f32 1.0, %v475_v56  ;;  %v486_v31 = vor.u32 1.1754944e-38, %v485_v60  ;;  %v3539_v56 = vld [vmem:[#allocation5 + $0x154] sm:$0xf0]  ;;  %v3104_v21 = vld [vmem:[#allocation5 + $0x140] sm:$0xf] }
 0x131   :  { %v430_v4 = vmul.f32 %v4420_v37, %v4375_v26  ;;  %vm435_vm1 = vweird.f32 %v4420_v37  ;;  %v447_v6 = vmul.f32 %v4387_v33, %v446_v57  ;;  %v4446_v22 = vpop.eup %3724  ;;  %vm4461_vm10 = vcmp.eq.f32.partialorder %v468_v55, 8.507059e+37  ;;  %vm4477_vm11 = vmor %vm419_vm7, %vm420_vm14  ;;  %924 = vmatpush.bf16.msrb.mxu1 %v3129_v28  ;;  %v3538_v26 = vld [vmem:[#allocation5 + $0x154] sm:$0xf]  ;;  %v3553_v28 = vld [vmem:[#allocation5 + $0x1c4] sm:$0xf0] }
 0x132   :  { %v416_v11 = vsub.f32 1.0, %v415_v61  ;;  %v460_v35 = vmul.f32 %v4446_v22, %v4384_v32  ;;  %vm465_vm12 = vweird.f32 %v4446_v22  ;;  %v3185_v16 = vor.u32 %v3557_v30, %v3184_v29  ;;  %vm4492_vm7 = vmor %vm434_vm8, %vm435_vm1  ;;  %v3552_v29 = vld [vmem:[#allocation5 + $0x1c4] sm:$0xf]  ;;  %v3160_v55 = vld [vmem:[#allocation5 + $0x1b0] sm:$0xf] }
 0x133   :  { %v431_v23 = vsub.f32 1.0, %v430_v4  ;;  %v448_v25 = vadd.f32 %v4387_v33, %v447_v6  ;;  %v3189_v62 = vor.u32 %v3556_v53, %v3186_v52  ;;  %v477_v59 = vmul.f32 %v4394_v36, %v476_v20  ;;  %v3541_v20 = vld [vmem:[#allocation5 + $0x164] sm:$0xf0] }
 0x134   :  { %v417_v24 = vmul.f32 %v4415_v2, %v416_v11  ;;  %vm494_vm6 = vweird.f32 %v4368_v19  ;;  %v461_v61 = vsub.f32 1.0, %v460_v35  ;;  %v491_v1 = vsub.f32 1.0, %v490_v3  ;;  %1091 = vmatpush.bf16.msrb.mxu3 %v3185_v16  ;;  %v3554_v11 = vld [vmem:[#allocation5 + $0x1d4] sm:$0xf]  ;;  %v3106_v35 = vld [vmem:[#allocation5 + $0x148] sm:$0xf0] }
 0x135   :  { %v432_v57 = vmul.f32 %v4420_v37, %v431_v23  ;;  %v452_v58 = vsel %vm4453_vm4, %v4387_v33, %v448_v25  ;;  %v478_v6 = vadd.f32 %v4394_v36, %v477_v59  ;;  %vm495_vm8 = vweird.f32 %v4407_v54  ;;  %1115 = vmatpush.bf16.msra.mxu0 %v3189_v62  ;;  %v3551_v62 = vld [vmem:[#allocation5 + $0x1b4] sm:$0xf0] }
 0x136   :  { %v418_v60 = vadd.f32 %v4415_v2, %v417_v24  ;;  %v457_v33 = vsel %vm4399_vm9, %v4403_v50, %v452_v58  ;;  %v462_v50 = vmul.f32 %v4446_v22, %v461_v61  ;;  %v3117_v3 = vor.u32 %v3538_v26, %v3114_v7  ;;  %vm4522_vm9 = vmor %vm464_vm0, %vm465_vm12  ;;  %v3536_v24 = vld [vmem:[#allocation5 + $0x144] sm:$0xf] }
 0x137   :  { %v433_v42 = vadd.f32 %v4420_v37, %v432_v57  ;;  %v4502_v4 = vmul.f32 %v3659_v45, %v457_v33  ;;  %v3178_v45 = vld [vmem:[#allocation5 + $0x1d8] sm:$0xf0]  ;;  %v492_v14 = vmul.f32 %v4407_v54, %v491_v1  ;;  %v482_v18 = vsel %vm4469_vm5, %v4394_v36, %v478_v6  ;;  %vm4559_vm12 = vmor %vm494_vm6, %vm495_vm8  ;;  %v3537_v1 = vld [vmem:[#allocation5 + $0x144] sm:$0xf0] }
 0x138   :  { %v422_v49 = vsel %vm4477_vm11, %v4415_v2, %v418_v60  ;;  %v3177_v0 = vor.u32 %v3555_v9, %v3176_v8  ;;  %v463_v32 = vadd.f32 %v4446_v22, %v462_v50  ;;  %v487_v25 = vsel %vm4442_vm3, %v486_v31, %v482_v18  ;;  %950 = vmatpush.bf16.msrb.mxu2 %v3117_v3  ;;  %v3550_v60 = vld [vmem:[#allocation5 + $0x1b4] sm:$0xf]  ;;  %v3152_v8 = vld [vmem:[#allocation5 + $0x1a0] sm:$0xf]  ;;  %v3548_v50 = vld [vmem:[#allocation5 + $0x1a4] sm:$0xf] }
 0x139   :  { %v427_v15 = vsel %vm4425_vm15, %v4391_v34, %v422_v49  ;;  %v437_v17 = vsel %vm4492_vm7, %v4420_v37, %v433_v42  ;;  %512 = vst [vmem:[#allocation11 + $0x10] sm:$0xff] %v4502_v4  ;;  %v3120_v34 = vld [vmem:[#allocation5 + $0x160] sm:$0xf]  ;;  %v4541_v30 = vmul.f32 %v3665_v51, %v487_v25  ;;  %v3169_v31 = vor.u32 %v3553_v28, %v3168_v27  ;;  %v3098_v42 = vld [vmem:[#allocation5 + $0x138] sm:$0xf0] }
 0x13a   :  { %v442_v37 = vsel %vm4437_vm2, %v4409_v40, %v437_v17  ;;  %v504_v23 = vmul.f32 %v3654_v44, %v427_v15  ;;  %1092 = vmatpush.bf16.msrb.mxu3 %v3177_v0  ;;  %v3181_v40 = vor.u32 %v3554_v11, %v3178_v45  ;;  %v3121_v5 = vor.u32 %v3541_v20, %v3120_v34  ;;  %v3170_v44 = vld [vmem:[#allocation5 + $0x1c8] sm:$0xf0]  ;;  %v3549_v49 = vld [vmem:[#allocation5 + $0x1a4] sm:$0xf0]  ;;  %v3144_v17 = vld [vmem:[#allocation5 + $0x190] sm:$0xf] }
 0x13b   :  { %v505_v36 = vmul.f32 %v3655_v43, %v442_v37  ;;  %v467_v10 = vsel %vm4522_vm9, %v4446_v22, %v463_v32  ;;  %v3173_v16 = vor.u32 %v3552_v29, %v3170_v44  ;;  %v3109_v53 = vor.u32 %v3536_v24, %v3106_v35  ;;  %514 = vst [vmem:[#allocation11 + $0x20] sm:$0xff] %v4541_v30  ;;  %v3154_v45 = vld [vmem:[#allocation5 + $0x1a8] sm:$0xf0]  ;;  %v3547_v2 = vld [vmem:[#allocation5 + $0x194] sm:$0xf0] }
 0x13c   :  { %510 = vst [vmem:[#allocation11] sm:$0xff] %v504_v23  ;;  %v472_v43 = vsel %vm4461_vm10, %v4430_v38, %v467_v10  ;;  %1116 = vmatpush.bf16.msra.mxu0 %v3181_v40  ;;  %925 = vmatpush.bf16.msrb.mxu1 %v3121_v5  ;;  %v493_v51 = vadd.f32 %v4407_v54, %v492_v14  ;;  %v498_v38 = vand.u32 2147483647, %v4368_v19  ;;  %v500_v46 = vand.u32 2147483648, %v4368_v19  ;;  %v3162_v19 = vld [vmem:[#allocation5 + $0x1b8] sm:$0xf0] }
 0x13d   :  { %511 = vst [vmem:[#allocation11 + $0x8] sm:$0xff] %v505_v36  ;;  %v517_v39 = vpack.c.bf16 %v505_v36, %v504_v23  ;;  %v4552_v52 = vmul.f32 %v3660_v47, %v472_v43  ;;  %951 = vmatpush.bf16.msrb.mxu2 %v3109_v53  ;;  %v3112_v47 = vld [vmem:[#allocation5 + $0x150] sm:$0xf]  ;;  %v3161_v59 = vor.u32 %v3551_v62, %v3160_v55  ;;  %v3546_v34 = vld [vmem:[#allocation5 + $0x194] sm:$0xf]  ;;  %vm5326_vm15 = vcmp.lt.f32.partialorder %v4230_v12, 16.0 }
 0x13e   :  { %v497_v41 = vsel %vm4559_vm12, %v4407_v54, %v493_v51  ;;  %1093 = vmatpush.bf16.msrb.mxu3 %v3169_v31  ;;  %vm499_vm10 = vcmp.eq.f32.partialorder %v498_v38, 8.507059e+37  ;;  %v501_v57 = vor.u32 1.1754944e-38, %v500_v46  ;;  %v3113_v58 = vor.u32 %v3539_v56, %v3112_v47  ;;  %v3534_v54 = vld [vmem:[#allocation5 + $0x134] sm:$0xf]  ;;  %v3146_v20 = vld [vmem:[#allocation5 + $0x198] sm:$0xf0] }
 0x13f   :  { %778 = vmatmul.bf16.vlgmr.msra.gmra.mxu3 %v517_v39  ;;  %802 = vmatmul.bf16.vlgmr.msrb.gmra.mxu0 %v517_v39  ;;  %513 = vst [vmem:[#allocation11 + $0x18] sm:$0xff] %v4552_v52  ;;  %v3165_v61 = vor.u32 %v3550_v60, %v3162_v19  ;;  %v3105_v26 = vor.u32 %v3537_v1, %v3104_v21  ;;  %v3532_v37 = vld [vmem:[#allocation5 + $0x124] sm:$0xf]  ;;  %v3090_v32 = vld [vmem:[#allocation5 + $0x128] sm:$0xf0]  ;;  %vm5327_vm1 = vcmp.lt.f32.partialorder %v4235_v13, 16.0 }
 0x140   :  { %1117 = vmatpush.bf16.msra.mxu0 %v3173_v16  ;;  %v502_v33 = vsel %vm499_vm10, %v501_v57, %v497_v41  ;;  %926 = vmatpush.bf16.msrb.mxu1 %v3113_v58  ;;  %v3101_v7 = vor.u32 %v3534_v54, %v3098_v42  ;;  %v3153_v11 = vor.u32 %v3549_v49, %v3152_v8  ;;  %v3088_v25 = vld [vmem:[#allocation5 + $0x120] sm:$0xf]  ;;  %v3533_v27 = vld [vmem:[#allocation5 + $0x124] sm:$0xf0]  ;;  %v3544_v40 = vld [vmem:[#allocation5 + $0x184] sm:$0xf] }
 0x141   :  { %v4571_v6 = vmul.f32 %v3666_v63, %v502_v33  ;;  %v3157_v15 = vor.u32 %v3548_v50, %v3154_v45  ;;  %v3535_v63 = vld [vmem:[#allocation5 + $0x134] sm:$0xf0]  ;;  %v3145_v0 = vor.u32 %v3547_v2, %v3144_v17  ;;  %v3149_v23 = vor.u32 %v3546_v34, %v3146_v20  ;;  %v3136_v29 = vld [vmem:[#allocation5 + $0x180] sm:$0xf]  ;;  %v3545_v36 = vld [vmem:[#allocation5 + $0x184] sm:$0xf0] }
 0x142   :  { %1094 = vmatpush.bf16.msrb.mxu3 %v3161_v59  ;;  %952 = vmatpush.bf16.msrb.mxu2 %v3101_v7  ;;  %v3097_v18 = vor.u32 %v3535_v63, %v3096_v48  ;;  %v3093_v28 = vor.u32 %v3532_v37, %v3090_v32  ;;  %v3089_v5 = vor.u32 %v3533_v27, %v3088_v25  ;;  %v3138_v24 = vld [vmem:[#allocation5 + $0x188] sm:$0xf0]  ;;  %v3080_v31 = vld [vmem:[#allocation5 + $0x110] sm:$0xf]  ;;  %v3531_v16 = vld [vmem:[#allocation5 + $0x114] sm:$0xf0] }
 0x143   :  { %515 = vst [vmem:[#allocation11 + $0x28] sm:$0xff] %v4571_v6  ;;  %v3137_v44 = vor.u32 %v3545_v36, %v3136_v29  ;;  %v518_v35 = vpack.c.bf16 %v4552_v52, %v4502_v4  ;;  %v3141_v10 = vor.u32 %v3544_v40, %v3138_v24  ;;  %v3530_v53 = vld [vmem:[#allocation5 + $0x114] sm:$0xf]  ;;  %v3081_v39 = vor.u32 %v3531_v16, %v3080_v31  ;;  %v3082_v43 = vld [vmem:[#allocation5 + $0x118] sm:$0xf0]  ;;  %v3808_v12 = vld [vmem:[%s5299_s21 + $0x28] sm:$0xff] }
 0x144   :  { %v536_v3 = vld [vmem:[#allocation11 + $0x1] sm:$0xff]  ;;  %v537_v9 = vld [vmem:[#allocation11 + $0x9] sm:$0xff]  ;;  %1118 = vmatpush.bf16.msra.mxu0 %v3165_v61  ;;  %927 = vmatpush.bf16.msrb.mxu1 %v3105_v26  ;;  %v3085_v22 = vor.u32 %v3530_v53, %v3082_v43  ;;  %v3574_v57 = vld [vmem:[#allocation5 + $0x274] sm:$0xf]  ;;  %v519_v59 = vpack.c.bf16 %v4571_v6, %v4541_v30  ;;  %vm1321_vm4 = vcmp.ge.f32.partialorder %v3808_v12, 2.0  ;;  %vm1327_vm11 = vcmp.lt.f32.partialorder %v3808_v12, 16.0 }
 0x145   :  { %v542_v14 = vpack.c.bf16 %v537_v9, %v536_v3  ;;  %v3072_v51 = vld [vmem:[#allocation5 + $0x100] sm:$0xf]  ;;  %v3529_v38 = vld [vmem:[#allocation5 + $0x104] sm:$0xf0]  ;;  %v3528_v46 = vld [vmem:[#allocation5 + $0x104] sm:$0xf] }
 0x146   :  { %1095 = vmatpush.bf16.msrb.mxu3 %v3153_v11  ;;  %953 = vmatpush.bf16.msrb.mxu2 %v3093_v28  ;;  %v3074_v41 = vld [vmem:[#allocation5 + $0x108] sm:$0xf0]  ;;  %v538_v47 = vld [vmem:[#allocation11 + $0x11] sm:$0xff]  ;;  %v539_v4 = vld [vmem:[#allocation11 + $0x19] sm:$0xff]  ;;  %v3073_v52 = vor.u32 %v3529_v38, %v3072_v51  ;;  %vm2450_vm9 = vcmp.ge.f32.partialorder %v3808_v12, 0.0 }
 0x147   :  { %650 = vmatmul.bf16.vlgmr.msra.gmra.mxu1 %v542_v14  ;;  %674 = vmatmul.bf16.vlgmr.msra.gmra.mxu2 %v542_v14  ;;  %v3077_v56 = vor.u32 %v3528_v46, %v3074_v41  ;;  %v543_v55 = vpack.c.bf16 %v539_v4, %v538_v47  ;;  %v3258_v58 = vld [vmem:[#allocation5 + $0x278] sm:$0xf0]  ;;  %v3572_v60 = vld [vmem:[#allocation5 + $0x264] sm:$0xf]  ;;  %v3250_v19 = vld [vmem:[#allocation5 + $0x268] sm:$0xf0] }
 0x148   :  { %1119 = vmatpush.bf16.msra.mxu0 %v3157_v15  ;;  %928 = vmatpush.bf16.msrb.mxu1 %v3097_v18  ;;  %v3261_v62 = vor.u32 %v3574_v57, %v3258_v58  ;;  %v3256_v21 = vld [vmem:[#allocation5 + $0x270] sm:$0xf]  ;;  %v3253_v33 = vor.u32 %v3572_v60, %v3250_v19  ;;  %v3575_v61 = vld [vmem:[#allocation5 + $0x274] sm:$0xf0]  ;;  %v3570_v7 = vld [vmem:[#allocation5 + $0x254] sm:$0xf] }
 0x149   :  { %v3257_v1 = vor.u32 %v3575_v61, %v3256_v21  ;;  %v3242_v8 = vld [vmem:[#allocation5 + $0x258] sm:$0xf0]  ;;  %v3248_v49 = vld [vmem:[#allocation5 + $0x260] sm:$0xf]  ;;  %v3573_v30 = vld [vmem:[#allocation5 + $0x264] sm:$0xf0] }
 0x14a   :  { %1096 = vmatpush.bf16.msrb.mxu3 %v3145_v0  ;;  %954 = vmatpush.bf16.msrb.mxu2 %v3085_v22  ;;  %v540_v54 = vld [vmem:[#allocation11 + $0x21] sm:$0xff]  ;;  %v541_v42 = vld [vmem:[#allocation11 + $0x29] sm:$0xff]  ;;  %v3245_v50 = vor.u32 %v3570_v7, %v3242_v8  ;;  %v3249_v9 = vor.u32 %v3573_v30, %v3248_v49  ;;  %v3571_v63 = vld [vmem:[#allocation5 + $0x254] sm:$0xf0] }
 0x14b   :  { %v544_v26 = vpack.c.bf16 %v541_v42, %v540_v54  ;;  %v3568_v6 = vld [vmem:[#allocation5 + $0x244] sm:$0xf]  ;;  %v3234_v3 = vld [vmem:[#allocation5 + $0x248] sm:$0xf0]  ;;  %v3240_v48 = vld [vmem:[#allocation5 + $0x250] sm:$0xf] }
 0x14c   :  { %1120 = vmatpush.bf16.msra.mxu0 %v3149_v23  ;;  %929 = vmatpush.bf16.msrb.mxu1 %v3089_v5  ;;  %v984_v11 = vld [vmem:[#allocation11 + $0x3] sm:$0xff]  ;;  %v985_v45 = vld [vmem:[#allocation11 + $0xb] sm:$0xff]  ;;  %v3237_v14 = vor.u32 %v3568_v6, %v3234_v3  ;;  %v3241_v2 = vor.u32 %v3571_v63, %v3240_v48  ;;  %v3566_v0 = vld [vmem:[#allocation5 + $0x234] sm:$0xf] }
 0x14d   :  { %v990_v15 = vpack.c.bf16 %v985_v45, %v984_v11  ;;  %v3232_v17 = vld [vmem:[#allocation5 + $0x240] sm:$0xf]  ;;  %v3569_v18 = vld [vmem:[#allocation5 + $0x244] sm:$0xf0]  ;;  %v3226_v34 = vld [vmem:[#allocation5 + $0x238] sm:$0xf0] }
 0x14e   :  { %1097 = vmatpush.bf16.msrb.mxu3 %v3137_v44  ;;  %955 = vmatpush.bf16.msrb.mxu2 %v3077_v56  ;;  %v3229_v20 = vor.u32 %v3566_v0, %v3226_v34  ;;  %v818_v37 = vld [vmem:[#allocation11 + $0x2] sm:$0xff]  ;;  %v819_v23 = vld [vmem:[#allocation11 + $0xa] sm:$0xff]  ;;  %v3233_v32 = vor.u32 %v3569_v18, %v3232_v17  ;;  %v3567_v28 = vld [vmem:[#allocation5 + $0x234] sm:$0xf0] }
 0x14f   :  { %783 = vmatmul.bf16.gmra.mxu3 %v518_v35  ;;  %807 = vmatmul.bf16.gmra.mxu0 %v518_v35  ;;  %v824_v25 = vpack.c.bf16 %v819_v23, %v818_v37  ;;  %v3224_v27 = vld [vmem:[#allocation5 + $0x230] sm:$0xf]  ;;  %v3564_v29 = vld [vmem:[#allocation5 + $0x224] sm:$0xf]  ;;  %v3218_v40 = vld [vmem:[#allocation5 + $0x228] sm:$0xf0] }
 0x150   :  { %1121 = vmatpush.bf16.msra.mxu0 %v3141_v10  ;;  %930 = vmatpush.bf16.msrb.mxu1 %v3081_v39  ;;  %v3225_v36 = vor.u32 %v3567_v28, %v3224_v27  ;;  %v3216_v5 = vld [vmem:[#allocation5 + $0x220] sm:$0xf]  ;;  %v3565_v44 = vld [vmem:[#allocation5 + $0x224] sm:$0xf0]  ;;  %v3221_v24 = vor.u32 %v3564_v29, %v3218_v40  ;;  %v3562_v35 = vld [vmem:[#allocation5 + $0x214] sm:$0xf] }
 0x151   :  { %v986_v10 = vld [vmem:[#allocation11 + $0x13] sm:$0xff]  ;;  %v987_v31 = vld [vmem:[#allocation11 + $0x1b] sm:$0xff]  ;;  %v3217_v16 = vor.u32 %v3565_v44, %v3216_v5  ;;  %v3560_v38 = vld [vmem:[#allocation5 + $0x204] sm:$0xf] }
 0x152   :  { %1280 = vmatpush.bf16.msra.mxu2 %v3261_v62  ;;  %v3210_v53 = vld [vmem:[#allocation5 + $0x218] sm:$0xf0]  ;;  %v3208_v39 = vld [vmem:[#allocation5 + $0x210] sm:$0xf]  ;;  %v3563_v43 = vld [vmem:[#allocation5 + $0x214] sm:$0xf0]  ;;  %v991_v22 = vpack.c.bf16 %v987_v31, %v986_v10 }
 0x153   :  { %v3213_v51 = vor.u32 %v3562_v35, %v3210_v53  ;;  %v3202_v46 = vld [vmem:[#allocation5 + $0x208] sm:$0xf0]  ;;  %v3209_v41 = vor.u32 %v3563_v43, %v3208_v39  ;;  %v3200_v47 = vld [vmem:[#allocation5 + $0x200] sm:$0xf]  ;;  %v3561_v4 = vld [vmem:[#allocation5 + $0x204] sm:$0xf0] }
 0x154   :  { %931 = vmatpush.bf16.msrb.mxu1 %v3073_v52  ;;  %v3205_v52 = vor.u32 %v3560_v38, %v3202_v46  ;;  %v820_v56 = vld [vmem:[#allocation11 + $0x12] sm:$0xff]  ;;  %v3201_v57 = vor.u32 %v3561_v4, %v3200_v47  ;;  %v988_v62 = vld [vmem:[#allocation11 + $0x23] sm:$0xff]  ;;  %vm1333_vm7 = vmand %vm1321_vm4, %vm1327_vm11 }
 0x155   :  { %v822_v19 = vld [vmem:[#allocation11 + $0x22] sm:$0xff]  ;;  %v823_v21 = vld [vmem:[#allocation11 + $0x2a] sm:$0xff]  ;;  %v1152_v42 = vld [vmem:[#allocation11 + $0x14] sm:$0xff] }
 0x156   :  { %1281 = vmatpush.bf16.msra.mxu2 %v3253_v33  ;;  %v826_v33 = vpack.c.bf16 %v823_v21, %v822_v19  ;;  %v1150_v61 = vld [vmem:[#allocation11 + $0x4] sm:$0xff]  ;;  %v3804_v8 = vld [vmem:[%s5299_s21 + $0x10] sm:$0xff]  ;;  %v3805_v49 = vld [vmem:[%s5299_s21 + $0x18] sm:$0xff] }
 0x157   :  { %655 = vmatmul.bf16.gmra.mxu1 %v543_v55  ;;  %679 = vmatmul.bf16.gmra.mxu2 %v543_v55  ;;  %v821_v55 = vld [vmem:[#allocation11 + $0x1a] sm:$0xff]  ;;  %vm1318_vm13 = vcmp.ge.f32.partialorder %v3804_v8, 2.0  ;;  %vm1319_vm14 = vcmp.ge.f32.partialorder %v3805_v49, 2.0  ;;  %v1155_v11 = vld [vmem:[#allocation11 + $0x2c] sm:$0xff]  ;;  %vm2456_vm10 = vmand %vm2450_vm9, %vm1327_vm11 }
 0x158   :  { %1256 = vmatpush.bf16.msra.mxu1 %v3257_v1  ;;  %v825_v58 = vpack.c.bf16 %v821_v55, %v820_v56  ;;  %v1151_v1 = vld [vmem:[#allocation11 + $0xc] sm:$0xff]  ;;  %vm1330_vm0 = vmand %vm1318_vm13, %vm5326_vm15 }
 0x159   :  { %v1156_v54 = vpack.c.bf16 %v1151_v1, %v1150_v61  ;;  %vm1331_vm2 = vmand %vm1319_vm14, %vm5327_vm1 }
 0x15a   :  { %1282 = vmatpush.bf16.msra.mxu2 %v3245_v50  ;;  %v3806_v50 = vld [vmem:[#allocation11 + $0x30] sm:$0xff] }
 0x15b   :  { %v3264_v30 = vsel %vm1330_vm0, 1.0, %v3806_v50  ;;  %v3265_v6 = vsel %vm1331_vm2, 1.0, %v3806_v50  ;;  %v3267_v63 = vsel %vm1333_vm7, 1.0, %v3806_v50  ;;  %v3477_v34 = vsel %vm2456_vm10, 1.0, %v3806_v50 }
 0x15c   :  { %1257 = vmatpush.bf16.msra.mxu1 %v3249_v9  ;;  %v3673_v3 = vpack.i.bf16 %v3265_v6, %v3264_v30  ;;  %v1154_v9 = vld [vmem:[#allocation11 + $0x24] sm:$0xff]  ;;  %vm1480_vm2 = vcmask 1040384  }
 0x15e   :  { %1283 = vmatpush.bf16.msra.mxu2 %v3237_v14  ;;  %3674 = vperm.xlu2 %3672, %v3673_v3   ;;  %v1158_v14 = vpack.c.bf16 %v1155_v11, %v1154_v9 }
 0x15f   :  { %788 = vmatmul.bf16.gmra.mxu3 %v519_v59  ;;  %812 = vmatmul.bf16.gmra.mxu0 %v519_v59  ;;  %v989_v59 = vld [vmem:[#allocation11 + $0x2b] sm:$0xff] }
 0x160   :  { %1258 = vmatpush.bf16.msra.mxu1 %v3241_v2  ;;  %v992_v60 = vpack.c.bf16 %v989_v59, %v988_v62 }
 0x162   :  { %1284 = vmatpush.bf16.msra.mxu2 %v3229_v20 }
 0x164   :  { %1259 = vmatpush.bf16.msra.mxu1 %v3233_v32 }
 0x166   :  { %1285 = vmatpush.bf16.msra.mxu2 %v3221_v24 }
 0x167   :  { %660 = vmatmul.bf16.gmra.mxu1 %v544_v26  ;;  %684 = vmatmul.bf16.gmra.mxu2 %v544_v26  ;;  %v1153_v26 = vld [vmem:[#allocation11 + $0x1c] sm:$0xff] }
 0x168   :  { %1260 = vmatpush.bf16.msra.mxu1 %v3225_v36  ;;  %v1157_v7 = vpack.c.bf16 %v1153_v26, %v1152_v42 }
 0x16a   :  { %1286 = vmatpush.bf16.msra.mxu2 %v3213_v51 }
 0x16c   :  { %1261 = vmatpush.bf16.msra.mxu1 %v3217_v16 }
 0x16e   :  { %1287 = vmatpush.bf16.msra.mxu2 %v3205_v52 }
 0x16f   :  { %1098 = vmatmul.bf16.vlgmr.msrb.gmra.mxu3 %v990_v15  ;;  %1122 = vmatmul.bf16.vlgmr.msra.gmra.mxu0 %v990_v15  ;;  %v3807_v15 = vld [vmem:[%s5299_s21 + $0x20] sm:$0xff] }
 0x170   :  { %1262 = vmatpush.bf16.msra.mxu1 %v3209_v41  ;;  %vm1320_vm3 = vcmp.ge.f32.partialorder %v3807_v15, 2.0  ;;  %vm1326_vm5 = vcmp.lt.f32.partialorder %v3807_v15, 16.0  ;;  %vm2449_vm8 = vcmp.ge.f32.partialorder %v3807_v15, 0.0 }
 0x171   :  { %vm1332_vm6 = vmand %vm1320_vm3, %vm1326_vm5 }
 0x172   :  { %v3266_v13 = vsel %vm1332_vm6, 1.0, %v3806_v50  ;;  %vm2455_vm12 = vmand %vm2449_vm8, %vm1326_vm5 }
 0x173   :  { %v3678_v17 = vpack.i.bf16 %v3267_v63, %v3266_v13  ;;  %v3476_v0 = vsel %vm2455_vm12, 1.0, %v3806_v50 }
 0x174   :  { %1263 = vmatpush.bf16.msra.mxu1 %v3201_v57  ;;  %v3693_v20 = vpack.i.bf16 %v3477_v34, %v3476_v0 }
 0x175   :  { %3679 = vperm.xlu2 %3672, %v3678_v17  }
 0x177   :  { %932 = vmatmul.bf16.vlgmr.msrb.gmra.mxu1 %v824_v25  ;;  %956 = vmatmul.bf16.vlgmr.msrb.gmra.mxu2 %v824_v25 }
 0x17d   :  { %3694 = vperm.xlu2 %3672, %v3693_v20   ;;  %v3669_v20 = vpop.permute.xlu1 %3668 }
 0x17f   :  { %1103 = vmatmul.bf16.gmra.mxu3 %v991_v22  ;;  %1127 = vmatmul.bf16.gmra.mxu0 %v991_v22 }
 0x187   :  { %937 = vmatmul.bf16.gmra.mxu1 %v825_v58  ;;  %961 = vmatmul.bf16.gmra.mxu2 %v825_v58 }
 0x18f   :  { %1108 = vmatmul.bf16.gmra.mxu3 %v992_v60  ;;  %1132 = vmatmul.bf16.gmra.mxu0 %v992_v60 }
 0x197   :  { %942 = vmatmul.bf16.gmra.mxu1 %v826_v33  ;;  %966 = vmatmul.bf16.gmra.mxu2 %v826_v33 }
 0x1a7   :  { %1264 = vmatmul.bf16.vlgmr.msra.gmra.mxu1 %v1156_v54  ;;  %1288 = vmatmul.bf16.vlgmr.msra.gmra.mxu2 %v1156_v54 }
 0x1b7   :  { %1269 = vmatmul.bf16.gmra.mxu1 %v1157_v7  ;;  %1293 = vmatmul.bf16.gmra.mxu2 %v1157_v7 }
 0x1b8   :  { %v3675_v63 = vpop.permute.xlu2 %3674 }
 0x1bc   :  { %v803_v48 = vpop.f32.mrf.mxu0 }
 0x1c2   :  { %v779_v28 = vpop.f32.mrf.mxu3 }
 0x1c4   :  { %v651_v45 = vpop.f32.mrf.mxu1  ;;  %v805_v37 = vpop.f32.mrf.mxu0 }
 0x1c5   :  { %v780_v31 = vadd.f32 %v779_v28, %v651_v45 }
 0x1c7   :  { %1274 = vmatmul.bf16.gmra.mxu1 %v1158_v14  ;;  %1298 = vmatmul.bf16.gmra.mxu2 %v1158_v14 }
 0x1ca   :  { %v675_v2 = vpop.f32.mrf.mxu2  ;;  %v781_v5 = vpop.f32.mrf.mxu3 }
 0x1cb   :  { %v804_v43 = vadd.f32 %v803_v48, %v675_v2 }
 0x1cc   :  { %v653_v18 = vpop.f32.mrf.mxu1  ;;  %v808_v53 = vpop.f32.mrf.mxu0 }
 0x1cd   :  { %v782_v38 = vadd.f32 %v781_v5, %v653_v18 }
 0x1d2   :  { %v677_v23 = vpop.f32.mrf.mxu2  ;;  %v784_v35 = vpop.f32.mrf.mxu3 }
 0x1d3   :  { %v806_v32 = vadd.f32 %v805_v37, %v677_v23 }
 0x1d4   :  { %v656_v25 = vpop.f32.mrf.mxu1  ;;  %v810_v4 = vpop.f32.mrf.mxu0 }
 0x1d5   :  { %v785_v14 = vadd.f32 %v784_v35, %v656_v25  ;;  %v4616_v25 = vunpack.i.l.bf16 %v3669_v20 }
 0x1da   :  { %v680_v27 = vpop.f32.mrf.mxu2  ;;  %v786_v51 = vpop.f32.mrf.mxu3 }
 0x1db   :  { %v809_v34 = vadd.f32 %v808_v53, %v680_v27 }
 0x1dc   :  { %v658_v29 = vpop.f32.mrf.mxu1  ;;  %v813_v58 = vpop.f32.mrf.mxu0 }
 0x1dd   :  { %v787_v12 = vadd.f32 %v786_v51, %v658_v29 }
 0x1e2   :  { %v4598_v36 = vpop.f32.mrf.mxu2  ;;  %v789_v56 = vpop.f32.mrf.mxu3 }
 0x1e3   :  { %v811_v29 = vadd.f32 %v810_v4, %v4598_v36 }
 0x1e4   :  { %v661_v40 = vpop.f32.mrf.mxu1  ;;  %v4608_v21 = vpop.f32.mrf.mxu0 }
 0x1e5   :  { %v790_v2 = vadd.f32 %v789_v56, %v661_v40  ;;  %v4621_v40 = vunpack.i.l.bf16 %v3675_v63 }
 0x1ea   :  { %v4600_v44 = vpop.f32.mrf.mxu2  ;;  %v791_v60 = vpop.f32.mrf.mxu3 }
 0x1eb   :  { %v814_v53 = vadd.f32 %v813_v58, %v4600_v44  ;;  %v3680_v44 = vpop.permute.xlu2 %3679 }
 0x1ec   :  { %v4602_v24 = vpop.f32.mrf.mxu1  ;;  %v1123_v42 = vpop.f32.mrf.mxu0 }
 0x1f2   :  { %v4604_v10 = vpop.f32.mrf.mxu2  ;;  %v1099_v61 = vpop.f32.mrf.mxu3 }
 0x1f4   :  { %v933_v16 = vpop.f32.mrf.mxu1  ;;  %v1125_v49 = vpop.f32.mrf.mxu0 }
 0x1f5   :  { %v972_v39 = vadd.f32 %v933_v16, %v780_v31  ;;  %v4614_v31 = vunpack.i.h.bf16 %v3669_v20 }
 0x1fa   :  { %v957_v22 = vpop.f32.mrf.mxu2  ;;  %v1101_v26 = vpop.f32.mrf.mxu3 }
 0x1fb   :  { %v4606_v46 = vadd.f32 %v957_v22, %v804_v43 }
 0x1fc   :  { %v935_v41 = vpop.f32.mrf.mxu1  ;;  %v1128_v3 = vpop.f32.mrf.mxu0 }
 0x1fd   :  { %v974_v47 = vadd.f32 %v935_v41, %v782_v38  ;;  %v1139_v56 = vadd.f32 %v1123_v42, %v4606_v46 }
 0x1ff   :  { %v1140_v0 = vadd.f32 %v1101_v26, %v974_v47  ;;  %v4629_v47 = vunpack.i.h.bf16 %v3675_v63 }
 0x202   :  { %v959_v52 = vpop.f32.mrf.mxu2  ;;  %v1104_v30 = vpop.f32.mrf.mxu3 }
 0x203   :  { %v975_v55 = vadd.f32 %v959_v52, %v806_v32  ;;  %v1138_v32 = vadd.f32 %v1099_v61, %v972_v39  ;;  %v792_v39 = vadd.f32 %v791_v60, %v4602_v24  ;;  %v4640_v60 = vunpack.i.l.bf16 %v3680_v44 }
 0x204   :  { %v938_v57 = vpop.f32.mrf.mxu1  ;;  %v1130_v48 = vpop.f32.mrf.mxu0 }
 0x205   :  { %v976_v13 = vadd.f32 %v938_v57, %v785_v14  ;;  %v1141_v22 = vadd.f32 %v1125_v49, %v975_v55 }
 0x207   :  { %v1142_v5 = vadd.f32 %v1104_v30, %v976_v13 }
 0x20a   :  { %v962_v62 = vpop.f32.mrf.mxu2  ;;  %v1106_v45 = vpop.f32.mrf.mxu3 }
 0x20b   :  { %v977_v35 = vadd.f32 %v962_v62, %v809_v34 }
 0x20c   :  { %v940_v59 = vpop.f32.mrf.mxu1  ;;  %v1133_v24 = vpop.f32.mrf.mxu0 }
 0x20d   :  { %v978_v18 = vadd.f32 %v940_v59, %v787_v12  ;;  %v1143_v62 = vadd.f32 %v1128_v3, %v977_v35 }
 0x20f   :  { %v1144_v27 = vadd.f32 %v1106_v45, %v978_v18 }
 0x212   :  { %v964_v19 = vpop.f32.mrf.mxu2  ;;  %v1109_v37 = vpop.f32.mrf.mxu3 }
 0x213   :  { %v979_v51 = vadd.f32 %v964_v19, %v811_v29 }
 0x214   :  { %v943_v33 = vpop.f32.mrf.mxu1  ;;  %v1135_v29 = vpop.f32.mrf.mxu0 }
 0x215   :  { %v980_v23 = vadd.f32 %v943_v33, %v790_v2 }
 0x217   :  { %v1146_v4 = vadd.f32 %v1109_v37, %v980_v23 }
 0x21a   :  { %v967_v1 = vpop.f32.mrf.mxu2 }
 0x21b   :  { %v981_v52 = vadd.f32 %v967_v1, %v814_v53  ;;  %v1145_v1 = vadd.f32 %v1130_v48, %v979_v51 }
 0x21c   :  { %v945_v54 = vpop.f32.mrf.mxu1 }
 0x21d   :  { %v982_v33 = vadd.f32 %v945_v54, %v792_v39  ;;  %v1147_v30 = vadd.f32 %v1133_v24, %v981_v52 }
 0x222   :  { %v4610_v7 = vpop.f32.mrf.mxu2 }
 0x224   :  { %v1265_v8 = vpop.f32.mrf.mxu1 }
 0x225   :  { %v4619_v16 = vadd.f32 %v1265_v8, %v1138_v32 }
 0x227   :  { %v1376_v55 = vmul.f32 %v4616_v25, %v4619_v16 }
 0x229   :  { %v1410_v3 = vmul.f32 %v1376_v55, %v4619_v16 }
 0x22a   :  { %v1289_v50 = vpop.f32.mrf.mxu2 }
 0x22b   :  { %v4644_v61 = vadd.f32 %v1289_v50, %v1139_v56 }
 0x22c   :  { %v1267_v6 = vpop.f32.mrf.mxu1 }
 0x22d   :  { %v4612_v28 = vadd.f32 %v1267_v6, %v1140_v0  ;;  %v1111_v6 = vpop.f32.mrf.mxu3  ;;  %v1377_v45 = vmul.f32 %v4616_v25, %v4644_v61  ;;  %v4670_v0 = vunpack.i.h.bf16 %v3680_v44 }
 0x22e   :  { %v1148_v12 = vadd.f32 %v1111_v6, %v982_v33 }
 0x22f   :  { %v1378_v41 = vmul.f32 %v4614_v31, %v4612_v28  ;;  %v1411_v32 = vmul.f32 %v1377_v45, %v4644_v61 }
 0x231   :  { %v1412_v42 = vmul.f32 %v1378_v41, %v4612_v28  ;;  %v1388_v54 = vadd.f32 %v1378_v41, %v1376_v55 }
 0x232   :  { %v1291_v9 = vpop.f32.mrf.mxu2 }
 0x233   :  { %v4634_v57 = vadd.f32 %v1291_v9, %v1141_v22  ;;  %v1422_v13 = vadd.f32 %v1412_v42, %v1410_v3 }
 0x234   :  { %v1270_v11 = vpop.f32.mrf.mxu1 }
 0x235   :  { %v4623_v43 = vadd.f32 %v1270_v11, %v1142_v5  ;;  %v1379_v8 = vmul.f32 %v4614_v31, %v4634_v57  ;;  %v816_v11 = vadd.f32 %v4608_v21, %v4604_v10 }
 0x237   :  { %v1380_v59 = vmul.f32 %v4621_v40, %v4623_v43  ;;  %v983_v2 = vadd.f32 %v4610_v7, %v816_v11  ;;  %v1413_v18 = vmul.f32 %v1379_v8, %v4634_v57  ;;  %v1399_v35 = vadd.f32 %v1379_v8, %v1377_v45 }
 0x239   :  { %v1414_v50 = vmul.f32 %v1380_v59, %v4623_v43  ;;  %v1389_v48 = vadd.f32 %v1388_v54, %v1380_v59  ;;  %v1433_v51 = vadd.f32 %v1413_v18, %v1411_v32 }
 0x23a   :  { %v1294_v15 = vpop.f32.mrf.mxu2 }
 0x23b   :  { %v4646_v46 = vadd.f32 %v1294_v15, %v1143_v62  ;;  %v1423_v34 = vadd.f32 %v1422_v13, %v1414_v50 }
 0x23c   :  { %v1272_v17 = vpop.f32.mrf.mxu1 }
 0x23d   :  { %v4631_v36 = vadd.f32 %v1272_v17, %v1144_v27  ;;  %v1381_v14 = vmul.f32 %v4621_v40, %v4646_v46 }
 0x23f   :  { %v1382_v26 = vmul.f32 %v4629_v47, %v4631_v36  ;;  %v1415_v5 = vmul.f32 %v1381_v14, %v4646_v46  ;;  %v1400_v41 = vadd.f32 %v1399_v35, %v1381_v14 }
 0x241   :  { %v1416_v63 = vmul.f32 %v1382_v26, %v4631_v36  ;;  %v1390_v20 = vadd.f32 %v1389_v48, %v1382_v26  ;;  %v1434_v62 = vadd.f32 %v1433_v51, %v1415_v5 }
 0x242   :  { %v1296_v38 = vpop.f32.mrf.mxu2 }
 0x243   :  { %v4653_v49 = vadd.f32 %v1296_v38, %v1145_v1  ;;  %v1424_v27 = vadd.f32 %v1423_v34, %v1416_v63  ;;  %v1149_v38 = vadd.f32 %v1135_v29, %v983_v2 }
 0x244   :  { %v1275_v58 = vpop.f32.mrf.mxu1 }
 0x245   :  { %v4642_v19 = vadd.f32 %v1275_v58, %v1146_v4  ;;  %v1383_v10 = vmul.f32 %v4629_v47, %v4653_v49 }
 0x247   :  { %v1384_v9 = vmul.f32 %v4640_v60, %v4642_v19  ;;  %v1417_v22 = vmul.f32 %v1383_v10, %v4653_v49  ;;  %v1401_v24 = vadd.f32 %v1400_v41, %v1383_v10 }
 0x249   :  { %v1418_v37 = vmul.f32 %v1384_v9, %v4642_v19  ;;  %v1391_v53 = vadd.f32 %v1390_v20, %v1384_v9  ;;  %v1435_v1 = vadd.f32 %v1434_v62, %v1417_v22 }
 0x24a   :  { %v1299_v15 = vpop.f32.mrf.mxu2 }
 0x24b   :  { %v4666_v17 = vadd.f32 %v1299_v15, %v1147_v30  ;;  %v1425_v4 = vadd.f32 %v1424_v27, %v1418_v37 }
 0x24c   :  { %v1277_v21 = vpop.f32.mrf.mxu1 }
 0x24d   :  { %v4675_v23 = vadd.f32 %v1277_v21, %v1148_v12  ;;  %v1385_v7 = vmul.f32 %v4640_v60, %v4666_v17 }
 0x24f   :  { %v1386_v39 = vmul.f32 %v4670_v0, %v4675_v23  ;;  %v1419_v44 = vmul.f32 %v1385_v7, %v4666_v17  ;;  %v1402_v42 = vadd.f32 %v1401_v24, %v1385_v7 }
 0x251   :  { %v1392_v52 = vadd.f32 %v1391_v53, %v1386_v39  ;;  %v1420_v56 = vmul.f32 %v1386_v39, %v4675_v23  ;;  %v1436_v6 = vadd.f32 %v1435_v1, %v1419_v44 }
 0x252   :  { %v1301_v58 = vpop.f32.mrf.mxu2 }
 0x253   :  { %v1393_v55 = vrot.slane %v1392_v52, 4  ;;  %v1426_v59 = vadd.f32 %v1425_v4, %v1420_v56  ;;  %v4686_v33 = vadd.f32 %v1301_v58, %v1149_v38 }
 0x255   :  { %v1394_v26 = vadd.f32 %v1393_v55, %v1392_v52  ;;  %v1427_v8 = vrot.slane %v1426_v59, 4  ;;  %v1387_v30 = vmul.f32 %v4670_v0, %v4686_v33 }
 0x257   :  { %v1395_v3 = vrot.slane %v1394_v26, 2  ;;  %v1428_v54 = vadd.f32 %v1427_v8, %v1426_v59  ;;  %v1403_v50 = vadd.f32 %v1402_v42, %v1387_v30  ;;  %v1421_v9 = vmul.f32 %v1387_v30, %v4686_v33 }
 0x259   :  { %v1396_v11 = vadd.f32 %v1395_v3, %v1394_v26  ;;  %v1429_v45 = vrot.slane %v1428_v54, 2  ;;  %v1404_v14 = vrot.slane %v1403_v50, 4  ;;  %v1437_v15 = vadd.f32 %v1436_v6, %v1421_v9  ;;  %v1454_v9 = vld [vmem:[%s5275_s7] sm:$0x3]  ;;  %s4076_s7 = smov [#allocation11]  }
 0x25b   :  { %v1397_v12 = vrot.slane %v1396_v11, 1  ;;  %v1430_v13 = vadd.f32 %v1429_v45, %v1428_v54  ;;  %v1405_v48 = vadd.f32 %v1404_v14, %v1403_v50  ;;  %v1438_v63 = vrot.slane %v1437_v15, 4 }
 0x25d   :  { %v1398_v2 = vadd.f32 %v1397_v12, %v1396_v11  ;;  %v1431_v18 = vrot.slane %v1430_v13, 1  ;;  %v1406_v10 = vrot.slane %v1405_v48, 2  ;;  %v1439_v21 = vadd.f32 %v1438_v63, %v1437_v15  ;;  %v3591_v63 = vld [vmem:[#allocation7 + $0x78] sm:$0xff] }
 0x25e   :  { %2201 = vmatpush.bf16.msrb.mxu2 %v3591_v63  ;;  %v3605_v63 = vld [vmem:[#allocation7 + $0xe8] sm:$0xff] }
 0x25f   :  { %v1432_v34 = vadd.f32 %v1431_v18, %v1430_v13  ;;  %v1444_v20 = vmul.f32 0.035714287, %v1398_v2  ;;  %v1407_v37 = vadd.f32 %v1406_v10, %v1405_v48  ;;  %v1440_v32 = vrot.slane %v1439_v21, 2  ;;  %v3583_v48 = vld [vmem:[#allocation7 + $0x38] sm:$0xff] }
 0x260   :  { %2177 = vmatpush.bf16.msrb.mxu1 %v3583_v48  ;;  %v3597_v48 = vld [vmem:[#allocation7 + $0xa8] sm:$0xff] }
 0x261   :  { %v1446_v5 = vmul.f32 0.035714287, %v1432_v34  ;;  %v1448_v7 = vmul.f32 %v1444_v20, %v1444_v20  ;;  %v1408_v29 = vrot.slane %v1407_v37, 1  ;;  %v1441_v35 = vadd.f32 %v1440_v32, %v1439_v21  ;;  %v1484_v34 = vld [vmem:[%s5276_s8] sm:$0x3]  ;;  %s2803_s8 = sshll.u32 %s4076_s7, 4  ;;  %s2804_s8 = int_to_ptr.vmem [resolvable:$true] %s2803_s8 }
 0x262   :  { %2811 = dma.vmem_to_hbm [thread:$0]  %s2804_s8, 896, %s2806_s17, [#allocation4], %s4062_s27, %s4062_s27, %s4063_s28  }
 0x263   :  { %v1450_v27 = vsub.f32 %v1446_v5, %v1448_v7  ;;  %v1409_v53 = vadd.f32 %v1408_v29, %v1407_v37  ;;  %v1442_v39 = vrot.slane %v1441_v35, 1  ;;  %v3582_v7 = vld [vmem:[#allocation7 + $0x30] sm:$0xff] }
 0x264   :  { %v3590_v29 = vld [vmem:[#allocation7 + $0x70] sm:$0xff]  ;;  %2178 = vmatpush.bf16.msrb.mxu1 %v3582_v7 }
 0x265   :  { %v1452_v51 = vmax.f32 %v1450_v27, 0.0  ;;  %v1443_v22 = vadd.f32 %v1442_v39, %v1441_v35  ;;  %v1445_v38 = vmul.f32 0.035714287, %v1409_v53  ;;  %2202 = vmatpush.bf16.msrb.mxu2 %v3590_v29  ;;  %v3589_v27 = vld [vmem:[#allocation7 + $0x68] sm:$0xff] }
 0x267   :  { %v1455_v41 = vadd.f32 1e-05, %v1452_v51  ;;  %v1447_v4 = vmul.f32 0.035714287, %v1443_v22  ;;  %v1449_v52 = vmul.f32 %v1445_v38, %v1445_v38 }
 0x269   :  { %3726 = vrsqrt.f32 %v1455_v41  ;;  %v1451_v56 = vsub.f32 %v1447_v4, %v1449_v52  ;;  %vm1463_vm1 = vweird.f32 %v1455_v41  ;;  %2203 = vmatpush.bf16.msrb.mxu2 %v3589_v27  ;;  %v3576_v27 = vld [vmem:[#allocation7] sm:$0xff] }
 0x26b   :  { %v1453_v62 = vmax.f32 %v1451_v56, 0.0 }
 0x26d   :  { %v1456_v44 = vadd.f32 1e-05, %v1453_v62 }
 0x26f   :  { %v3727_v58 = vpop.eup %3726  ;;  %3728 = vrsqrt.f32 %v1456_v44  ;;  %vm1473_vm15 = vweird.f32 %v1456_v44 }
 0x270   :  { %v1458_v24 = vmul.f32 %v3727_v58, %v1455_v41  ;;  %vm1464_vm14 = vweird.f32 %v3727_v58 }
 0x271   :  { %vm1465_vm3 = vmor %vm1463_vm1, %vm1464_vm14 }
 0x272   :  { %v1459_v55 = vmul.f32 %v3727_v58, %v1458_v24  ;;  %v3588_v24 = vld [vmem:[#allocation7 + $0x60] sm:$0xff] }
 0x273   :  { %2204 = vmatpush.bf16.msrb.mxu2 %v3588_v24 }
 0x274   :  { %v1460_v1 = vmul.f32 0.5, %v1459_v55 }
 0x275   :  { %v3729_v59 = vpop.eup %3728 }
 0x276   :  { %v1468_v42 = vmul.f32 %v3729_v59, %v1456_v44  ;;  %v1461_v8 = vsub.f32 1.5, %v1460_v1  ;;  %vm1474_vm13 = vweird.f32 %v3729_v59 }
 0x277   :  { %vm1475_vm0 = vmor %vm1473_vm15, %vm1474_vm13 }
 0x278   :  { %v1469_v26 = vmul.f32 %v3729_v59, %v1468_v42  ;;  %v1462_v3 = vmul.f32 %v3727_v58, %v1461_v8  ;;  %v3607_v8 = vld [vmem:[#allocation7 + $0xf8] sm:$0xff] }
 0x279   :  { %2057 = vmatpush.bf16.msrb.mxu0 %v3607_v8 }
 0x27a   :  { %v1470_v30 = vmul.f32 0.5, %v1469_v26  ;;  %v1466_v45 = vsel %vm1465_vm3, %v3727_v58, %v1462_v3  ;;  %v3580_v58 = vld [vmem:[#allocation7 + $0x20] sm:$0xff]  ;;  %v3599_v26 = vld [vmem:[#allocation7 + $0xb8] sm:$0xff] }
 0x27b   :  { %v3579_v3 = vld [vmem:[#allocation7 + $0x18] sm:$0xff]  ;;  %2033 = vmatpush.bf16.msra.mxu3 %v3599_v26 }
 0x27c   :  { %v1471_v6 = vsub.f32 1.5, %v1470_v30 }
 0x27e   :  { %v1472_v54 = vmul.f32 %v3729_v59, %v1471_v6 }
 0x280   :  { %v1476_v50 = vsel %vm1475_vm0, %v3729_v59, %v1472_v54  ;;  %v3587_v54 = vld [vmem:[#allocation7 + $0x58] sm:$0xff] }
 0x281   :  { %v1479_v11 = vrot.slane %v1476_v50, 7  ;;  %2205 = vmatpush.bf16.msrb.mxu2 %v3587_v54 }
 0x283   :  { %v1481_v14 = vsel %vm1480_vm2, %v1466_v45, %v1479_v11  ;;  %v3606_v45 = vld [vmem:[#allocation7 + $0xf0] sm:$0xff] }
 0x284   :  { %v1483_v15 = vmul.f32 %v1481_v14, %v1454_v9  ;;  %v3578_v14 = vld [vmem:[#allocation7 + $0x10] sm:$0xff]  ;;  %2058 = vmatpush.bf16.msrb.mxu0 %v3606_v45 }
 0x286   :  { %v1486_v12 = vperm.slane %v1483_v15, 0  ;;  %v1487_v13 = vperm.slane %v1483_v15, 1  ;;  %v3586_v15 = vld [vmem:[#allocation7 + $0x50] sm:$0xff] }
 0x287   :  { %2206 = vmatpush.bf16.msrb.mxu2 %v3586_v15 }
 0x288   :  { %v1490_v2 = vmul.f32 %v1486_v12, %v1444_v20  ;;  %v1491_v18 = vmul.f32 %v1487_v13, %v1445_v38  ;;  %v1504_v10 = vmul.f32 %v1486_v12, %v4631_v36  ;;  %v1507_v21 = vmul.f32 %v1487_v13, %v4666_v17  ;;  %v3581_v17 = vld [vmem:[#allocation7 + $0x28] sm:$0xff]  ;;  %2059 = vmatpush.bf16.msrb.mxu0 %v3605_v63 }
 0x289   :  { %v1508_v32 = vmul.f32 %v1486_v12, %v4675_v23  ;;  %v1509_v5 = vmul.f32 %v1487_v13, %v4686_v33  ;;  %v1502_v36 = vmul.f32 %v1486_v12, %v4623_v43  ;;  %v1503_v53 = vmul.f32 %v1487_v13, %v4646_v46  ;;  %2179 = vmatpush.bf16.msrb.mxu1 %v3581_v17  ;;  %v3593_v63 = vld [vmem:[#allocation7 + $0x88] sm:$0xff] }
 0x28a   :  { %v1494_v37 = vrot.slane %v1491_v18, 7  ;;  %v1505_v39 = vmul.f32 %v1487_v13, %v4653_v49  ;;  %v1506_v23 = vmul.f32 %v1486_v12, %v4642_v19  ;;  %v1498_v33 = vmul.f32 %v1486_v12, %v4619_v16 }
 0x28b   :  { %v1500_v38 = vmul.f32 %v1486_v12, %v4612_v28  ;;  %v1499_v41 = vmul.f32 %v1487_v13, %v4644_v61  ;;  %v1501_v61 = vmul.f32 %v1487_v13, %v4634_v57  ;;  %v3598_v57 = vld [vmem:[#allocation7 + $0xb0] sm:$0xff] }
 0x28c   :  { %v1495_v20 = vsel %vm1480_vm2, %v1490_v2, %v1494_v37  ;;  %2034 = vmatpush.bf16.msra.mxu3 %v3598_v57  ;;  %v3585_v37 = vld [vmem:[#allocation7 + $0x48] sm:$0xff] }
 0x28d   :  { %v1497_v35 = vsub.f32 %v1484_v34, %v1495_v20  ;;  %2180 = vmatpush.bf16.msrb.mxu1 %v3580_v58  ;;  %v3596_v20 = vld [vmem:[#allocation7 + $0xa0] sm:$0xff]  ;;  %2207 = vmatpush.bf16.msrb.mxu2 %v3585_v37 }
 0x28f   :  { %v1511_v51 = vperm.slane %v1497_v35, 0  ;;  %v1512_v22 = vperm.slane %v1497_v35, 1  ;;  %v3604_v35 = vld [vmem:[#allocation7 + $0xe0] sm:$0xff] }
 0x290   :  { %2035 = vmatpush.bf16.msra.mxu3 %v3597_v48  ;;  %2060 = vmatpush.bf16.msrb.mxu0 %v3604_v35 }
 0x291   :  { %v1519_v4 = vadd.f32 %v1511_v51, %v1502_v36  ;;  %v1520_v52 = vadd.f32 %v1512_v22, %v1503_v53  ;;  %v1521_v43 = vadd.f32 %v1511_v51, %v1504_v10  ;;  %v1522_v56 = vadd.f32 %v1512_v22, %v1505_v39  ;;  %2181 = vmatpush.bf16.msrb.mxu1 %v3579_v3  ;;  %v3577_v10 = vld [vmem:[#allocation7 + $0x8] sm:$0xff] }
 0x292   :  { %v1523_v62 = vadd.f32 %v1511_v51, %v1506_v23  ;;  %v1524_v46 = vadd.f32 %v1512_v22, %v1507_v21  ;;  %v1525_v44 = vadd.f32 %v1511_v51, %v1508_v32  ;;  %v1526_v49 = vadd.f32 %v1512_v22, %v1509_v5 }
 0x293   :  { %v3272_v55 = vmul.f32 -1.442695, %v1519_v4  ;;  %v3273_v19 = vmul.f32 -1.442695, %v1520_v52  ;;  %v3274_v59 = vmul.f32 -1.442695, %v1521_v43  ;;  %v1515_v1 = vadd.f32 %v1511_v51, %v1498_v33 }
 0x294   :  { %v3275_v16 = vmul.f32 -1.442695, %v1522_v56  ;;  %v4710_v28 = vadd.f32 %v1511_v51, %v1500_v38  ;;  %v3276_v42 = vmul.f32 -1.442695, %v1523_v62  ;;  %v4713_v30 = vadd.f32 %v1512_v22, %v1499_v41  ;;  %v3584_v51 = vld [vmem:[#allocation7 + $0x40] sm:$0xff]  ;;  %2036 = vmatpush.bf16.msra.mxu3 %v3596_v20  ;;  %v3595_v4 = vld [vmem:[#allocation7 + $0x98] sm:$0xff] }
 0x295   :  { %3730 = vpow2.f32 %v3272_v55  ;;  %v3277_v6 = vmul.f32 -1.442695, %v1524_v46  ;;  %v4715_v50 = vadd.f32 %v1512_v22, %v1501_v61  ;;  %v3278_v9 = vmul.f32 -1.442695, %v1525_v44  ;;  %2182 = vmatpush.bf16.msrb.mxu1 %v3578_v14  ;;  %v3603_v52 = vld [vmem:[#allocation7 + $0xd8] sm:$0xff]  ;;  %2208 = vmatpush.bf16.msrb.mxu2 %v3584_v51 }
 0x296   :  { %3732 = vpow2.f32 %v3273_v19  ;;  %v3279_v11 = vmul.f32 -1.442695, %v1526_v49  ;;  %v3268_v12 = vmul.f32 -1.442695, %v1515_v1  ;;  %v3270_v33 = vmul.f32 -1.442695, %v4710_v28  ;;  %2061 = vmatpush.bf16.msrb.mxu0 %v3603_v52 }
 0x297   :  { %3734 = vpow2.f32 %v3274_v59  ;;  %v3269_v49 = vmul.f32 -1.442695, %v4713_v30  ;;  %v3271_v58 = vmul.f32 -1.442695, %v4715_v50  ;;  %v3594_v30 = vld [vmem:[#allocation7 + $0x90] sm:$0xff] }
 0x298   :  { %3736 = vpow2.f32 %v3275_v16  ;;  %2037 = vmatpush.bf16.msra.mxu3 %v3595_v4 }
 0x299   :  { %3738 = vpow2.f32 %v3276_v42  ;;  %2183 = vmatpush.bf16.msrb.mxu1 %v3577_v10 }
 0x29a   :  { %3740 = vpow2.f32 %v3277_v6  ;;  %v3602_v6 = vld [vmem:[#allocation7 + $0xd0] sm:$0xff] }
 0x29b   :  { %v3731_v13 = vpop.eup %3730  ;;  %3742 = vpow2.f32 %v3278_v9  ;;  %2062 = vmatpush.bf16.msrb.mxu0 %v3602_v6 }
 0x29c   :  { %v3733_v2 = vpop.eup %3732  ;;  %3744 = vpow2.f32 %v3279_v11  ;;  %v4717_v18 = vadd.f32 1.0, %v3731_v13  ;;  %2038 = vmatpush.bf16.msra.mxu3 %v3594_v30 }
 0x29d   :  { %v3735_v21 = vpop.eup %3734  ;;  %v4719_v34 = vadd.f32 1.0, %v3733_v2  ;;  %3746 = vpow2.f32 %v3268_v12  ;;  %2184 = vmatpush.bf16.msrb.mxu1 %v3576_v27  ;;  %v3601_v2 = vld [vmem:[#allocation7 + $0xc8] sm:$0xff] }
 0x29e   :  { %v3737_v32 = vpop.eup %3736  ;;  %v4721_v5 = vadd.f32 1.0, %v3735_v21  ;;  %3748 = vrcp.f32 %v4717_v18  ;;  %v1646_v62 = vand.u32 2147483648, %v4717_v18  ;;  %v1644_v19 = vand.u32 2147483647, %v4717_v18 }
 0x29f   :  { %v3739_v7 = vpop.eup %3738  ;;  %v4724_v29 = vadd.f32 1.0, %v3737_v32  ;;  %3750 = vrcp.f32 %v4719_v34  ;;  %vm1640_vm4 = vweird.f32 %v4717_v18  ;;  %v1659_v11 = vand.u32 2147483647, %v4719_v34  ;;  %2063 = vmatpush.bf16.msrb.mxu0 %v3601_v2 }
 0x2a0   :  { %v3741_v36 = vpop.eup %3740  ;;  %v4727_v17 = vadd.f32 1.0, %v3739_v7  ;;  %3752 = vrcp.f32 %v4721_v5  ;;  %v1676_v59 = vand.u32 2147483648, %v4721_v5  ;;  %v4775_v3 = vor.u32 1.1754944e-38, %v1646_v62  ;;  %2039 = vmatpush.bf16.msra.mxu3 %v3593_v63 }
 0x2a1   :  { %v3743_v53 = vpop.eup %3742  ;;  %v4730_v39 = vadd.f32 1.0, %v3741_v36  ;;  %3754 = vrcp.f32 %v4724_v29  ;;  %v1674_v9 = vand.u32 2147483647, %v4721_v5  ;;  %v1661_v15 = vand.u32 2147483648, %v4719_v34 }
 0x2a2   :  { %v3745_v22 = vpop.eup %3744  ;;  %v4733_v23 = vadd.f32 1.0, %v3743_v53  ;;  %3756 = vrcp.f32 %v4727_v17  ;;  %v4784_v14 = vor.u32 1.1754944e-38, %v1676_v59  ;;  %vm4794_vm11 = vcmp.eq.f32.partialorder %v1644_v19, 8.507059e+37 }
 0x2a3   :  { %v3747_v38 = vpop.eup %3746  ;;  %v4737_v41 = vadd.f32 1.0, %v3745_v22  ;;  %3758 = vrcp.f32 %v4730_v39  ;;  %vm1670_vm6 = vweird.f32 %v4721_v5  ;;  %vm4826_vm10 = vcmp.eq.f32.partialorder %v1674_v9, 8.507059e+37 }
 0x2a4   :  { %v4740_v43 = vpop.eup %3748  ;;  %3760 = vrcp.f32 %v4733_v23  ;;  %v4743_v56 = vadd.f32 1.0, %v3747_v38  ;;  %vm1655_vm2 = vweird.f32 %v4719_v34 }
 0x2a5   :  { %v4746_v46 = vpop.eup %3750  ;;  %v1636_v44 = vmul.f32 %v4740_v43, %v4717_v18  ;;  %3762 = vrcp.f32 %v4737_v41  ;;  %v1751_v61 = vand.u32 2147483648, %v4737_v41  ;;  %v1749_v8 = vand.u32 2147483647, %v4737_v41  ;;  %v3622_v18 = vld [vmem:[#allocation7 + $0x170] sm:$0xff] }
 0x2a6   :  { %v4753_v24 = vpop.eup %3752  ;;  %v4757_v55 = vmul.f32 %v4746_v46, %v4719_v34  ;;  %3764 = vpow2.f32 %v3270_v33  ;;  %v1584_v45 = vand.u32 2147483647, %v4743_v56  ;;  %vm1745_vm5 = vweird.f32 %v4737_v41 }
 0x2a7   :  { %v4761_v1 = vpop.eup %3754  ;;  %v1637_v16 = vsub.f32 1.0, %v1636_v44  ;;  %v1666_v28 = vmul.f32 %v4753_v24, %v4721_v5  ;;  %3766 = vrcp.f32 %v4743_v56  ;;  %v4791_v48 = vor.u32 1.1754944e-38, %v1751_v61 }
 0x2a8   :  { %v4767_v42 = vpop.eup %3756  ;;  %v4771_v26 = vmul.f32 %v4761_v1, %v4724_v29  ;;  %3768 = vpow2.f32 %v3269_v49  ;;  %v1652_v13 = vsub.f32 1.0, %v4757_v55  ;;  %vm4806_vm7 = vcmp.eq.f32.partialorder %v1749_v8, 8.507059e+37  ;;  %v3600_v55 = vld [vmem:[#allocation7 + $0xc0] sm:$0xff] }
 0x2a9   :  { %v4777_v54 = vpop.eup %3758  ;;  %v1667_v50 = vsub.f32 1.0, %v1666_v28  ;;  %3770 = vpow2.f32 %v3271_v58  ;;  %v1638_v10 = vmul.f32 %v4740_v43, %v1637_v16  ;;  %v4802_v7 = vmul.f32 %v4767_v42, %v4727_v17  ;;  %v3592_v58 = vld [vmem:[#allocation7 + $0x80] sm:$0xff]  ;;  %2064 = vmatpush.bf16.msrb.mxu0 %v3600_v55 }
 0x2aa   :  { %v4781_v57 = vpop.eup %3760  ;;  %v1682_v32 = vsub.f32 1.0, %v4771_v26  ;;  %vm1580_vm8 = vweird.f32 %v4743_v56  ;;  %v1586_v36 = vand.u32 2147483648, %v4743_v56  ;;  %vm1641_vm9 = vweird.f32 %v4740_v43  ;;  %2040 = vmatpush.bf16.msra.mxu3 %v3592_v58 }
 0x2ab   :  { %v4787_v12 = vpop.eup %3762  ;;  %v1639_v51 = vadd.f32 %v4740_v43, %v1638_v10  ;;  %v1668_v22 = vmul.f32 %v4753_v24, %v1667_v50  ;;  %v4819_v33 = vmul.f32 %v4777_v54, %v4730_v39  ;;  %vm4822_vm12 = vcmp.eq.f32.partialorder %v1584_v45, 8.507059e+37  ;;  %vm4845_vm15 = vmor %vm1640_vm4, %vm1641_vm9 }
 0x2ac   :  { %v3765_v37 = vpop.eup %3764  ;;  %v1741_v20 = vmul.f32 %v4787_v12, %v4737_v41  ;;  %v4832_v49 = vmul.f32 %v4781_v57, %v4733_v23  ;;  %vm1746_vm13 = vweird.f32 %v4787_v12  ;;  %vm1671_vm14 = vweird.f32 %v4753_v24 }
 0x2ad   :  { %v3767_v27 = vpop.eup %3766  ;;  %v4812_v53 = vadd.f32 1.0, %v3765_v37  ;;  %v1643_v6 = vsel %vm4845_vm15, %v4740_v43, %v1639_v51  ;;  %v1669_v50 = vadd.f32 %v4753_v24, %v1668_v22  ;;  %vm4862_vm1 = vmor %vm1745_vm5, %vm1746_vm13  ;;  %v1587_v2 = vor.u32 1.1754944e-38, %v1586_v36 }
 0x2ae   :  { %v1742_v38 = vsub.f32 1.0, %v1741_v20  ;;  %v1576_v4 = vmul.f32 %v3767_v27, %v4743_v56  ;;  %v3769_v44 = vpop.eup %3768  ;;  %vm1581_vm0 = vweird.f32 %v3767_v27  ;;  %v1653_v10 = vmul.f32 %v4746_v46, %v1652_v13  ;;  %vm4883_vm4 = vmor %vm1670_vm6, %vm1671_vm14 }
 0x2af   :  { %3772 = vrcp.f32 %v4812_v53  ;;  %v3771_v19 = vpop.eup %3770  ;;  %v1616_v28 = vand.u32 2147483648, %v4812_v53  ;;  %v4839_v61 = vadd.f32 1.0, %v3769_v44  ;;  %v1614_v63 = vand.u32 2147483647, %v4812_v53  ;;  %vm1582_vm5 = vmor %vm1580_vm8, %vm1581_vm0 }
 0x2b0   :  { %v1743_v59 = vmul.f32 %v4787_v12, %v1742_v38  ;;  %v1577_v16 = vsub.f32 1.0, %v1576_v4  ;;  %v4849_v30 = vadd.f32 1.0, %v3771_v19  ;;  %vm1610_vm3 = vweird.f32 %v4812_v53 }
 0x2b1   :  { %3774 = vrcp.f32 %v4839_v61  ;;  %v1601_v43 = vand.u32 2147483648, %v4839_v61  ;;  %v4874_v20 = vor.u32 1.1754944e-38, %v1616_v28  ;;  %v1648_v36 = vsel %vm4794_vm11, %v4775_v3, %v1643_v6 }
 0x2b2   :  { %v1744_v9 = vadd.f32 %v4787_v12, %v1743_v59  ;;  %v1578_v45 = vmul.f32 %v3767_v27, %v1577_v16  ;;  %3776 = vrcp.f32 %v4849_v30  ;;  %v1599_v3 = vand.u32 2147483647, %v4839_v61  ;;  %v3623_v59 = vld [vmem:[#allocation7 + $0x178] sm:$0xff] }
 0x2b3   :  { %v1631_v21 = vand.u32 2147483648, %v4849_v30  ;;  %v1673_v5 = vsel %vm4883_vm4, %v4753_v24, %v1669_v50  ;;  %vm4902_vm11 = vcmp.eq.f32.partialorder %v1659_v11, 8.507059e+37  ;;  %vm4911_vm6 = vcmp.eq.f32.partialorder %v1614_v63, 8.507059e+37  ;;  %v3615_v16 = vld [vmem:[#allocation7 + $0x138] sm:$0xff]  ;;  %3624 = vmatpush.bf16.msra.mxu1 %v3623_v59  ;;  %2415 = vmatpush.bf16.msra.mxu0 %v3623_v59 }
 0x2b4   :  { %v1748_v37 = vsel %vm4862_vm1, %v4787_v12, %v1744_v9  ;;  %v1579_v41 = vadd.f32 %v3767_v27, %v1578_v45  ;;  %v1629_v4 = vand.u32 2147483647, %v4849_v30  ;;  %vm1595_vm8 = vweird.f32 %v4839_v61  ;;  %2391 = vmatpush.bf16.msrb.mxu3 %v3615_v16 }
 0x2b5   :  { %v4887_v51 = vpop.eup %3772  ;;  %v1753_v12 = vsel %vm4806_vm7, %v4791_v48, %v1748_v37  ;;  %v4920_v11 = vor.u32 1.1754944e-38, %v1601_v43  ;;  %vm1625_vm9 = vweird.f32 %v4849_v30  ;;  %v1759_v52 = vmul.f32 %v4621_v40, %v1648_v36  ;;  %v3614_v37 = vld [vmem:[#allocation7 + $0x130] sm:$0xff] }
 0x2b6   :  { %v4907_v48 = vmul.f32 %v4670_v0, %v1753_v12  ;;  %v1583_v35 = vsel %vm1582_vm5, %v3767_v27, %v1579_v41  ;;  %v1606_v56 = vmul.f32 %v4887_v51, %v4812_v53  ;;  %vm1611_vm7 = vweird.f32 %v4887_v51 }
 0x2b7   :  { %v1588_v24 = vsel %vm4822_vm12, %v1587_v2, %v1583_v35  ;;  %v1678_v27 = vsel %vm4826_vm10, %v4784_v14, %v1673_v5  ;;  %v4925_v44 = vpop.eup %3774  ;;  %vm4938_vm12 = vcmp.eq.f32.partialorder %v1599_v3, 8.507059e+37  ;;  %v1632_v8 = vor.u32 1.1754944e-38, %v1631_v21  ;;  %1771 = vst [vmem:[#allocation12 + $0x20] sm:$0xff] %v1759_v52  ;;  %vm1612_vm4 = vmor %vm1610_vm3, %vm1611_vm7  ;;  %3625 = vmatpush.bf16.msra.mxu1 %v3622_v18  ;;  %v3621_v35 = vld [vmem:[#allocation7 + $0x168] sm:$0xff]  ;;  %2416 = vmatpush.bf16.msra.mxu0 %v3622_v18 }
 0x2b8   :  { %1778 = vst [vmem:[#allocation12 + $0x58] sm:$0xff] %v4907_v48  ;;  %v1607_v58 = vsub.f32 1.0, %v1606_v56  ;;  %v4929_v55 = vmul.f32 %v4616_v25, %v1588_v24  ;;  %v1761_v19 = vmul.f32 %v4629_v47, %v1678_v27  ;;  %v4934_v28 = vpop.eup %3776  ;;  %v1591_v14 = vmul.f32 %v4925_v44, %v4839_v61  ;;  %2392 = vmatpush.bf16.msrb.mxu3 %v3614_v37 }
 0x2b9   :  { %v1654_v6 = vadd.f32 %v4746_v46, %v1653_v10  ;;  %vm1656_vm10 = vweird.f32 %v4746_v46  ;;  %vm1596_vm13 = vweird.f32 %v4925_v44  ;;  %v1621_v9 = vmul.f32 %v4934_v28, %v4849_v30 }
 0x2ba   :  { %v1608_v50 = vmul.f32 %v4887_v51, %v1607_v58  ;;  %1767 = vst [vmem:[#allocation12] sm:$0xff] %v4929_v55  ;;  %vm4949_vm14 = vcmp.eq.f32.partialorder %v1629_v4, 8.507059e+37  ;;  %v4953_v63 = vpack.c.bf16 %v1761_v19, %v1759_v52  ;;  %v1592_v2 = vsub.f32 1.0, %v1591_v14  ;;  %vm1657_vm0 = vmor %vm1655_vm2, %vm1656_vm10 }
 0x2bb   :  { %v1662_v43 = vor.u32 1.1754944e-38, %v1661_v15  ;;  %v1683_v10 = vmul.f32 %v4761_v1, %v1682_v32  ;;  %vm1685_vm15 = vweird.f32 %v4724_v29  ;;  %v1622_v36 = vsub.f32 1.0, %v1621_v9  ;;  %1773 = vst [vmem:[#allocation12 + $0x30] sm:$0xff] %v1761_v19  ;;  %vm1597_vm5 = vmor %vm1595_vm8, %vm1596_vm13  ;;  %3626 = vmatpush.bf16.msra.mxu1 %v3621_v35  ;;  %v3620_v19 = vld [vmem:[#allocation7 + $0x160] sm:$0xff]  ;;  %2417 = vmatpush.bf16.msra.mxu0 %v3621_v35 }
 0x2bc   :  { %v1609_v41 = vadd.f32 %v4887_v51, %v1608_v50  ;;  %v1883_v13 = vshll.u32 %v4953_v63, 16  ;;  %vm1686_vm1 = vweird.f32 %v4761_v1  ;;  %v1593_v26 = vmul.f32 %v4925_v44, %v1592_v2 }
 0x2bd   :  { %v1658_v15 = vsel %vm1657_vm0, %v4746_v46, %v1654_v6  ;;  %v1684_v32 = vadd.f32 %v4761_v1, %v1683_v10  ;;  %v1689_v12 = vand.u32 2147483647, %v4724_v29  ;;  %v1623_v34 = vmul.f32 %v4934_v28, %v1622_v36  ;;  %vm4983_vm3 = vmor %vm1685_vm15, %vm1686_vm1  ;;  %v3619_v10 = vld [vmem:[#allocation7 + $0x158] sm:$0xff] }
 0x2be   :  { %v1613_v3 = vsel %vm1612_vm4, %v4887_v51, %v1609_v41  ;;  %vm1626_vm2 = vweird.f32 %v4934_v28  ;;  %v1663_v21 = vsel %vm4902_vm11, %v1662_v43, %v1658_v15  ;;  %v1594_v51 = vadd.f32 %v4925_v44, %v1593_v26  ;;  %v3613_v43 = vld [vmem:[#allocation7 + $0x128] sm:$0xff]  ;;  %v3612_v15 = vld [vmem:[#allocation7 + $0x120] sm:$0xff] }
 0x2bf   :  { %v1618_v46 = vsel %vm4911_vm6, %v4874_v20, %v1613_v3  ;;  %v4991_v5 = vrot.slane %v1883_v13, 1  ;;  %v1688_v22 = vsel %vm4983_vm3, %v4761_v1, %v1684_v32  ;;  %v1624_v20 = vadd.f32 %v4934_v28, %v1623_v34  ;;  %vm1627_vm11 = vmor %vm1625_vm9, %vm1626_vm2  ;;  %3627 = vmatpush.bf16.msra.mxu1 %v3620_v19  ;;  %2418 = vmatpush.bf16.msra.mxu0 %v3620_v19  ;;  %v1832_v13 = vld [vmem:[#allocation12 + $0x68] sm:$0x1] }
 0x2c0   :  { %v4997_v56 = vmul.f32 %v4614_v31, %v1618_v46  ;;  %v1691_v38 = vand.u32 2147483648, %v4724_v29  ;;  %v1760_v4 = vmul.f32 %v4621_v40, %v1663_v21  ;;  %v1598_v24 = vsel %vm1597_vm5, %v4925_v44, %v1594_v51  ;;  %2393 = vmatpush.bf16.msrb.mxu3 %v3613_v43  ;;  %v1831_v43 = vld [vmem:[#allocation12 + $0x60] sm:$0x1] }
 0x2c1   :  { %v1819_v1 = vld [vmem:[#allocation12] sm:$0xfe]  ;;  %vm1874_vm6 = vsmask.f32 7424  ;;  %vm5011_vm7 = vcmp.eq.f32.partialorder %v1689_v12, 8.507059e+37  ;;  %v1697_v61 = vsub.f32 1.0, %v4802_v7  ;;  %vm1701_vm8 = vweird.f32 %v4767_v42 }
 0x2c2   :  { %1769 = vst [vmem:[#allocation12 + $0x10] sm:$0xff] %v4997_v56  ;;  %v1781_v40 = vpack.c.bf16 %v4997_v56, %v4929_v55  ;;  %v1603_v29 = vsel %vm4938_vm12, %v4920_v11, %v1598_v24  ;;  %v1628_v30 = vsel %vm1627_vm11, %v4934_v28, %v1624_v20  ;;  %v1833_v44 = vpack.c.bf16 %v4997_v56, %v1819_v1  ;;  %v2225_v27 = vld [vmem:[#allocation12] sm:$0xfc] }
 0x2c3   :  { %v1633_v58 = vsel %vm4949_vm14, %v1632_v8, %v1628_v30  ;;  %v1756_v7 = vmul.f32 %v4616_v25, %v1603_v29  ;;  %v1692_v52 = vor.u32 1.1754944e-38, %v1691_v38  ;;  %1772 = vst [vmem:[#allocation12 + $0x28] sm:$0xff] %v1760_v4  ;;  %v1698_v59 = vmul.f32 %v4767_v42, %v1697_v61  ;;  %3628 = vmatpush.bf16.msra.mxu1 %v3619_v10 }
 0x2c4   :  { %2185 = vmatmul.bf16.vlgmr.msrb.gmra.mxu1 %v1781_v40  ;;  %v5030_v55 = vmul.f32 %v4614_v31, %v1633_v58  ;;  %v1878_v11 = vshll.u32 %v1833_v44, 16  ;;  %vm1700_vm9 = vweird.f32 %v4727_v17  ;;  %v1704_v16 = vand.u32 2147483647, %v4727_v17  ;;  %2419 = vmatpush.bf16.msra.mxu0 %v3619_v10  ;;  %v3608_v10 = vld [vmem:[#allocation7 + $0x100] sm:$0xff] }
 0x2c5   :  { %1768 = vst [vmem:[#allocation12 + $0x8] sm:$0xff] %v1756_v7  ;;  %v1693_v25 = vsel %vm5011_vm7, %v1692_v52, %v1688_v22  ;;  %v1699_v28 = vadd.f32 %v4767_v42, %v1698_v59  ;;  %v1706_v14 = vand.u32 2147483648, %v4727_v17  ;;  %v1727_v62 = vsub.f32 1.0, %v4832_v49  ;;  %vm5044_vm12 = vmor %vm1700_vm9, %vm1701_vm8  ;;  %2394 = vmatpush.bf16.msrb.mxu3 %v3612_v15  ;;  %v3616_v59 = vld [vmem:[#allocation7 + $0x140] sm:$0xff] }
 0x2c6   :  { %1770 = vst [vmem:[#allocation12 + $0x18] sm:$0xff] %v5030_v55  ;;  %v1782_v31 = vpack.c.bf16 %v5030_v55, %v1756_v7  ;;  %v1876_v8 = vshrl.u32 %v1833_v44, 16  ;;  %v1880_v6 = vrot.slane %v1878_v11, 1  ;;  %v1762_v50 = vmul.f32 %v4629_v47, %v1693_v25 }
 0x2c7   :  { %v1703_v17 = vsel %vm5044_vm12, %v4767_v42, %v1699_v28  ;;  %vm1705_vm10 = vcmp.eq.f32.partialorder %v1704_v16, 8.507059e+37  ;;  %v1707_v49 = vor.u32 1.1754944e-38, %v1706_v14  ;;  %v1728_v45 = vmul.f32 %v4781_v57, %v1727_v62 }
 0x2c8   :  { %2209 = vmatmul.bf16.vlgmr.msrb.gmra.mxu2 %v1782_v31  ;;  %v1881_v18 = vor.u32 %v1880_v6, %v1876_v8  ;;  %1774 = vst [vmem:[#allocation12 + $0x38] sm:$0xff] %v1762_v50  ;;  %v5052_v2 = vpack.c.bf16 %v1762_v50, %v1760_v4  ;;  %vm1731_vm13 = vweird.f32 %v4781_v57  ;;  %v1734_v47 = vand.u32 2147483647, %v4733_v23  ;;  %v3617_v4 = vld [vmem:[#allocation7 + $0x148] sm:$0xff]  ;;  %v3610_v31 = vld [vmem:[#allocation7 + $0x110] sm:$0xff] }
 0x2c9   :  { %v1708_v37 = vsel %vm1705_vm10, %v1707_v49, %v1703_v17  ;;  %v1729_v41 = vadd.f32 %v4781_v57, %v1728_v45  ;;  %vm1730_vm14 = vweird.f32 %v4733_v23  ;;  %v1736_v42 = vand.u32 2147483648, %v4733_v23  ;;  %v3618_v23 = vld [vmem:[#allocation7 + $0x150] sm:$0xff] }
 0x2ca   :  { %v1886_v36 = vsel %vm1874_vm6, %v1881_v18, %v4991_v5  ;;  %vm5061_vm15 = vmor %vm1730_vm14, %vm1731_vm13  ;;  %v1763_v26 = vmul.f32 %v4640_v60, %v1708_v37  ;;  %v1712_v3 = vsub.f32 1.0, %v4819_v33  ;;  %vm1735_vm0 = vcmp.eq.f32.partialorder %v1734_v47, 8.507059e+37  ;;  %v3611_v33 = vld [vmem:[#allocation7 + $0x118] sm:$0xff]  ;;  %3629 = vmatpush.bf16.msra.mxu1 %v3618_v23  ;;  %2420 = vmatpush.bf16.msra.mxu0 %v3618_v23 }
 0x2cb   :  { %2041 = vmatmul.bf16.vlgmr.msra.gmra.mxu3 %v1886_v36  ;;  %v1733_v32 = vsel %vm5061_vm15, %v4781_v57, %v1729_v41  ;;  %v1737_v12 = vor.u32 1.1754944e-38, %v1736_v42  ;;  %vm1716_vm1 = vweird.f32 %v4777_v54  ;;  %v1719_v21 = vand.u32 2147483647, %v4730_v39 }
 0x2cc   :  { %v1820_v34 = vld [vmem:[#allocation12 + $0x8] sm:$0xfe]  ;;  %1775 = vst [vmem:[#allocation12 + $0x40] sm:$0xff] %v1763_v26  ;;  %v1713_v51 = vmul.f32 %v4777_v54, %v1712_v3  ;;  %v1721_v57 = vand.u32 2147483648, %v4730_v39  ;;  %v1895_v20 = vshll.u32 %v5052_v2, 16  ;;  %vm1715_vm4 = vweird.f32 %v4730_v39  ;;  %2395 = vmatpush.bf16.msrb.mxu3 %v3611_v33 }
 0x2cd   :  { %v1834_v53 = vpack.c.bf16 %v5030_v55, %v1820_v34  ;;  %v1738_v46 = vsel %vm1735_vm0, %v1737_v12, %v1733_v32  ;;  %v1899_v1 = vshrl.u32 %v4953_v63, 16  ;;  %vm1717_vm2 = vmor %vm1715_vm4, %vm1716_vm1  ;;  %vm1720_vm3 = vcmp.eq.f32.partialorder %v1719_v21, 8.507059e+37  ;;  %v2226_v30 = vld [vmem:[#allocation12 + $0x8] sm:$0xfc] }
 0x2ce   :  { %v1765_v22 = vmul.f32 %v4670_v0, %v1738_v46  ;;  %v1714_v38 = vadd.f32 %v4777_v54, %v1713_v51  ;;  %v1722_v0 = vor.u32 1.1754944e-38, %v1721_v57  ;;  %v1897_v52 = vrot.slane %v1895_v20, 1  ;;  %3630 = vmatpush.bf16.msra.mxu1 %v3617_v4  ;;  %2421 = vmatpush.bf16.msra.mxu0 %v3617_v4  ;;  %v2227_v57 = vld [vmem:[#allocation12 + $0x60] sm:$0x3] }
 0x2cf   :  { %v1890_v35 = vshll.u32 %v1834_v53, 16  ;;  %v1888_v61 = vshrl.u32 %v1834_v53, 16  ;;  %v1901_v39 = vor.u32 %v1899_v1, %v4991_v5  ;;  %v1907_v16 = vshrl.u32 %v5052_v2, 16 }
 0x2d0   :  { %1777 = vst [vmem:[#allocation12 + $0x50] sm:$0xff] %v1765_v22  ;;  %v5079_v24 = vpack.c.bf16 %v1765_v22, %v1763_v26  ;;  %v1718_v29 = vsel %vm1717_vm2, %v4777_v54, %v1714_v38  ;;  %v2229_v54 = vpack.c.bf16 %v4997_v56, %v2225_v27  ;;  %v2230_v5 = vpack.c.bf16 %v5030_v55, %v2226_v30  ;;  %v2228_v26 = vld [vmem:[#allocation12 + $0x68] sm:$0x3] }
 0x2d1   :  { %v1892_v40 = vrot.slane %v1890_v35, 1  ;;  %v1723_v58 = vsel %vm1720_vm3, %v1722_v0, %v1718_v29  ;;  %v2276_v14 = vrot.slane %v4953_v63, 1  ;;  %vm2274_vm5 = vcmask 1046528   ;;  %2396 = vmatpush.bf16.msrb.mxu3 %v3610_v31 }
 0x2d2   :  { %v1903_v44 = vshll.u32 %v5079_v24, 16  ;;  %v1764_v19 = vmul.f32 %v4640_v60, %v1723_v58  ;;  %v2279_v60 = vrot.slane %v5052_v2, 1  ;;  %v2275_v8 = vrot.slane %v2229_v54, 1  ;;  %3631 = vmatpush.bf16.msra.mxu1 %v3616_v59  ;;  %2422 = vmatpush.bf16.msra.mxu0 %v3616_v59 }
 0x2d3   :  { %v1893_v7 = vor.u32 %v1892_v40, %v1888_v61  ;;  %v2278_v6 = vrot.slane %v2230_v5, 1  ;;  %v1909_v50 = vor.u32 %v1907_v16, %v1897_v52  ;;  %v2281_v9 = vrot.slane %v5079_v24, 1 }
 0x2d4   :  { %2190 = vmatmul.bf16.gmra.mxu1 %v4953_v63  ;;  %v1905_v11 = vrot.slane %v1903_v44, 1  ;;  %1776 = vst [vmem:[#allocation12 + $0x48] sm:$0xff] %v1764_v19  ;;  %v1838_v28 = vpack.c.bf16 %v4907_v48, %v1764_v19  ;;  %v3609_v48 = vld [vmem:[#allocation7 + $0x108] sm:$0xff]  ;;  %v2277_v63 = vsel %vm2274_vm5, %v2275_v8, %v2276_v14  ;;  %v1839_v37 = vpack.c.bf16 %v1831_v43, %v1831_v43 }
 0x2d5   :  { %v1898_v25 = vsel %vm1874_vm6, %v1893_v7, %v1897_v52  ;;  %v2280_v17 = vsel %vm2274_vm5, %v2278_v6, %v2279_v60  ;;  %v2282_v45 = vsel %vm2274_vm5, %v2276_v14, %v2281_v9  ;;  %2397 = vmatpush.bf16.msrb.mxu3 %v3609_v48  ;;  %v1915_v41 = vshrl.u32 %v5079_v24, 16  ;;  %2824 = dma.vmem_to_hbm [thread:$0]  %s2817_s4, 1792, %s2819_s25, [#allocation13], %s4073_s30, %s4073_s30, %s4074_s6  }
 0x2d6   :  { %2065 = vmatmul.bf16.vlgmr.msrb.gmra.mxu0 %v1898_v25  ;;  %v1906_v62 = vsel %vm1874_vm6, %v1901_v39, %v1905_v11  ;;  %v1911_v56 = vshll.u32 %v1838_v28, 16  ;;  %v2283_v55 = vrot.slane %v1838_v28, 1  ;;  %v1840_v15 = vpack.c.bf16 %v1832_v13, %v1832_v13  ;;  %s2856_s25 = sshll.u32 %s5288_s20, 4  ;;  %s2857_s25 = int_to_ptr.hbm [resolvable:$true] %s2856_s25 }
 0x2d7   :  { %v1917_v42 = vor.u32 %v1915_v41, %v1905_v11  ;;  %v2232_v12 = vpack.c.bf16 %v2228_v26, %v2228_v26  ;;  %v1923_v23 = vshrl.u32 %v1838_v28, 16  ;;  %v2231_v22 = vpack.c.bf16 %v2227_v57, %v2227_v57 }
 0x2d8   :  { %2214 = vmatmul.bf16.gmra.mxu2 %v5052_v2  ;;  %v1913_v49 = vrot.slane %v1911_v56, 1  ;;  %v2284_v18 = vsel %vm2274_vm5, %v2279_v60, %v2283_v55  ;;  %v1919_v2 = vshll.u32 %v1839_v37, 16  ;;  %v1927_v3 = vshll.u32 %v1840_v15, 16  ;;  %v3690_v37 = vpop.permute.xlu1 %3689 }
 0x2d9   :  { %2398 = vmatpush.bf16.msrb.mxu3 %v3608_v10  ;;  %v2287_v34 = vrot.slane %v2232_v12, 1  ;;  %v2285_v33 = vrot.slane %v2231_v22, 1  ;;  %v3685_v10 = vpop.permute.xlu0 %3684 }
 0x2da   :  { %v1914_v47 = vsel %vm1874_vm6, %v1909_v50, %v1913_v49  ;;  %v1921_v36 = vrot.slane %v1919_v2, 1  ;;  %v1925_v21 = vor.u32 %v1923_v23, %v1913_v49  ;;  %v1929_v53 = vrot.slane %v1927_v3, 1 }
 0x2db   :  { %2046 = vmatmul.bf16.gmra.mxu3 %v1906_v62  ;;  %v2288_v46 = vsel %vm2274_vm5, %v2283_v55, %v2287_v34  ;;  %v2286_v35 = vsel %vm2274_vm5, %v2281_v9, %v2285_v33  ;;  %v3687_v12 = vunpack.i.h.bf16 %v3685_v10 }
 0x2dc   :  { %v1922_v32 = vsel %vm1874_vm6, %v1917_v42, %v1921_v36  ;;  %v1930_v51 = vsel %vm1874_vm6, %v1925_v21, %v1929_v53  ;;  %v3686_v21 = vunpack.i.l.bf16 %v3685_v10  ;;  %v3691_v53 = vunpack.i.l.bf16 %v3690_v37 }
 0x2e4   :  { %2195 = vmatmul.bf16.gmra.mxu1 %v5079_v24 }
 0x2e6   :  { %2070 = vmatmul.bf16.gmra.mxu0 %v1914_v47 }
 0x2e8   :  { %2219 = vmatmul.bf16.gmra.mxu2 %v1838_v28 }
 0x2eb   :  { %2051 = vmatmul.bf16.gmra.mxu3 %v1922_v32 }
 0x2f4   :  { %2433 = vmatmul.bf16.vlgmr.msra.gmra.mxu1 %v2288_v46 }
 0x2f6   :  { %2075 = vmatmul.bf16.gmra.mxu0 %v1930_v51 }
 0x2fb   :  { %2399 = vmatmul.bf16.vlgmr.msrb.gmra.mxu3 %v2277_v63 }
 0x306   :  { %2423 = vmatmul.bf16.vlgmr.msra.gmra.mxu0 %v2280_v17 }
 0x30b   :  { %2404 = vmatmul.bf16.gmra.mxu3 %v2282_v45 }
 0x316   :  { %2428 = vmatmul.bf16.gmra.mxu0 %v2284_v18 }
 0x31b   :  { %2409 = vmatmul.bf16.gmra.mxu3 %v2286_v35 }
 0x341   :  { %v2186_v27 = vpop.f32.mrf.mxu1 }
 0x349   :  { %v2188_v29 = vpop.f32.mrf.mxu1 }
 0x34b   :  { %v2210_v44 = vpop.f32.mrf.mxu2 }
 0x34e   :  { %v2042_v20 = vpop.f32.mrf.mxu3 }
 0x351   :  { %v2191_v7 = vpop.f32.mrf.mxu1 }
 0x353   :  { %v2066_v38 = vpop.f32.mrf.mxu0  ;;  %v2212_v59 = vpop.f32.mrf.mxu2 }
 0x354   :  { %v2067_v4 = vadd.f32 %v2066_v38, %v2042_v20  ;;  %v3695_v20 = vpop.permute.xlu2 %3694  ;;  %v3692_v38 = vunpack.i.h.bf16 %v3690_v37 }
 0x356   :  { %v2044_v24 = vpop.f32.mrf.mxu3  ;;  %v2187_v48 = vadd.f32 %v2186_v27, %v2067_v4  ;;  %v3696_v27 = vunpack.i.l.bf16 %v3695_v20 }
 0x358   :  { %v2211_v42 = vadd.f32 %v2210_v44, %v2187_v48 }
 0x359   :  { %v2193_v11 = vpop.f32.mrf.mxu1 }
 0x35b   :  { %v2068_v1 = vpop.f32.mrf.mxu0  ;;  %v2215_v25 = vpop.f32.mrf.mxu2 }
 0x35c   :  { %v2069_v62 = vadd.f32 %v2068_v1, %v2044_v24 }
 0x35e   :  { %v2047_v0 = vpop.f32.mrf.mxu3  ;;  %v2189_v56 = vadd.f32 %v2188_v29, %v2069_v62 }
 0x360   :  { %v2213_v47 = vadd.f32 %v2212_v59, %v2189_v56 }
 0x361   :  { %v2196_v28 = vpop.f32.mrf.mxu1 }
 0x363   :  { %v2071_v61 = vpop.f32.mrf.mxu0  ;;  %v2217_v31 = vpop.f32.mrf.mxu2 }
 0x364   :  { %v2072_v6 = vadd.f32 %v2071_v61, %v2047_v0 }
 0x366   :  { %v2049_v40 = vpop.f32.mrf.mxu3  ;;  %v2192_v63 = vadd.f32 %v2191_v7, %v2072_v6 }
 0x368   :  { %v2216_v13 = vadd.f32 %v2215_v25, %v2192_v63 }
 0x369   :  { %v2198_v8 = vpop.f32.mrf.mxu1 }
 0x36b   :  { %v2073_v30 = vpop.f32.mrf.mxu0  ;;  %v2220_v2 = vpop.f32.mrf.mxu2 }
 0x36c   :  { %v2074_v55 = vadd.f32 %v2073_v30, %v2049_v40 }
 0x36e   :  { %v2052_v39 = vpop.f32.mrf.mxu3  ;;  %v2194_v45 = vadd.f32 %v2193_v11, %v2074_v55 }
 0x370   :  { %v2218_v34 = vadd.f32 %v2217_v31, %v2194_v45 }
 0x371   :  { %v2434_v15 = vpop.f32.mrf.mxu1 }
 0x373   :  { %v2076_v58 = vpop.f32.mrf.mxu0  ;;  %v2222_v29 = vpop.f32.mrf.mxu2 }
 0x374   :  { %v2077_v17 = vadd.f32 %v2076_v58, %v2052_v39 }
 0x376   :  { %v2054_v52 = vpop.f32.mrf.mxu3  ;;  %v2197_v41 = vadd.f32 %v2196_v28, %v2077_v17 }
 0x378   :  { %v2221_v33 = vadd.f32 %v2220_v2, %v2197_v41 }
 0x379   :  { %v2436_v7 = vpop.f32.mrf.mxu1 }
 0x37b   :  { %v2078_v19 = vpop.f32.mrf.mxu0 }
 0x37c   :  { %v2079_v46 = vadd.f32 %v2078_v19, %v2054_v52 }
 0x37e   :  { %v2400_v16 = vpop.f32.mrf.mxu3  ;;  %v2199_v0 = vadd.f32 %v2198_v8, %v2079_v46 }
 0x380   :  { %v2223_v52 = vadd.f32 %v2222_v29, %v2199_v0 }
 0x383   :  { %v2424_v54 = vpop.f32.mrf.mxu0 }
 0x384   :  { %v2425_v18 = vadd.f32 %v2424_v54, %v2400_v16 }
 0x386   :  { %v2402_v5 = vpop.f32.mrf.mxu3  ;;  %v5112_v3 = vadd.f32 %v2425_v18, %v2211_v42 }
 0x388   :  { %v2499_v4 = vmul.f32 %v3686_v21, %v5112_v3 }
 0x38a   :  { %v2516_v30 = vmul.f32 %v2499_v4, %v5112_v3 }
 0x38b   :  { %v2426_v14 = vpop.f32.mrf.mxu0 }
 0x38c   :  { %v2427_v49 = vadd.f32 %v2426_v14, %v2402_v5  ;;  %v3697_v5 = vunpack.i.h.bf16 %v3695_v20  ;;  %v2551_v20 = vld [vmem:[%s5279_s11] sm:$0x1] }
 0x38e   :  { %v2405_v60 = vpop.f32.mrf.mxu3  ;;  %v5110_v36 = vadd.f32 %v2427_v49, %v2213_v47 }
 0x390   :  { %v2500_v57 = vmul.f32 %v3687_v12, %v5110_v36 }
 0x392   :  { %v2517_v61 = vmul.f32 %v2500_v57, %v5110_v36  ;;  %v2505_v39 = vadd.f32 %v2500_v57, %v2499_v4 }
 0x393   :  { %v2429_v50 = vpop.f32.mrf.mxu0 }
 0x394   :  { %v2430_v43 = vadd.f32 %v2429_v50, %v2405_v60  ;;  %v2522_v59 = vadd.f32 %v2517_v61, %v2516_v30 }
 0x396   :  { %v2407_v9 = vpop.f32.mrf.mxu3  ;;  %v5114_v23 = vadd.f32 %v2430_v43, %v2216_v13 }
 0x398   :  { %v2501_v24 = vmul.f32 %v3691_v53, %v5114_v23 }
 0x39a   :  { %v2518_v44 = vmul.f32 %v2501_v24, %v5114_v23  ;;  %v2506_v11 = vadd.f32 %v2505_v39, %v2501_v24 }
 0x39b   :  { %v2431_v26 = vpop.f32.mrf.mxu0 }
 0x39c   :  { %v2432_v32 = vadd.f32 %v2431_v26, %v2407_v9  ;;  %v2523_v25 = vadd.f32 %v2522_v59, %v2518_v44 }
 0x39e   :  { %v2410_v51 = vpop.f32.mrf.mxu3  ;;  %v5117_v22 = vadd.f32 %v2432_v32, %v2218_v34 }
 0x39f   :  { %v2435_v35 = vadd.f32 %v2434_v15, %v2410_v51  ;;  %v2538_v51 = vld [vmem:[%s5278_s10] sm:$0x1] }
 0x3a0   :  { %v2502_v40 = vmul.f32 %v3692_v38, %v5117_v22 }
 0x3a1   :  { %v5121_v1 = vadd.f32 %v2435_v35, %v2221_v33 }
 0x3a2   :  { %v2519_v16 = vmul.f32 %v2502_v40, %v5117_v22  ;;  %v2507_v28 = vadd.f32 %v2506_v11, %v2502_v40 }
 0x3a3   :  { %v2503_v58 = vmul.f32 %v3696_v27, %v5121_v1 }
 0x3a4   :  { %v2524_v62 = vadd.f32 %v2523_v25, %v2519_v16 }
 0x3a5   :  { %v2520_v14 = vmul.f32 %v2503_v58, %v5121_v1  ;;  %v2508_v31 = vadd.f32 %v2507_v28, %v2503_v58  ;;  %v2732_v28 = vld [vmem:[#allocation8 + $0x78] sm:$0xff] }
 0x3a6   :  { %v2412_v19 = vpop.f32.mrf.mxu3  ;;  %2737 = vmatpush.msra.mxu2 %v2732_v28 }
 0x3a7   :  { %v2437_v54 = vadd.f32 %v2436_v7, %v2412_v19  ;;  %v2525_v6 = vadd.f32 %v2524_v62, %v2520_v14  ;;  %v2731_v14 = vld [vmem:[#allocation8 + $0x70] sm:$0xff] }
 0x3a8   :  { %2738 = vmatpush.msra.mxu2 %v2731_v14  ;;  %v2721_v14 = vld [vmem:[#allocation8 + $0x20] sm:$0xff] }
 0x3a9   :  { %v2444_v60 = vadd.f32 %v2437_v54, %v2223_v52 }
 0x3ab   :  { %v2504_v8 = vmul.f32 %v3697_v5, %v2444_v60 }
 0x3ad   :  { %v2509_v50 = vadd.f32 %v2508_v31, %v2504_v8  ;;  %v2521_v56 = vmul.f32 %v2504_v8, %v2444_v60  ;;  %v2729_v8 = vld [vmem:[#allocation8 + $0x60] sm:$0xff] }
 0x3af   :  { %v2510_v55 = vrot.slane %v2509_v50, 4  ;;  %v2526_v9 = vadd.f32 %v2525_v6, %v2521_v56 }
 0x3b1   :  { %v2511_v48 = vadd.f32 %v2510_v55, %v2509_v50  ;;  %v2527_v63 = vrot.slane %v2526_v9, 4 }
 0x3b3   :  { %v2512_v17 = vrot.slane %v2511_v48, 2  ;;  %v2528_v49 = vadd.f32 %v2527_v63, %v2526_v9 }
 0x3b5   :  { %v2513_v45 = vadd.f32 %v2512_v17, %v2511_v48  ;;  %v2529_v18 = vrot.slane %v2528_v49, 2  ;;  %v2728_v48 = vld [vmem:[#allocation8 + $0x58] sm:$0xff] }
 0x3b7   :  { %v2514_v47 = vrot.slane %v2513_v45, 1  ;;  %v2530_v43 = vadd.f32 %v2529_v18, %v2528_v49  ;;  %v2727_v18 = vld [vmem:[#allocation8 + $0x50] sm:$0xff] }
 0x3b9   :  { %v2515_v10 = vadd.f32 %v2514_v47, %v2513_v45  ;;  %v2531_v37 = vrot.slane %v2530_v43, 1 }
 0x3bb   :  { %v2532_v2 = vadd.f32 %v2531_v37, %v2530_v43  ;;  %v2533_v41 = vmul.f32 0.03125, %v2515_v10  ;;  %v2717_v37 = vld [vmem:[#allocation8] sm:$0xff] }
 0x3bd   :  { %v2534_v42 = vmul.f32 0.03125, %v2532_v2  ;;  %v2535_v13 = vmul.f32 %v2533_v41, %v2533_v41  ;;  %v2726_v2 = vld [vmem:[#allocation8 + $0x48] sm:$0xff] }
 0x3bf   :  { %v2536_v26 = vsub.f32 %v2534_v42, %v2535_v13  ;;  %v2773_v13 = vld [vmem:[#allocation10 + $0x78] sm:$0xff] }
 0x3c0   :  { %2778 = vmatpush.msra.mxu3 %v2773_v13 }
 0x3c1   :  { %v2537_v15 = vmax.f32 %v2536_v26, 0.0 }
 0x3c3   :  { %v2539_v32 = vadd.f32 1e-05, %v2537_v15 }
 0x3c5   :  { %3778 = vrsqrt.f32 %v2539_v32  ;;  %vm2546_vm6 = vweird.f32 %v2539_v32 }
 0x3cb   :  { %v3779_v12 = vpop.eup %3778 }
 0x3cc   :  { %v2541_v34 = vmul.f32 %v3779_v12, %v2539_v32  ;;  %vm2547_vm11 = vweird.f32 %v3779_v12 }
 0x3cd   :  { %vm2548_vm7 = vmor %vm2546_vm6, %vm2547_vm11 }
 0x3ce   :  { %v2542_v21 = vmul.f32 %v3779_v12, %v2541_v34  ;;  %v2725_v34 = vld [vmem:[#allocation8 + $0x40] sm:$0xff] }
 0x3d0   :  { %v2543_v53 = vmul.f32 0.5, %v2542_v21 }
 0x3d2   :  { %v2544_v46 = vsub.f32 1.5, %v2543_v53 }
 0x3d4   :  { %v2545_v57 = vmul.f32 %v3779_v12, %v2544_v46 }
 0x3d6   :  { %v2549_v33 = vsel %vm2548_vm7, %v3779_v12, %v2545_v57 }
 0x3d7   :  { %v2550_v35 = vmul.f32 %v2549_v33, %v2538_v51 }
 0x3d9   :  { %v2552_v38 = vmul.f32 %v2550_v35, %v2533_v41  ;;  %v2555_v4 = vperm.slane %v2550_v35, 0 }
 0x3db   :  { %v2553_v24 = vsub.f32 %v2551_v20, %v2552_v38  ;;  %v2562_v0 = vmul.f32 %v2555_v4, %v2444_v60  ;;  %v2561_v61 = vmul.f32 %v2555_v4, %v5121_v1  ;;  %v2560_v30 = vmul.f32 %v2555_v4, %v5117_v22  ;;  %v2724_v20 = vld [vmem:[#allocation8 + $0x38] sm:$0xff] }
 0x3dc   :  { %v2559_v7 = vmul.f32 %v2555_v4, %v5114_v23  ;;  %v2558_v52 = vmul.f32 %v2555_v4, %v5110_v36  ;;  %v2557_v11 = vmul.f32 %v2555_v4, %v5112_v3  ;;  %v2730_v3 = vld [vmem:[#allocation8 + $0x68] sm:$0xff] }
 0x3dd   :  { %v2564_v27 = vperm.slane %v2553_v24, 0  ;;  %2739 = vmatpush.msra.mxu2 %v2730_v3 }
 0x3df   :  { %v2571_v40 = vadd.f32 %v2564_v27, %v2562_v0  ;;  %v2570_v29 = vadd.f32 %v2564_v27, %v2561_v61  ;;  %v2569_v58 = vadd.f32 %v2564_v27, %v2560_v30  ;;  %v2568_v59 = vadd.f32 %v2564_v27, %v2559_v7  ;;  %2740 = vmatpush.msra.mxu2 %v2729_v8  ;;  %v2723_v30 = vld [vmem:[#allocation8 + $0x30] sm:$0xff]  ;;  %v2720_v8 = vld [vmem:[#allocation8 + $0x18] sm:$0xff] }
 0x3e0   :  { %v2567_v16 = vadd.f32 %v2564_v27, %v2558_v52  ;;  %v2566_v54 = vadd.f32 %v2564_v27, %v2557_v11  ;;  %v2722_v11 = vld [vmem:[#allocation8 + $0x28] sm:$0xff] }
 0x3e1   :  { %v3483_v39 = vmul.f32 -1.442695, %v2571_v40  ;;  %v3482_v44 = vmul.f32 -1.442695, %v2570_v29  ;;  %v3481_v19 = vmul.f32 -1.442695, %v2569_v58  ;;  %2741 = vmatpush.msra.mxu2 %v2728_v48 }
 0x3e2   :  { %v3480_v1 = vmul.f32 -1.442695, %v2568_v59  ;;  %v3479_v5 = vmul.f32 -1.442695, %v2567_v16  ;;  %v3478_v22 = vmul.f32 -1.442695, %v2566_v54 }
 0x3e3   :  { %3780 = vpow2.f32 %v3483_v39  ;;  %2742 = vmatpush.msra.mxu2 %v2727_v18  ;;  %v3699_v40 = vld [vmem:[%s5283_s15] ss:$0 sm:$0xff] }
 0x3e4   :  { %3782 = vpow2.f32 %v3482_v44 }
 0x3e5   :  { %3784 = vpow2.f32 %v3481_v19  ;;  %2743 = vmatpush.msra.mxu2 %v2726_v2 }
 0x3e6   :  { %3786 = vpow2.f32 %v3480_v1 }
 0x3e7   :  { %3788 = vpow2.f32 %v3479_v5  ;;  %2744 = vmatpush.msra.mxu2 %v2725_v34  ;;  %v2768_v34 = vld [vmem:[#allocation10 + $0x50] sm:$0xff] }
 0x3e8   :  { %3790 = vpow2.f32 %v3478_v22 }
 0x3e9   :  { %v3781_v25 = vpop.eup %3780  ;;  %2745 = vmatpush.msra.mxu2 %v2724_v20  ;;  %v2760_v20 = vld [vmem:[#allocation10 + $0x10] sm:$0xff] }
 0x3ea   :  { %v3783_v23 = vpop.eup %3782  ;;  %v5141_v60 = vadd.f32 1.0, %v3781_v25 }
 0x3eb   :  { %v3785_v36 = vpop.eup %3784  ;;  %v5143_v62 = vadd.f32 1.0, %v3783_v23  ;;  %2746 = vmatpush.msra.mxu2 %v2723_v30 }
 0x3ec   :  { %3792 = vrcp.f32 %v5141_v60  ;;  %v3787_v31 = vpop.eup %3786  ;;  %v5147_v50 = vadd.f32 1.0, %v3785_v36  ;;  %v2680_v55 = vand.u32 2147483647, %v5141_v60  ;;  %v2682_v63 = vand.u32 2147483648, %v5141_v60 }
 0x3ed   :  { %3794 = vrcp.f32 %v5143_v62  ;;  %v3789_v6 = vpop.eup %3788  ;;  %v5149_v56 = vadd.f32 1.0, %v3787_v31  ;;  %v2665_v17 = vand.u32 2147483647, %v5143_v62  ;;  %v2667_v49 = vand.u32 2147483648, %v5143_v62  ;;  %2747 = vmatpush.msra.mxu2 %v2722_v11 }
 0x3ee   :  { %v5152_v9 = vadd.f32 1.0, %v3789_v6  ;;  %3796 = vrcp.f32 %v5147_v50  ;;  %v3791_v45 = vpop.eup %3790  ;;  %vm2676_vm8 = vweird.f32 %v5141_v60  ;;  %vm5162_vm9 = vcmp.eq.f32.partialorder %v2680_v55, 8.507059e+37 }
 0x3ef   :  { %3798 = vrcp.f32 %v5149_v56  ;;  %vm2661_vm12 = vweird.f32 %v5143_v62  ;;  %v2683_v41 = vor.u32 1.1754944e-38, %v2682_v63  ;;  %vm5168_vm10 = vcmp.eq.f32.partialorder %v2665_v17, 8.507059e+37  ;;  %2748 = vmatpush.msra.mxu2 %v2721_v14  ;;  %v2719_v17 = vld [vmem:[#allocation8 + $0x10] sm:$0xff] }
 0x3f0   :  { %3800 = vrcp.f32 %v5152_v9  ;;  %v2668_v26 = vor.u32 1.1754944e-38, %v2667_v49  ;;  %vm2646_vm13 = vweird.f32 %v5147_v50  ;;  %v2650_v32 = vand.u32 2147483647, %v5147_v50 }
 0x3f1   :  { %v5174_v12 = vadd.f32 1.0, %v3791_v45  ;;  %v2652_v46 = vand.u32 2147483648, %v5147_v50  ;;  %vm2631_vm14 = vweird.f32 %v5149_v56  ;;  %v2635_v51 = vand.u32 2147483647, %v5149_v56  ;;  %2749 = vmatpush.msra.mxu2 %v2720_v8 }
 0x3f2   :  { %v3793_v47 = vpop.eup %3792  ;;  %v2637_v0 = vand.u32 2147483648, %v5149_v56  ;;  %vm5191_vm1 = vcmp.eq.f32.partialorder %v2650_v32, 8.507059e+37  ;;  %v2620_v58 = vand.u32 2147483647, %v5152_v9  ;;  %v2622_v7 = vand.u32 2147483648, %v5152_v9  ;;  %v2770_v32 = vld [vmem:[#allocation10 + $0x60] sm:$0xff] }
 0x3f3   :  { %v3795_v43 = vpop.eup %3794  ;;  %v2672_v10 = vmul.f32 %v3793_v47, %v5141_v60  ;;  %vm2677_vm15 = vweird.f32 %v3793_v47  ;;  %3802 = vrcp.f32 %v5174_v12  ;;  %v2653_v23 = vor.u32 1.1754944e-38, %v2652_v46  ;;  %2750 = vmatpush.msra.mxu2 %v2719_v17  ;;  %v2765_v46 = vld [vmem:[#allocation10 + $0x38] sm:$0xff] }
 0x3f4   :  { %v2657_v42 = vmul.f32 %v3795_v43, %v5143_v62  ;;  %v5176_v21 = vpop.eup %3796  ;;  %vm2662_vm0 = vweird.f32 %v3795_v43  ;;  %vm2678_vm4 = vmor %vm2676_vm8, %vm2677_vm15  ;;  %vm2616_vm7 = vweird.f32 %v5152_v9  ;;  %v2638_v3 = vor.u32 1.1754944e-38, %v2637_v0  ;;  %v3698_v0 = vld [vmem:[%s5281_s13] ss:$0 sm:$0xff]  ;;  %s2845_s13 = sshll.u32 %s5287_s19, 4  ;;  %s2831_s19 = sshll.u32 %s5286_s18, 4  ;;  %s2846_s13 = int_to_ptr.hbm [resolvable:$true] %s2845_s13  ;;  %s2832_s19 = int_to_ptr.hbm [resolvable:$true] %s2831_s19 }
 0x3f5   :  { %v2673_v15 = vsub.f32 1.0, %v2672_v10  ;;  %v5181_v57 = vpop.eup %3798  ;;  %v2642_v35 = vmul.f32 %v5176_v21, %v5147_v50  ;;  %vm2663_vm2 = vmor %vm2661_vm12, %vm2662_vm0  ;;  %vm2647_vm3 = vweird.f32 %v5176_v21  ;;  %v2623_v55 = vor.u32 1.1754944e-38, %v2622_v7 }
 0x3f6   :  { %v2658_v53 = vsub.f32 1.0, %v2657_v42  ;;  %v5186_v38 = vpop.eup %3800  ;;  %v2627_v24 = vmul.f32 %v5181_v57, %v5149_v56  ;;  %vm2632_vm5 = vweird.f32 %v5181_v57  ;;  %vm2648_vm6 = vmor %vm2646_vm13, %vm2647_vm3  ;;  %v2607_v63 = vand.u32 2147483648, %v5174_v12 }
 0x3f7   :  { %v2674_v33 = vmul.f32 %v3793_v47, %v2673_v15  ;;  %v2643_v61 = vsub.f32 1.0, %v2642_v35  ;;  %v2612_v29 = vmul.f32 %v5186_v38, %v5152_v9  ;;  %vm2617_vm11 = vweird.f32 %v5186_v38  ;;  %vm2633_vm8 = vmor %vm2631_vm14, %vm2632_vm5  ;;  %v2771_v15 = vld [vmem:[#allocation10 + $0x68] sm:$0xff]  ;;  %v2761_v35 = vld [vmem:[#allocation10 + $0x18] sm:$0xff] }
 0x3f8   :  { %v2659_v4 = vmul.f32 %v3795_v43, %v2658_v53  ;;  %v2628_v44 = vsub.f32 1.0, %v2627_v24  ;;  %vm2618_vm12 = vmor %vm2616_vm7, %vm2617_vm11  ;;  %v2605_v18 = vand.u32 2147483647, %v5174_v12  ;;  %vm2601_vm14 = vweird.f32 %v5174_v12  ;;  %v2766_v53 = vld [vmem:[#allocation10 + $0x40] sm:$0xff] }
 0x3f9   :  { %v2675_v27 = vadd.f32 %v3793_v47, %v2674_v33  ;;  %v2644_v19 = vmul.f32 %v5176_v21, %v2643_v61  ;;  %v2613_v59 = vsub.f32 1.0, %v2612_v29  ;;  %v3803_v5 = vpop.eup %3802  ;;  %v2608_v10 = vor.u32 1.1754944e-38, %v2607_v63  ;;  %v2762_v33 = vld [vmem:[#allocation10 + $0x20] sm:$0xff] }
 0x3fa   :  { %v2660_v39 = vadd.f32 %v3795_v43, %v2659_v4  ;;  %v2629_v54 = vmul.f32 %v5181_v57, %v2628_v44  ;;  %v2597_v36 = vmul.f32 %v3803_v5, %v5174_v12  ;;  %vm2602_vm13 = vweird.f32 %v3803_v5  ;;  %v2769_v12 = vld [vmem:[#allocation10 + $0x58] sm:$0xff]  ;;  %v2758_v24 = vld [vmem:[#allocation10] sm:$0xff] }
 0x3fb   :  { %v2679_v52 = vsel %vm2678_vm4, %v3793_v47, %v2675_v27  ;;  %v2645_v25 = vadd.f32 %v5176_v21, %v2644_v19  ;;  %v2614_v28 = vmul.f32 %v5186_v38, %v2613_v59  ;;  %v2718_v47 = vld [vmem:[#allocation8 + $0x8] sm:$0xff]  ;;  %vm2603_vm15 = vmor %vm2601_vm14, %vm2602_vm13  ;;  %vm2606_vm0 = vcmp.eq.f32.partialorder %v2605_v18, 8.507059e+37 }
 0x3fc   :  { %v2684_v16 = vsel %vm5162_vm9, %v2683_v41, %v2679_v52  ;;  %v2664_v1 = vsel %vm2663_vm2, %v3795_v43, %v2660_v39  ;;  %v2630_v60 = vadd.f32 %v5181_v57, %v2629_v54  ;;  %vm2636_vm9 = vcmp.eq.f32.partialorder %v2635_v51, 8.507059e+37  ;;  %v2692_v41 = vld [vmem:[%s5364_s22] sm:$0x3]  ;;  %2751 = vmatpush.msra.mxu2 %v2718_v47  ;;  %v2764_v51 = vld [vmem:[#allocation10 + $0x30] sm:$0xff] }
 0x3fd   :  { %2691 = vst [vmem:[#allocation14 + $0x28] sm:$0xff] %v2684_v16  ;;  %2707 = vmatpush.msrb.mxu1 %v2684_v16  ;;  %v2669_v22 = vsel %vm5168_vm10, %v2668_v26, %v2664_v1  ;;  %v2649_v62 = vsel %vm2648_vm6, %v5176_v21, %v2645_v25  ;;  %v2615_v31 = vadd.f32 %v5186_v38, %v2614_v28  ;;  %v2598_v9 = vsub.f32 1.0, %v2597_v36  ;;  %v2772_v26 = vld [vmem:[#allocation10 + $0x70] sm:$0xff]  ;;  %v2767_v21 = vld [vmem:[#allocation10 + $0x48] sm:$0xff] }
 0x3fe   :  { %2690 = vst [vmem:[#allocation14 + $0x20] sm:$0xff] %v2669_v22  ;;  %v2654_v6 = vsel %vm5191_vm1, %v2653_v23, %v2649_v62  ;;  %v2634_v50 = vsel %vm2633_vm8, %v5181_v57, %v2630_v60  ;;  %vm2621_vm10 = vcmp.eq.f32.partialorder %v2620_v58, 8.507059e+37  ;;  %vm2693_vm1 = vcmask 392192   ;;  %2752 = vmatpush.msra.mxu2 %v2717_v37  ;;  %2779 = vmatpush.msra.mxu3 %v2772_v26  ;;  %v2763_v57 = vld [vmem:[#allocation10 + $0x28] sm:$0xff] }
 0x3ff   :  { %2708 = vmatpush.msrb.mxu1 %v2669_v22  ;;  %2689 = vst [vmem:[#allocation14 + $0x18] sm:$0xff] %v2654_v6  ;;  %v2639_v56 = vsel %vm2636_vm9, %v2638_v3, %v2634_v50  ;;  %v2619_v48 = vsel %vm2618_vm12, %v5186_v38, %v2615_v31  ;;  %v2599_v45 = vmul.f32 %v3803_v5, %v2598_v9  ;;  %v2759_v38 = vld [vmem:[#allocation10 + $0x8] sm:$0xff] }
 0x400   :  { %2688 = vst [vmem:[#allocation14 + $0x10] sm:$0xff] %v2639_v56  ;;  %v2624_v49 = vsel %vm2621_vm10, %v2623_v55, %v2619_v48  ;;  %2780 = vmatpush.msra.mxu3 %v2771_v15 }
 0x401   :  { %2709 = vmatpush.msrb.mxu1 %v2654_v6  ;;  %2687 = vst [vmem:[#allocation14 + $0x8] sm:$0xff] %v2624_v49  ;;  %v2600_v43 = vadd.f32 %v3803_v5, %v2599_v45 }
 0x402   :  { %2781 = vmatpush.msra.mxu3 %v2770_v32 }
 0x403   :  { %2710 = vmatpush.msrb.mxu1 %v2639_v56  ;;  %v2604_v2 = vsel %vm2603_vm15, %v3803_v5, %v2600_v43 }
 0x404   :  { %v2609_v42 = vsel %vm2606_vm0, %v2608_v10, %v2604_v2  ;;  %2782 = vmatpush.msra.mxu3 %v2769_v12 }
 0x405   :  { %2711 = vmatpush.msrb.mxu1 %v2624_v49  ;;  %2686 = vst [vmem:[#allocation14] sm:$0xff] %v2609_v42 }
 0x406   :  { %2783 = vmatpush.msra.mxu3 %v2768_v34  ;;  %2837 = dma.vmem_to_hbm [thread:$0]  %s2830_s1, 768, %s2832_s19, [#allocation13], %s4062_s27, %s4062_s27, %s4063_s28  }
 0x407   :  { %2712 = vmatpush.msrb.mxu1 %v2609_v42 }
 0x408   :  { %3484 = vmatmul.msk.f32.vlgmr.msrb.gmra.mxu1 %vm2693_vm1, %v2692_v41  ;;  %2784 = vmatpush.msra.mxu3 %v2767_v21 }
 0x40a   :  { %2785 = vmatpush.msra.mxu3 %v2766_v53 }
 0x40c   :  { %2786 = vmatpush.msra.mxu3 %v2765_v46 }
 0x40e   :  { %2787 = vmatpush.msra.mxu3 %v2764_v51 }
 0x410   :  { %2788 = vmatpush.msra.mxu3 %v2763_v57 }
 0x412   :  { %2789 = vmatpush.msra.mxu3 %v2762_v33 }
 0x414   :  { %2790 = vmatpush.msra.mxu3 %v2761_v35 }
 0x416   :  { %2791 = vmatpush.msra.mxu3 %v2760_v20 }
 0x418   :  { %2792 = vmatpush.msra.mxu3 %v2759_v38 }
 0x41a   :  { %2793 = vmatpush.msra.mxu3 %v2758_v24 }
 0x485   :  { %v2714_v4 = vpop.f32.mrf.mxu1 }
 0x486   :  { %2753 = vmatmul.f32.vlgmr.msra.gmra.mxu2 %v2714_v4 }
 0x509   :  { %v2754_v27 = vpop.f32.mrf.mxu2 }
 0x50a   :  { %v2755_v61 = vadd.f32 %v3698_v0, %v2754_v27 }
 0x50c   :  { %2757 = vst [vmem:[#allocation15] sm:$0x3] %v2755_v61  ;;  %2794 = vmatmul.f32.vlgmr.msra.gmra.mxu3 %v2755_v61 }
 0x50d   :  { %2848 = dma.vmem_to_hbm [thread:$0]  %s2844_s26, 32, %s2846_s13, [#allocation16]  }
 0x58f   :  { %v2795_v29 = vpop.f32.mrf.mxu3 }
 0x590   :  { %v2796_v30 = vadd.f32 %v3699_v40, %v2795_v29 }
 0x592   :  { %2798 = vst [vmem:[#allocation17] sm:$0x3] %v2796_v30 }
 0x593   :  { %2859 = dma.vmem_to_hbm [thread:$0]  %s2855_s23, 32, %s2857_s25, [#allocation16]  }
 0x594   :  { %4055 = dma.done.wait [#allocation4], 896  }
 0x595   :  { %4056 = vsyncadd [#allocation4], 4294966400 }
 0x596   :  { %4057 = dma.done.wait [#allocation13], 2560  }
 0x597   :  { %4058 = vsyncadd [#allocation13], 4294964736 }
 0x598   :  { %4059 = dma.done.wait [#allocation16], 64  }
 0x599   :  { %4060 = vsyncadd [#allocation16], 4294967232 }
 0x59a   :  { %2880 = vsyncpa [#allocation3], 1 }
 0x59b   :  { %2881 = vsyncpa [#allocation6], 1 }
 0x59c   :  { %2882 = vsyncpa [#allocation9], 1 }
 0x59d   :  { %2883 = vsyncpa [#allocation4], 1 }
 0x59e   :  { %2884 = vsyncpa [#allocation13], 1 }
 0x59f   :  { %2885 = vsyncpa [#allocation16], 1 }

</bundles_post_ra>
